<compile_context>
chip_gen: v7x
topology: tpu7x:2x2x1
jax: 0.10.0
libtpu: 0.0.40
codegen_flags: <defaults>
</compile_context>

<pallas_src>
import functools

import numpy as np
import jax
import jax.numpy as jnp
from jax import lax
from jax.experimental import pallas as pl
from jax.experimental.pallas import tpu as pltpu


# ----------------------------------------------------------------------------
# In-kernel building block (shared by encoder / decoder stack kernels)
# ----------------------------------------------------------------------------
def _apply_block(x, ln_g, ln_b, wqkv, bqkv, ff_w1, ff_b1, ff_w2, ff_b2,
                 head_masks, scale):
    """One transformer Block, faithful to the PyTorch reference:
       x = x + dropout(att(ln(x))); x = x + dropout(ff(ln(x)))
       - the SAME LayerNorm (self.ll) is used before attention and FFN,
       - FFN is Linear -> Linear with NO nonlinearity,
       - dropout is identity (eval mode)."""
    E = x.shape[-1]

    def ln(t):
        mu = jnp.mean(t, axis=-1, keepdims=True)
        var = jnp.mean((t - mu) ** 2, axis=-1, keepdims=True)
        return (t - mu) * lax.rsqrt(var + 1e-5) * ln_g + ln_b

    # ---- multi-head attention (fused QKV matmul) ----
    h = ln(x)
    qkv = jnp.dot(h, wqkv, preferred_element_type=jnp.float32) + bqkv  # (N, 3E)
    q = qkv[:, :E]
    k = qkv[:, E:2 * E]
    v = qkv[:, 2 * E:]

    att = jnp.zeros_like(x)
    # Heads via precomputed column masks (built once per kernel invocation):
    # zeroed columns contribute exactly 0 to the contractions, so results
    # equal per-head slicing while matmuls stay full lane width.
    # TODO(synk): at real MAE sizes replace with a head-batched lax.dot_general
    # over (H, N, hd) to avoid the num_head-fold redundant MXU contraction
    # (negligible at E <= 32).
    for m in head_masks:
        qh, kh, vh = q * m, k * m, v * m
        wei = lax.dot_general(qh, kh, (((1,), (1,)), ((), ())),
                              preferred_element_type=jnp.float32) * scale
        # Reference applies F.softmax(wei, dim=2) on (b, h, nq, nk): dim=2 is
        # the QUERY axis -> axis 0 here (faithful to the PyTorch module).
        wei = wei - jnp.max(wei, axis=0, keepdims=True)
        e = jnp.exp(wei)
        wei = e / jnp.sum(e, axis=0, keepdims=True)   # exact division
        att = att + jnp.dot(wei, vh, preferred_element_type=jnp.float32)
    # TODO(synk): attention / residual dropout (p=0.1) treated as identity.
    x = x + att

    # ---- feed-forward: Linear -> Linear, no nonlinearity (faithful) ----
    h = ln(x)
    f = jnp.dot(h, ff_w1, preferred_element_type=jnp.float32) + ff_b1
    f = jnp.dot(f, ff_w2, preferred_element_type=jnp.float32) + ff_b2
    return x + f


def _head_masks(width, num_head):
    hd = width // num_head
    col = lax.broadcasted_iota(jnp.int32, (1, width), 1)
    return [jnp.where((col >= h * hd) & (col < (h + 1) * hd), 1.0, 0.0)
            for h in range(num_head)]


# ----------------------------------------------------------------------------
# Kernel 1: patch-embed + full encoder stack + decoder_embed
# ----------------------------------------------------------------------------
def _encoder_stack_kernel(patches_ref, pos_ref, pew_ref,
                          lng_ref, lnb_ref, wqkv_ref, bqkv_ref,
                          ffw1_ref, ffb1_ref, ffw2_ref, ffb2_ref,
                          decw_ref, decb_ref, o_ref,
                          *, num_layers, num_head, scale):
    # Row 0 of patches is zeros (cls slot); pos_ref row 0 carries
    # cls_token + pos[0], rows 1.. carry gathered pos[1:] + patch-embed bias.
    x = (jnp.dot(patches_ref[0], pew_ref[...], preferred_element_type=jnp.float32)
         + pos_ref[0])                                       # (Nk, E)
    masks = _head_masks(x.shape[-1], num_head)               # hoisted, reused
    for l in range(num_layers):   # static unroll; weights stacked on dim 0
        x = _apply_block(x, lng_ref[l], lnb_ref[l], wqkv_ref[l], bqkv_ref[l],
                         ffw1_ref[l], ffb1_ref[l], ffw2_ref[l], ffb2_ref[l],
                         masks, scale)
    # decoder_embed linear fused into the tail of the encoder stack.
    o_ref[0] = (jnp.dot(x, decw_ref[...], preferred_element_type=jnp.float32)
                + decb_ref[...]).astype(o_ref.dtype)


def encoder_stack(patches_in, pos_in, params, cfg):
    B, Nk, K = patches_in.shape
    E, D, nh = cfg["emb_size"], cfg["dec_emb_size"], cfg["num_head"]
    bp = params["enc_blocks"]
    L = bp["wqkv"].shape[0]
    scale = 1.0 / float(np.sqrt(nh))
    kern = functools.partial(_encoder_stack_kernel,
                             num_layers=L, num_head=nh, scale=scale)
    return pl.pallas_call(
        kern,
        grid=(B,),
        in_specs=[
            pl.BlockSpec((1, Nk, K), lambda b: (b, 0, 0)),
            pl.BlockSpec((1, Nk, E), lambda b: (b, 0, 0)),
            pl.BlockSpec((K, E), lambda b: (0, 0)),
            pl.BlockSpec((L, 1, E), lambda b: (0, 0, 0)),
            pl.BlockSpec((L, 1, E), lambda b: (0, 0, 0)),
            pl.BlockSpec((L, E, 3 * E), lambda b: (0, 0, 0)),
            pl.BlockSpec((L, 1, 3 * E), lambda b: (0, 0, 0)),
            pl.BlockSpec((L, E, 4 * E), lambda b: (0, 0, 0)),
            pl.BlockSpec((L, 1, 4 * E), lambda b: (0, 0, 0)),
            pl.BlockSpec((L, 4 * E, E), lambda b: (0, 0, 0)),
            pl.BlockSpec((L, 1, E), lambda b: (0, 0, 0)),
            pl.BlockSpec((E, D), lambda b: (0, 0)),
            pl.BlockSpec((1, D), lambda b: (0, 0)),
        ],
        out_specs=pl.BlockSpec((1, Nk, D), lambda b: (b, 0, 0)),
        out_shape=jax.ShapeDtypeStruct((B, Nk, D), jnp.float32),
        compiler_params=pltpu.CompilerParams(dimension_semantics=("parallel",)),
    )(patches_in, pos_in, params["pe_w"],
      bp["ln_g"], bp["ln_b"], bp["wqkv"], bp["bqkv"],
      bp["ff_w1"], bp["ff_b1"], bp["ff_w2"], bp["ff_b2"],
      params["dec_embed_w"], params["dec_embed_b"].reshape(1, D))


# ----------------------------------------------------------------------------
# Kernel 2: full decoder stack + decoder_pred + target projection + masked MSE
# ----------------------------------------------------------------------------
def _decoder_stack_kernel(x_ref, lng_ref, lnb_ref, wqkv_ref, bqkv_ref,
                          ffw1_ref, ffb1_ref, ffw2_ref, ffb2_ref,
                          predw_ref, predb_ref, patches_ref, projw_ref,
                          projb_ref, mask_ref, pred_ref, num_ref,
                          *, num_layers, num_head, scale):
    x = x_ref[0].astype(jnp.float32)                         # (T+1, D)
    masks = _head_masks(x.shape[-1], num_head)
    for l in range(num_layers):
        x = _apply_block(x, lng_ref[l], lnb_ref[l], wqkv_ref[l], bqkv_ref[l],
                         ffw1_ref[l], ffb1_ref[l], ffw2_ref[l], ffb2_ref[l],
                         masks, scale)
    # decoder_pred on rows 1.. only (cls prediction is discarded by the ref).
    pred = (jnp.dot(x[1:, :], predw_ref[...], preferred_element_type=jnp.float32)
            + predb_ref[...])                                 # (T, P)
    pred_ref[0] = pred.astype(pred_ref.dtype)
    # fused masked-MSE numerator: target projection (patch conv-as-matmul).
    tgt = (jnp.dot(patches_ref[0], projw_ref[...],
                   preferred_element_type=jnp.float32) + projb_ref[...])
    d = pred - tgt
    per = jnp.mean(d * d, axis=-1, keepdims=True)             # (T, 1)
    num_ref[0] = jnp.sum(per * mask_ref[0], keepdims=True)    # (1, 1)


def decoder_stack(x_dec, patches, mask, params, cfg):
    B, N1, D = x_dec.shape                 # N1 = T + 1
    T, K = patches.shape[1], patches.shape[2]
    P = params["pred_w"].shape[1]
    nh = cfg["num_head"]
    bp = params["dec_blocks"]
    L = bp["wqkv"].shape[0]
    scale = 1.0 / float(np.sqrt(nh))
    kern = functools.partial(_decoder_stack_kernel,
                             num_layers=L, num_head=nh, scale=scale)
    pred, num = pl.pallas_call(
        kern,
        grid=(B,),
        in_specs=[
            pl.BlockSpec((1, N1, D), lambda b: (b, 0, 0)),
            pl.BlockSpec((L, 1, D), lambda b: (0, 0, 0)),
            pl.BlockSpec((L, 1, D), lambda b: (0, 0, 0)),
            pl.BlockSpec((L, D, 3 * D), lambda b: (0, 0, 0)),
            pl.BlockSpec((L, 1, 3 * D), lambda b: (0, 0, 0)),
            pl.BlockSpec((L, D, 4 * D), lambda b: (0, 0, 0)),
            pl.BlockSpec((L, 1, 4 * D), lambda b: (0, 0, 0)),
            pl.BlockSpec((L, 4 * D, D), lambda b: (0, 0, 0)),
            pl.BlockSpec((L, 1, D), lambda b: (0, 0, 0)),
            pl.BlockSpec((D, P), lambda b: (0, 0)),
            pl.BlockSpec((1, P), lambda b: (0, 0)),
            pl.BlockSpec((1, T, K), lambda b: (b, 0, 0)),
            pl.BlockSpec((K, P), lambda b: (0, 0)),
            pl.BlockSpec((1, P), lambda b: (0, 0)),
            pl.BlockSpec((1, T, 1), lambda b: (b, 0, 0)),
        ],
        out_specs=(
            pl.BlockSpec((1, T, P), lambda b: (b, 0, 0)),
            pl.BlockSpec((1, 1, 1), lambda b: (b, 0, 0)),
        ),
        out_shape=(
            jax.ShapeDtypeStruct((B, T, P), jnp.float32),
            jax.ShapeDtypeStruct((B, 1, 1), jnp.float32),
        ),
        compiler_params=pltpu.CompilerParams(dimension_semantics=("parallel",)),
    )(x_dec, bp["ln_g"], bp["ln_b"], bp["wqkv"], bp["bqkv"],
      bp["ff_w1"], bp["ff_b1"], bp["ff_w2"], bp["ff_b2"],
      params["pred_w"], params["pred_b"].reshape(1, P),
      patches, params["proj_w"], params["proj_b"].reshape(1, P),
      mask.reshape(B, T, 1))
    return pred, num


# ----------------------------------------------------------------------------
# Model glue (plain JAX around the two Pallas kernels)
# ----------------------------------------------------------------------------
def position_embedding(seq_len, emb_size):
    emb = np.ones((seq_len, emb_size), dtype=np.float32)
    for i in range(seq_len):
        for j in range(emb_size):
            if j % 2 == 0:
                emb[i, j] = np.sin(i / pow(10000, j / emb_size))
            else:
                emb[i, j] = np.cos(i / pow(10000, (j - 1) / emb_size))
    return jnp.asarray(emb)


def extract_patches(x, p):
    """x: (B, C, H, W) NCHW -> (B, (H/p)*(W/p), C*p*p), flatten order (C, ph, pw)."""
    B, C, H, W = x.shape
    hp, wp = H // p, W // p
    x = x.reshape(B, C, hp, p, wp, p)
    x = x.transpose(0, 2, 4, 1, 3, 5)  # (B, hp, wp, C, p, p)
    return x.reshape(B, hp * wp, C * p * p)


def mae_forward(params, img, key, cfg):
    B = img.shape[0]
    p = cfg["patch_size"]
    E = cfg["emb_size"]
    D = cfg["dec_emb_size"]
    mask_ratio = 0.75

    # Patches computed ONCE, reused for encoder input + loss target.
    patches = extract_patches(img, p)                      # (B, T, K)
    T, K = patches.shape[1], patches.shape[2]
    len_keep = int(T * (1 - mask_ratio))
    Nk = len_keep + 1

    # ---- random masking (data-dependent gathers stay in plain JAX) ----
    noise = jax.random.uniform(key, (B, T))
    ids_shuffle = jnp.argsort(noise, axis=1)
    ids_restore = jnp.argsort(ids_shuffle, axis=1)
    ids_keep = ids_shuffle[:, :len_keep]
    mask = jnp.ones((B, T), jnp.float32).at[:, :len_keep].set(0.0)
    mask = jnp.take_along_axis(mask, ids_restore, axis=1)

    # Gather kept patches and their positional rows (patch-embed is linear, so
    # gathering before the projection is exactly equivalent to the reference).
    patches_kept = jnp.take_along_axis(
        patches, jnp.broadcast_to(ids_keep[:, :, None], (B, len_keep, K)), axis=1)
    pos_kept = jnp.take(params["pos_embed"][1:], ids_keep, axis=0)   # (B, lk, E)

    # Assemble encoder-kernel inputs: row 0 is the cls slot (zero patch row;
    # pos row carries cls_token + pos[0]); patch-embed bias folded into pos.
    patches_in = jnp.concatenate(
        [jnp.zeros((B, 1, K), jnp.float32), patches_kept], axis=1)   # (B, Nk, K)
    cls_row = params["cls_token"][0] + params["pos_embed"][:1]       # (1, E)
    pos_in = jnp.concatenate(
        [jnp.broadcast_to(cls_row[None], (B, 1, E)),
         pos_kept + params["pe_b"][None, None, :]], axis=1)          # (B, Nk, E)

    # ---- Kernel 1: patch-embed + encoder stack + decoder_embed ----
    enc_out = encoder_stack(patches_in, pos_in, params, cfg)         # (B, Nk, D)

    # ---- decoder token un-shuffle (data-dependent gather, plain JAX) ----
    mask_tokens = jnp.broadcast_to(params["mask_token"], (B, T + 1 - Nk, D))
    x_ = jnp.concatenate([enc_out[:, 1:, :], mask_tokens], axis=1)   # (B, T, D)
    idx = jnp.broadcast_to(ids_restore[:, :, None], (B, T, D))
    x_ = jnp.take_along_axis(x_, idx, axis=1)
    x_dec = (jnp.concatenate([enc_out[:, :1, :], x_], axis=1)
             + params["dec_pos_embed"])                              # (B, T+1, D)

    # ---- Kernel 2: decoder stack + pred + target proj + masked MSE ----
    pred, num = decoder_stack(x_dec, patches, mask, params, cfg)
    loss = jnp.sum(num) / jnp.sum(mask)
    return loss, pred, mask


# ----------------------------------------------------------------------------
# Deterministic parameter initialization (shapes follow the PyTorch __init__)
# ----------------------------------------------------------------------------
def init_linear_params(key, fan_in, fan_out):
    k1, k2 = jax.random.split(key)
    bound = 1.0 / float(np.sqrt(fan_in))
    w = jax.random.uniform(k1, (fan_in, fan_out), jnp.float32, -bound, bound)
    b = jax.random.uniform(k2, (fan_out,), jnp.float32, -bound, bound)
    return w, b


def init_block_stack(key, emb, num_layers):
    """Per-layer Block params stacked along a leading layer axis."""
    keys = jax.random.split(key, num_layers)
    per = []
    for k in keys:
        ks = jax.random.split(k, 3)
        wqkv, bqkv = init_linear_params(ks[0], emb, 3 * emb)  # fused Q/K/V
        w1, b1 = init_linear_params(ks[1], emb, 4 * emb)
        w2, b2 = init_linear_params(ks[2], 4 * emb, emb)
        per.append((wqkv, bqkv, w1, b1, w2, b2))
    stack = lambda i: jnp.stack([t[i] for t in per], axis=0)
    return dict(
        ln_g=jnp.ones((num_layers, 1, emb), jnp.float32),
        ln_b=jnp.zeros((num_layers, 1, emb), jnp.float32),
        wqkv=stack(0), bqkv=stack(1)[:, None, :],
        ff_w1=stack(2), ff_b1=stack(3)[:, None, :],
        ff_w2=stack(4), ff_b2=stack(5)[:, None, :],
    )


def init_params(key, cfg):
    C, p = cfg["in_channels"], cfg["patch_size"]
    E, D = cfg["emb_size"], cfg["dec_emb_size"]
    T = (cfg["img_size"] // p) ** 2
    ks = jax.random.split(key, 7)

    pe_w, pe_b = init_linear_params(ks[0], C * p * p, E)        # patch-embed conv
    cls_token = jax.random.uniform(ks[1], (1, 1, E), jnp.float32)
    pos_embed = position_embedding(T + 1, E)
    dec_embed_w, dec_embed_b = init_linear_params(ks[2], E, D)
    pred_w, pred_b = init_linear_params(ks[3], D, p * p * C)
    proj_w, proj_b = init_linear_params(ks[4], C * p * p, p * p * C)  # loss target conv
    mask_token = jnp.zeros((1, 1, D), jnp.float32)
    dec_pos_embed = jnp.zeros((1, T + 1, D), jnp.float32)

    enc_blocks = init_block_stack(ks[5], E, cfg["enc_layers"])
    dec_blocks = init_block_stack(ks[6], D, cfg["dec_layers"])
    return dict(
        pe_w=pe_w, pe_b=pe_b, cls_token=cls_token, pos_embed=pos_embed,
        dec_embed_w=dec_embed_w, dec_embed_b=dec_embed_b,
        pred_w=pred_w, pred_b=pred_b, proj_w=proj_w, proj_b=proj_b,
        mask_token=mask_token, dec_pos_embed=dec_pos_embed,
        enc_blocks=enc_blocks, dec_blocks=dec_blocks,
    )


# ----------------------------------------------------------------------------
if __name__ == "__main__":
    cfg = dict(
        in_channels=3,
        patch_size=4,
        img_size=16,
        emb_size=32,
        dec_emb_size=16,
        num_head=4,
        enc_layers=2,
        dec_layers=2,
    )
    key = jax.random.PRNGKey(0)
    pkey, ikey, mkey = jax.random.split(key, 3)

    params = init_params(pkey, cfg)
    # layout: NCHW image input, matching the PyTorch module.
    img = jax.random.normal(ikey, (2, 3, 16, 16), jnp.float32)

    forward = jax.jit(functools.partial(mae_forward, cfg=cfg))
    loss, pred, mask = forward(params, img, mkey)
    jax.block_until_ready((loss, pred, mask))

    assert pred.shape == (2, 16, cfg["patch_size"] ** 2 * cfg["in_channels"])
    assert mask.shape == (2, 16)
    assert loss.shape == ()
    print("KERNEL_OK")
</pallas_src>

<mosaic_0001>
module attributes {stable_mosaic.version = 11 : i64} {
  func.func @_encoder_stack_kernel(%arg0: i32, %arg1: memref<1x5x48xf32, #tpu.memory_space<vmem>>, %arg2: memref<1x5x32xf32, #tpu.memory_space<vmem>>, %arg3: memref<48x32xf32, #tpu.memory_space<vmem>>, %arg4: memref<2x1x32xf32, #tpu.memory_space<vmem>>, %arg5: memref<2x1x32xf32, #tpu.memory_space<vmem>>, %arg6: memref<2x32x96xf32, #tpu.memory_space<vmem>>, %arg7: memref<2x1x96xf32, #tpu.memory_space<vmem>>, %arg8: memref<2x32x128xf32, #tpu.memory_space<vmem>>, %arg9: memref<2x1x128xf32, #tpu.memory_space<vmem>>, %arg10: memref<2x128x32xf32, #tpu.memory_space<vmem>>, %arg11: memref<2x1x32xf32, #tpu.memory_space<vmem>>, %arg12: memref<32x16xf32, #tpu.memory_space<vmem>>, %arg13: memref<1x16xf32, #tpu.memory_space<vmem>>, %arg14: memref<1x5x16xf32, #tpu.memory_space<vmem>>) attributes {dimension_semantics = [#tpu.dimension_semantics<parallel>], iteration_bounds = array<i64: 2>, scalar_prefetch = 0 : i64, scratch_operands = 0 : i64, tpu.core_type = #tpu.core_type<tc>, window_params = [{transform_indices = @transform_0, window_bounds = array<i64: 1, 5, 48>}, {transform_indices = @transform_1, window_bounds = array<i64: 1, 5, 32>}, {pipeline_mode = #tpu.pipeline_mode<synchronous>, transform_indices = @transform_2, window_bounds = array<i64: 48, 32>}, {pipeline_mode = #tpu.pipeline_mode<synchronous>, transform_indices = @transform_3, window_bounds = array<i64: 2, 1, 32>}, {pipeline_mode = #tpu.pipeline_mode<synchronous>, transform_indices = @transform_4, window_bounds = array<i64: 2, 1, 32>}, {pipeline_mode = #tpu.pipeline_mode<synchronous>, transform_indices = @transform_5, window_bounds = array<i64: 2, 32, 96>}, {pipeline_mode = #tpu.pipeline_mode<synchronous>, transform_indices = @transform_6, window_bounds = array<i64: 2, 1, 96>}, {pipeline_mode = #tpu.pipeline_mode<synchronous>, transform_indices = @transform_7, window_bounds = array<i64: 2, 32, 128>}, {pipeline_mode = #tpu.pipeline_mode<synchronous>, transform_indices = @transform_8, window_bounds = array<i64: 2, 1, 128>}, {pipeline_mode = #tpu.pipeline_mode<synchronous>, transform_indices = @transform_9, window_bounds = array<i64: 2, 128, 32>}, {pipeline_mode = #tpu.pipeline_mode<synchronous>, transform_indices = @transform_10, window_bounds = array<i64: 2, 1, 32>}, {pipeline_mode = #tpu.pipeline_mode<synchronous>, transform_indices = @transform_11, window_bounds = array<i64: 32, 16>}, {pipeline_mode = #tpu.pipeline_mode<synchronous>, transform_indices = @transform_12, window_bounds = array<i64: 1, 16>}, {transform_indices = @transform_13, window_bounds = array<i64: 1, 5, 16>}]} {
    %c0 = arith.constant 0 : index
    %c0_0 = arith.constant 0 : index
    %c0_1 = arith.constant 0 : index
    %0 = vector.load %arg1[%c0, %c0_0, %c0_1] : memref<1x5x48xf32, #tpu.memory_space<vmem>>, vector<1x5x48xf32>
    %1 = vector.shape_cast %0 : vector<1x5x48xf32> to vector<5x48xf32>
    %c0_2 = arith.constant 0 : index
    %c0_3 = arith.constant 0 : index
    %2 = vector.load %arg3[%c0_2, %c0_3] : memref<48x32xf32, #tpu.memory_space<vmem>>, vector<48x32xf32>
    %cst = arith.constant dense<0.000000e+00> : vector<5x32xf32>
    %3 = tpu.matmul %1, %2, %cst {dimension_numbers = #tpu.dot_dimension_numbers<[1], [0], [0], [1], [0, 0, 1, 1], [], []>} : vector<5x48xf32>, vector<48x32xf32>, vector<5x32xf32> -> vector<5x32xf32>
    %c0_4 = arith.constant 0 : index
    %c0_5 = arith.constant 0 : index
    %c0_6 = arith.constant 0 : index
    %4 = vector.load %arg2[%c0_4, %c0_5, %c0_6] : memref<1x5x32xf32, #tpu.memory_space<vmem>>, vector<1x5x32xf32>
    %5 = vector.shape_cast %4 : vector<1x5x32xf32> to vector<5x32xf32>
    %6 = arith.addf %3, %5 : vector<5x32xf32>
    %7 = tpu.iota {dimensions = array<i32: 1>} : vector<1x32xi32>
    %c0_i32 = arith.constant 0 : i32
    %8 = vector.broadcast %c0_i32 : i32 to vector<1x32xi32>
    %9 = arith.cmpi sge, %7, %8 : vector<1x32xi32>
    %c8_i32 = arith.constant 8 : i32
    %10 = vector.broadcast %c8_i32 : i32 to vector<1x32xi32>
    %11 = arith.cmpi slt, %7, %10 : vector<1x32xi32>
    %12 = arith.andi %9, %11 : vector<1x32xi1>
    %cst_7 = arith.constant 1.000000e+00 : f32
    %cst_8 = arith.constant 0.000000e+00 : f32
    %13 = vector.broadcast %cst_7 : f32 to vector<1x32xf32>
    %14 = vector.broadcast %cst_8 : f32 to vector<1x32xf32>
    %15 = arith.select %12, %13, %14 : vector<1x32xi1>, vector<1x32xf32>
    %c8_i32_9 = arith.constant 8 : i32
    %16 = vector.broadcast %c8_i32_9 : i32 to vector<1x32xi32>
    %17 = arith.cmpi sge, %7, %16 : vector<1x32xi32>
    %c16_i32 = arith.constant 16 : i32
    %18 = vector.broadcast %c16_i32 : i32 to vector<1x32xi32>
    %19 = arith.cmpi slt, %7, %18 : vector<1x32xi32>
    %20 = arith.andi %17, %19 : vector<1x32xi1>
    %cst_10 = arith.constant 1.000000e+00 : f32
    %cst_11 = arith.constant 0.000000e+00 : f32
    %21 = vector.broadcast %cst_10 : f32 to vector<1x32xf32>
    %22 = vector.broadcast %cst_11 : f32 to vector<1x32xf32>
    %23 = arith.select %20, %21, %22 : vector<1x32xi1>, vector<1x32xf32>
    %c16_i32_12 = arith.constant 16 : i32
    %24 = vector.broadcast %c16_i32_12 : i32 to vector<1x32xi32>
    %25 = arith.cmpi sge, %7, %24 : vector<1x32xi32>
    %c24_i32 = arith.constant 24 : i32
    %26 = vector.broadcast %c24_i32 : i32 to vector<1x32xi32>
    %27 = arith.cmpi slt, %7, %26 : vector<1x32xi32>
    %28 = arith.andi %25, %27 : vector<1x32xi1>
    %cst_13 = arith.constant 1.000000e+00 : f32
    %cst_14 = arith.constant 0.000000e+00 : f32
    %29 = vector.broadcast %cst_13 : f32 to vector<1x32xf32>
    %30 = vector.broadcast %cst_14 : f32 to vector<1x32xf32>
    %31 = arith.select %28, %29, %30 : vector<1x32xi1>, vector<1x32xf32>
    %c24_i32_15 = arith.constant 24 : i32
    %32 = vector.broadcast %c24_i32_15 : i32 to vector<1x32xi32>
    %33 = arith.cmpi sge, %7, %32 : vector<1x32xi32>
    %c32_i32 = arith.constant 32 : i32
    %34 = vector.broadcast %c32_i32 : i32 to vector<1x32xi32>
    %35 = arith.cmpi slt, %7, %34 : vector<1x32xi32>
    %36 = arith.andi %33, %35 : vector<1x32xi1>
    %cst_16 = arith.constant 1.000000e+00 : f32
    %cst_17 = arith.constant 0.000000e+00 : f32
    %37 = vector.broadcast %cst_16 : f32 to vector<1x32xf32>
    %38 = vector.broadcast %cst_17 : f32 to vector<1x32xf32>
    %39 = arith.select %36, %37, %38 : vector<1x32xi1>, vector<1x32xf32>
    %c0_18 = arith.constant 0 : index
    %c0_19 = arith.constant 0 : index
    %c0_20 = arith.constant 0 : index
    %40 = vector.load %arg4[%c0_18, %c0_19, %c0_20] : memref<2x1x32xf32, #tpu.memory_space<vmem>>, vector<1x1x32xf32>
    %41 = vector.shape_cast %40 : vector<1x1x32xf32> to vector<1x32xf32>
    %c0_21 = arith.constant 0 : index
    %c0_22 = arith.constant 0 : index
    %c0_23 = arith.constant 0 : index
    %42 = vector.load %arg5[%c0_21, %c0_22, %c0_23] : memref<2x1x32xf32, #tpu.memory_space<vmem>>, vector<1x1x32xf32>
    %43 = vector.shape_cast %42 : vector<1x1x32xf32> to vector<1x32xf32>
    %c0_24 = arith.constant 0 : index
    %c0_25 = arith.constant 0 : index
    %c0_26 = arith.constant 0 : index
    %44 = vector.load %arg6[%c0_24, %c0_25, %c0_26] : memref<2x32x96xf32, #tpu.memory_space<vmem>>, vector<1x32x96xf32>
    %45 = vector.shape_cast %44 : vector<1x32x96xf32> to vector<32x96xf32>
    %c0_27 = arith.constant 0 : index
    %c0_28 = arith.constant 0 : index
    %c0_29 = arith.constant 0 : index
    %46 = vector.load %arg7[%c0_27, %c0_28, %c0_29] : memref<2x1x96xf32, #tpu.memory_space<vmem>>, vector<1x1x96xf32>
    %47 = vector.shape_cast %46 : vector<1x1x96xf32> to vector<1x96xf32>
    %c0_30 = arith.constant 0 : index
    %c0_31 = arith.constant 0 : index
    %c0_32 = arith.constant 0 : index
    %48 = vector.load %arg8[%c0_30, %c0_31, %c0_32] : memref<2x32x128xf32, #tpu.memory_space<vmem>>, vector<1x32x128xf32>
    %49 = vector.shape_cast %48 : vector<1x32x128xf32> to vector<32x128xf32>
    %c0_33 = arith.constant 0 : index
    %c0_34 = arith.constant 0 : index
    %c0_35 = arith.constant 0 : index
    %50 = vector.load %arg9[%c0_33, %c0_34, %c0_35] : memref<2x1x128xf32, #tpu.memory_space<vmem>>, vector<1x1x128xf32>
    %51 = vector.shape_cast %50 : vector<1x1x128xf32> to vector<1x128xf32>
    %c0_36 = arith.constant 0 : index
    %c0_37 = arith.constant 0 : index
    %c0_38 = arith.constant 0 : index
    %52 = vector.load %arg10[%c0_36, %c0_37, %c0_38] : memref<2x128x32xf32, #tpu.memory_space<vmem>>, vector<1x128x32xf32>
    %53 = vector.shape_cast %52 : vector<1x128x32xf32> to vector<128x32xf32>
    %c0_39 = arith.constant 0 : index
    %c0_40 = arith.constant 0 : index
    %c0_41 = arith.constant 0 : index
    %54 = vector.load %arg11[%c0_39, %c0_40, %c0_41] : memref<2x1x32xf32, #tpu.memory_space<vmem>>, vector<1x1x32xf32>
    %55 = vector.shape_cast %54 : vector<1x1x32xf32> to vector<1x32xf32>
    %cst_42 = arith.constant dense<0.000000e+00> : vector<5xf32>
    %56 = vector.multi_reduction <add>, %6, %cst_42 [1] : vector<5x32xf32> to vector<5xf32>
    %57 = vector.shape_cast %56 : vector<5xf32> to vector<5x1xf32>
    %cst_43 = arith.constant 3.200000e+01 : f32
    %58 = vector.broadcast %cst_43 : f32 to vector<5x1xf32>
    %59 = arith.divf %57, %58 : vector<5x1xf32>
    %60 = vector.broadcast %59 : vector<5x1xf32> to vector<5x32xf32>
    %61 = arith.subf %6, %60 : vector<5x32xf32>
    %62 = arith.mulf %61, %61 : vector<5x32xf32>
    %cst_44 = arith.constant dense<0.000000e+00> : vector<5xf32>
    %63 = vector.multi_reduction <add>, %62, %cst_44 [1] : vector<5x32xf32> to vector<5xf32>
    %64 = vector.shape_cast %63 : vector<5xf32> to vector<5x1xf32>
    %cst_45 = arith.constant 3.200000e+01 : f32
    %65 = vector.broadcast %cst_45 : f32 to vector<5x1xf32>
    %66 = arith.divf %64, %65 : vector<5x1xf32>
    %67 = vector.broadcast %59 : vector<5x1xf32> to vector<5x32xf32>
    %68 = arith.subf %6, %67 : vector<5x32xf32>
    %cst_46 = arith.constant 9.99999974E-6 : f32
    %69 = vector.broadcast %cst_46 : f32 to vector<5x1xf32>
    %70 = arith.addf %66, %69 : vector<5x1xf32>
    %71 = math.rsqrt %70 : vector<5x1xf32>
    %72 = vector.broadcast %71 : vector<5x1xf32> to vector<5x32xf32>
    %73 = arith.mulf %68, %72 : vector<5x32xf32>
    %74 = vector.broadcast %41 : vector<1x32xf32> to vector<5x32xf32>
    %75 = arith.mulf %73, %74 : vector<5x32xf32>
    %76 = vector.broadcast %43 : vector<1x32xf32> to vector<5x32xf32>
    %77 = arith.addf %75, %76 : vector<5x32xf32>
    %cst_47 = arith.constant dense<0.000000e+00> : vector<5x96xf32>
    %78 = tpu.matmul %77, %45, %cst_47 {dimension_numbers = #tpu.dot_dimension_numbers<[1], [0], [0], [1], [0, 0, 1, 1], [], []>} : vector<5x32xf32>, vector<32x96xf32>, vector<5x96xf32> -> vector<5x96xf32>
    %79 = vector.broadcast %47 : vector<1x96xf32> to vector<5x96xf32>
    %80 = arith.addf %78, %79 : vector<5x96xf32>
    %81 = vector.extract_strided_slice %80 {offsets = [0, 0], sizes = [5, 32], strides = [1, 1]} : vector<5x96xf32> to vector<5x32xf32>
    %82 = vector.extract_strided_slice %80 {offsets = [0, 32], sizes = [5, 32], strides = [1, 1]} : vector<5x96xf32> to vector<5x32xf32>
    %83 = vector.extract_strided_slice %80 {offsets = [0, 64], sizes = [5, 32], strides = [1, 1]} : vector<5x96xf32> to vector<5x32xf32>
    %cst_48 = arith.constant 0.000000e+00 : f32
    %84 = vector.broadcast %cst_48 : f32 to vector<5x32xf32>
    %85 = vector.broadcast %15 : vector<1x32xf32> to vector<5x32xf32>
    %86 = arith.mulf %81, %85 : vector<5x32xf32>
    %87 = vector.broadcast %15 : vector<1x32xf32> to vector<5x32xf32>
    %88 = arith.mulf %82, %87 : vector<5x32xf32>
    %89 = vector.broadcast %15 : vector<1x32xf32> to vector<5x32xf32>
    %90 = arith.mulf %83, %89 : vector<5x32xf32>
    %cst_49 = arith.constant dense<0.000000e+00> : vector<5x5xf32>
    %91 = tpu.matmul %86, %88, %cst_49 {dimension_numbers = #tpu.dot_dimension_numbers<[1], [1], [0], [0], [0, 0, 1, 0], [], []>} : vector<5x32xf32>, vector<5x32xf32>, vector<5x5xf32> -> vector<5x5xf32>
    %cst_50 = arith.constant 5.000000e-01 : f32
    %92 = vector.broadcast %cst_50 : f32 to vector<5x5xf32>
    %93 = arith.mulf %91, %92 : vector<5x5xf32>
    %cst_51 = arith.constant dense<0xFF800000> : vector<5xf32>
    %94 = vector.multi_reduction <maximumf>, %93, %cst_51 [0] : vector<5x5xf32> to vector<5xf32>
    %95 = vector.shape_cast %94 : vector<5xf32> to vector<1x5xf32>
    %96 = vector.broadcast %95 : vector<1x5xf32> to vector<5x5xf32>
    %97 = arith.subf %93, %96 : vector<5x5xf32>
    %98 = math.exp %97 : vector<5x5xf32>
    %cst_52 = arith.constant dense<0.000000e+00> : vector<5xf32>
    %99 = vector.multi_reduction <add>, %98, %cst_52 [0] : vector<5x5xf32> to vector<5xf32>
    %100 = vector.shape_cast %99 : vector<5xf32> to vector<1x5xf32>
    %101 = vector.broadcast %100 : vector<1x5xf32> to vector<5x5xf32>
    %102 = arith.divf %98, %101 : vector<5x5xf32>
    %cst_53 = arith.constant dense<0.000000e+00> : vector<5x32xf32>
    %103 = tpu.matmul %102, %90, %cst_53 {dimension_numbers = #tpu.dot_dimension_numbers<[1], [0], [0], [1], [0, 0, 1, 1], [], []>} : vector<5x5xf32>, vector<5x32xf32>, vector<5x32xf32> -> vector<5x32xf32>
    %104 = arith.addf %84, %103 : vector<5x32xf32>
    %105 = vector.broadcast %23 : vector<1x32xf32> to vector<5x32xf32>
    %106 = arith.mulf %81, %105 : vector<5x32xf32>
    %107 = vector.broadcast %23 : vector<1x32xf32> to vector<5x32xf32>
    %108 = arith.mulf %82, %107 : vector<5x32xf32>
    %109 = vector.broadcast %23 : vector<1x32xf32> to vector<5x32xf32>
    %110 = arith.mulf %83, %109 : vector<5x32xf32>
    %cst_54 = arith.constant dense<0.000000e+00> : vector<5x5xf32>
    %111 = tpu.matmul %106, %108, %cst_54 {dimension_numbers = #tpu.dot_dimension_numbers<[1], [1], [0], [0], [0, 0, 1, 0], [], []>} : vector<5x32xf32>, vector<5x32xf32>, vector<5x5xf32> -> vector<5x5xf32>
    %cst_55 = arith.constant 5.000000e-01 : f32
    %112 = vector.broadcast %cst_55 : f32 to vector<5x5xf32>
    %113 = arith.mulf %111, %112 : vector<5x5xf32>
    %cst_56 = arith.constant dense<0xFF800000> : vector<5xf32>
    %114 = vector.multi_reduction <maximumf>, %113, %cst_56 [0] : vector<5x5xf32> to vector<5xf32>
    %115 = vector.shape_cast %114 : vector<5xf32> to vector<1x5xf32>
    %116 = vector.broadcast %115 : vector<1x5xf32> to vector<5x5xf32>
    %117 = arith.subf %113, %116 : vector<5x5xf32>
    %118 = math.exp %117 : vector<5x5xf32>
    %cst_57 = arith.constant dense<0.000000e+00> : vector<5xf32>
    %119 = vector.multi_reduction <add>, %118, %cst_57 [0] : vector<5x5xf32> to vector<5xf32>
    %120 = vector.shape_cast %119 : vector<5xf32> to vector<1x5xf32>
    %121 = vector.broadcast %120 : vector<1x5xf32> to vector<5x5xf32>
    %122 = arith.divf %118, %121 : vector<5x5xf32>
    %cst_58 = arith.constant dense<0.000000e+00> : vector<5x32xf32>
    %123 = tpu.matmul %122, %110, %cst_58 {dimension_numbers = #tpu.dot_dimension_numbers<[1], [0], [0], [1], [0, 0, 1, 1], [], []>} : vector<5x5xf32>, vector<5x32xf32>, vector<5x32xf32> -> vector<5x32xf32>
    %124 = arith.addf %104, %123 : vector<5x32xf32>
    %125 = vector.broadcast %31 : vector<1x32xf32> to vector<5x32xf32>
    %126 = arith.mulf %81, %125 : vector<5x32xf32>
    %127 = vector.broadcast %31 : vector<1x32xf32> to vector<5x32xf32>
    %128 = arith.mulf %82, %127 : vector<5x32xf32>
    %129 = vector.broadcast %31 : vector<1x32xf32> to vector<5x32xf32>
    %130 = arith.mulf %83, %129 : vector<5x32xf32>
    %cst_59 = arith.constant dense<0.000000e+00> : vector<5x5xf32>
    %131 = tpu.matmul %126, %128, %cst_59 {dimension_numbers = #tpu.dot_dimension_numbers<[1], [1], [0], [0], [0, 0, 1, 0], [], []>} : vector<5x32xf32>, vector<5x32xf32>, vector<5x5xf32> -> vector<5x5xf32>
    %cst_60 = arith.constant 5.000000e-01 : f32
    %132 = vector.broadcast %cst_60 : f32 to vector<5x5xf32>
    %133 = arith.mulf %131, %132 : vector<5x5xf32>
    %cst_61 = arith.constant dense<0xFF800000> : vector<5xf32>
    %134 = vector.multi_reduction <maximumf>, %133, %cst_61 [0] : vector<5x5xf32> to vector<5xf32>
    %135 = vector.shape_cast %134 : vector<5xf32> to vector<1x5xf32>
    %136 = vector.broadcast %135 : vector<1x5xf32> to vector<5x5xf32>
    %137 = arith.subf %133, %136 : vector<5x5xf32>
    %138 = math.exp %137 : vector<5x5xf32>
    %cst_62 = arith.constant dense<0.000000e+00> : vector<5xf32>
    %139 = vector.multi_reduction <add>, %138, %cst_62 [0] : vector<5x5xf32> to vector<5xf32>
    %140 = vector.shape_cast %139 : vector<5xf32> to vector<1x5xf32>
    %141 = vector.broadcast %140 : vector<1x5xf32> to vector<5x5xf32>
    %142 = arith.divf %138, %141 : vector<5x5xf32>
    %cst_63 = arith.constant dense<0.000000e+00> : vector<5x32xf32>
    %143 = tpu.matmul %142, %130, %cst_63 {dimension_numbers = #tpu.dot_dimension_numbers<[1], [0], [0], [1], [0, 0, 1, 1], [], []>} : vector<5x5xf32>, vector<5x32xf32>, vector<5x32xf32> -> vector<5x32xf32>
    %144 = arith.addf %124, %143 : vector<5x32xf32>
    %145 = vector.broadcast %39 : vector<1x32xf32> to vector<5x32xf32>
    %146 = arith.mulf %81, %145 : vector<5x32xf32>
    %147 = vector.broadcast %39 : vector<1x32xf32> to vector<5x32xf32>
    %148 = arith.mulf %82, %147 : vector<5x32xf32>
    %149 = vector.broadcast %39 : vector<1x32xf32> to vector<5x32xf32>
    %150 = arith.mulf %83, %149 : vector<5x32xf32>
    %cst_64 = arith.constant dense<0.000000e+00> : vector<5x5xf32>
    %151 = tpu.matmul %146, %148, %cst_64 {dimension_numbers = #tpu.dot_dimension_numbers<[1], [1], [0], [0], [0, 0, 1, 0], [], []>} : vector<5x32xf32>, vector<5x32xf32>, vector<5x5xf32> -> vector<5x5xf32>
    %cst_65 = arith.constant 5.000000e-01 : f32
    %152 = vector.broadcast %cst_65 : f32 to vector<5x5xf32>
    %153 = arith.mulf %151, %152 : vector<5x5xf32>
    %cst_66 = arith.constant dense<0xFF800000> : vector<5xf32>
    %154 = vector.multi_reduction <maximumf>, %153, %cst_66 [0] : vector<5x5xf32> to vector<5xf32>
    %155 = vector.shape_cast %154 : vector<5xf32> to vector<1x5xf32>
    %156 = vector.broadcast %155 : vector<1x5xf32> to vector<5x5xf32>
    %157 = arith.subf %153, %156 : vector<5x5xf32>
    %158 = math.exp %157 : vector<5x5xf32>
    %cst_67 = arith.constant dense<0.000000e+00> : vector<5xf32>
    %159 = vector.multi_reduction <add>, %158, %cst_67 [0] : vector<5x5xf32> to vector<5xf32>
    %160 = vector.shape_cast %159 : vector<5xf32> to vector<1x5xf32>
    %161 = vector.broadcast %160 : vector<1x5xf32> to vector<5x5xf32>
    %162 = arith.divf %158, %161 : vector<5x5xf32>
    %cst_68 = arith.constant dense<0.000000e+00> : vector<5x32xf32>
    %163 = tpu.matmul %162, %150, %cst_68 {dimension_numbers = #tpu.dot_dimension_numbers<[1], [0], [0], [1], [0, 0, 1, 1], [], []>} : vector<5x5xf32>, vector<5x32xf32>, vector<5x32xf32> -> vector<5x32xf32>
    %164 = arith.addf %144, %163 : vector<5x32xf32>
    %165 = arith.addf %6, %164 : vector<5x32xf32>
    %cst_69 = arith.constant dense<0.000000e+00> : vector<5xf32>
    %166 = vector.multi_reduction <add>, %165, %cst_69 [1] : vector<5x32xf32> to vector<5xf32>
    %167 = vector.shape_cast %166 : vector<5xf32> to vector<5x1xf32>
    %cst_70 = arith.constant 3.200000e+01 : f32
    %168 = vector.broadcast %cst_70 : f32 to vector<5x1xf32>
    %169 = arith.divf %167, %168 : vector<5x1xf32>
    %170 = vector.broadcast %169 : vector<5x1xf32> to vector<5x32xf32>
    %171 = arith.subf %165, %170 : vector<5x32xf32>
    %172 = arith.mulf %171, %171 : vector<5x32xf32>
    %cst_71 = arith.constant dense<0.000000e+00> : vector<5xf32>
    %173 = vector.multi_reduction <add>, %172, %cst_71 [1] : vector<5x32xf32> to vector<5xf32>
    %174 = vector.shape_cast %173 : vector<5xf32> to vector<5x1xf32>
    %cst_72 = arith.constant 3.200000e+01 : f32
    %175 = vector.broadcast %cst_72 : f32 to vector<5x1xf32>
    %176 = arith.divf %174, %175 : vector<5x1xf32>
    %177 = vector.broadcast %169 : vector<5x1xf32> to vector<5x32xf32>
    %178 = arith.subf %165, %177 : vector<5x32xf32>
    %cst_73 = arith.constant 9.99999974E-6 : f32
    %179 = vector.broadcast %cst_73 : f32 to vector<5x1xf32>
    %180 = arith.addf %176, %179 : vector<5x1xf32>
    %181 = math.rsqrt %180 : vector<5x1xf32>
    %182 = vector.broadcast %181 : vector<5x1xf32> to vector<5x32xf32>
    %183 = arith.mulf %178, %182 : vector<5x32xf32>
    %184 = vector.broadcast %41 : vector<1x32xf32> to vector<5x32xf32>
    %185 = arith.mulf %183, %184 : vector<5x32xf32>
    %186 = vector.broadcast %43 : vector<1x32xf32> to vector<5x32xf32>
    %187 = arith.addf %185, %186 : vector<5x32xf32>
    %cst_74 = arith.constant dense<0.000000e+00> : vector<5x128xf32>
    %188 = tpu.matmul %187, %49, %cst_74 {dimension_numbers = #tpu.dot_dimension_numbers<[1], [0], [0], [1], [0, 0, 1, 1], [], []>} : vector<5x32xf32>, vector<32x128xf32>, vector<5x128xf32> -> vector<5x128xf32>
    %189 = vector.broadcast %51 : vector<1x128xf32> to vector<5x128xf32>
    %190 = arith.addf %188, %189 : vector<5x128xf32>
    %cst_75 = arith.constant dense<0.000000e+00> : vector<5x32xf32>
    %191 = tpu.matmul %190, %53, %cst_75 {dimension_numbers = #tpu.dot_dimension_numbers<[1], [0], [0], [1], [0, 0, 1, 1], [], []>} : vector<5x128xf32>, vector<128x32xf32>, vector<5x32xf32> -> vector<5x32xf32>
    %192 = vector.broadcast %55 : vector<1x32xf32> to vector<5x32xf32>
    %193 = arith.addf %191, %192 : vector<5x32xf32>
    %194 = arith.addf %165, %193 : vector<5x32xf32>
    %c1 = arith.constant 1 : index
    %c0_76 = arith.constant 0 : index
    %c0_77 = arith.constant 0 : index
    %195 = vector.load %arg4[%c1, %c0_76, %c0_77] : memref<2x1x32xf32, #tpu.memory_space<vmem>>, vector<1x1x32xf32>
    %196 = vector.shape_cast %195 : vector<1x1x32xf32> to vector<1x32xf32>
    %c1_78 = arith.constant 1 : index
    %c0_79 = arith.constant 0 : index
    %c0_80 = arith.constant 0 : index
    %197 = vector.load %arg5[%c1_78, %c0_79, %c0_80] : memref<2x1x32xf32, #tpu.memory_space<vmem>>, vector<1x1x32xf32>
    %198 = vector.shape_cast %197 : vector<1x1x32xf32> to vector<1x32xf32>
    %c1_81 = arith.constant 1 : index
    %c0_82 = arith.constant 0 : index
    %c0_83 = arith.constant 0 : index
    %199 = vector.load %arg6[%c1_81, %c0_82, %c0_83] : memref<2x32x96xf32, #tpu.memory_space<vmem>>, vector<1x32x96xf32>
    %200 = vector.shape_cast %199 : vector<1x32x96xf32> to vector<32x96xf32>
    %c1_84 = arith.constant 1 : index
    %c0_85 = arith.constant 0 : index
    %c0_86 = arith.constant 0 : index
    %201 = vector.load %arg7[%c1_84, %c0_85, %c0_86] : memref<2x1x96xf32, #tpu.memory_space<vmem>>, vector<1x1x96xf32>
    %202 = vector.shape_cast %201 : vector<1x1x96xf32> to vector<1x96xf32>
    %c1_87 = arith.constant 1 : index
    %c0_88 = arith.constant 0 : index
    %c0_89 = arith.constant 0 : index
    %203 = vector.load %arg8[%c1_87, %c0_88, %c0_89] : memref<2x32x128xf32, #tpu.memory_space<vmem>>, vector<1x32x128xf32>
    %204 = vector.shape_cast %203 : vector<1x32x128xf32> to vector<32x128xf32>
    %c1_90 = arith.constant 1 : index
    %c0_91 = arith.constant 0 : index
    %c0_92 = arith.constant 0 : index
    %205 = vector.load %arg9[%c1_90, %c0_91, %c0_92] : memref<2x1x128xf32, #tpu.memory_space<vmem>>, vector<1x1x128xf32>
    %206 = vector.shape_cast %205 : vector<1x1x128xf32> to vector<1x128xf32>
    %c1_93 = arith.constant 1 : index
    %c0_94 = arith.constant 0 : index
    %c0_95 = arith.constant 0 : index
    %207 = vector.load %arg10[%c1_93, %c0_94, %c0_95] : memref<2x128x32xf32, #tpu.memory_space<vmem>>, vector<1x128x32xf32>
    %208 = vector.shape_cast %207 : vector<1x128x32xf32> to vector<128x32xf32>
    %c1_96 = arith.constant 1 : index
    %c0_97 = arith.constant 0 : index
    %c0_98 = arith.constant 0 : index
    %209 = vector.load %arg11[%c1_96, %c0_97, %c0_98] : memref<2x1x32xf32, #tpu.memory_space<vmem>>, vector<1x1x32xf32>
    %210 = vector.shape_cast %209 : vector<1x1x32xf32> to vector<1x32xf32>
    %cst_99 = arith.constant dense<0.000000e+00> : vector<5xf32>
    %211 = vector.multi_reduction <add>, %194, %cst_99 [1] : vector<5x32xf32> to vector<5xf32>
    %212 = vector.shape_cast %211 : vector<5xf32> to vector<5x1xf32>
    %cst_100 = arith.constant 3.200000e+01 : f32
    %213 = vector.broadcast %cst_100 : f32 to vector<5x1xf32>
    %214 = arith.divf %212, %213 : vector<5x1xf32>
    %215 = vector.broadcast %214 : vector<5x1xf32> to vector<5x32xf32>
    %216 = arith.subf %194, %215 : vector<5x32xf32>
    %217 = arith.mulf %216, %216 : vector<5x32xf32>
    %cst_101 = arith.constant dense<0.000000e+00> : vector<5xf32>
    %218 = vector.multi_reduction <add>, %217, %cst_101 [1] : vector<5x32xf32> to vector<5xf32>
    %219 = vector.shape_cast %218 : vector<5xf32> to vector<5x1xf32>
    %cst_102 = arith.constant 3.200000e+01 : f32
    %220 = vector.broadcast %cst_102 : f32 to vector<5x1xf32>
    %221 = arith.divf %219, %220 : vector<5x1xf32>
    %222 = vector.broadcast %214 : vector<5x1xf32> to vector<5x32xf32>
    %223 = arith.subf %194, %222 : vector<5x32xf32>
    %cst_103 = arith.constant 9.99999974E-6 : f32
    %224 = vector.broadcast %cst_103 : f32 to vector<5x1xf32>
    %225 = arith.addf %221, %224 : vector<5x1xf32>
    %226 = math.rsqrt %225 : vector<5x1xf32>
    %227 = vector.broadcast %226 : vector<5x1xf32> to vector<5x32xf32>
    %228 = arith.mulf %223, %227 : vector<5x32xf32>
    %229 = vector.broadcast %196 : vector<1x32xf32> to vector<5x32xf32>
    %230 = arith.mulf %228, %229 : vector<5x32xf32>
    %231 = vector.broadcast %198 : vector<1x32xf32> to vector<5x32xf32>
    %232 = arith.addf %230, %231 : vector<5x32xf32>
    %cst_104 = arith.constant dense<0.000000e+00> : vector<5x96xf32>
    %233 = tpu.matmul %232, %200, %cst_104 {dimension_numbers = #tpu.dot_dimension_numbers<[1], [0], [0], [1], [0, 0, 1, 1], [], []>} : vector<5x32xf32>, vector<32x96xf32>, vector<5x96xf32> -> vector<5x96xf32>
    %234 = vector.broadcast %202 : vector<1x96xf32> to vector<5x96xf32>
    %235 = arith.addf %233, %234 : vector<5x96xf32>
    %236 = vector.extract_strided_slice %235 {offsets = [0, 0], sizes = [5, 32], strides = [1, 1]} : vector<5x96xf32> to vector<5x32xf32>
    %237 = vector.extract_strided_slice %235 {offsets = [0, 32], sizes = [5, 32], strides = [1, 1]} : vector<5x96xf32> to vector<5x32xf32>
    %238 = vector.extract_strided_slice %235 {offsets = [0, 64], sizes = [5, 32], strides = [1, 1]} : vector<5x96xf32> to vector<5x32xf32>
    %cst_105 = arith.constant 0.000000e+00 : f32
    %239 = vector.broadcast %cst_105 : f32 to vector<5x32xf32>
    %240 = vector.broadcast %15 : vector<1x32xf32> to vector<5x32xf32>
    %241 = arith.mulf %236, %240 : vector<5x32xf32>
    %242 = vector.broadcast %15 : vector<1x32xf32> to vector<5x32xf32>
    %243 = arith.mulf %237, %242 : vector<5x32xf32>
    %244 = vector.broadcast %15 : vector<1x32xf32> to vector<5x32xf32>
    %245 = arith.mulf %238, %244 : vector<5x32xf32>
    %cst_106 = arith.constant dense<0.000000e+00> : vector<5x5xf32>
    %246 = tpu.matmul %241, %243, %cst_106 {dimension_numbers = #tpu.dot_dimension_numbers<[1], [1], [0], [0], [0, 0, 1, 0], [], []>} : vector<5x32xf32>, vector<5x32xf32>, vector<5x5xf32> -> vector<5x5xf32>
    %cst_107 = arith.constant 5.000000e-01 : f32
    %247 = vector.broadcast %cst_107 : f32 to vector<5x5xf32>
    %248 = arith.mulf %246, %247 : vector<5x5xf32>
    %cst_108 = arith.constant dense<0xFF800000> : vector<5xf32>
    %249 = vector.multi_reduction <maximumf>, %248, %cst_108 [0] : vector<5x5xf32> to vector<5xf32>
    %250 = vector.shape_cast %249 : vector<5xf32> to vector<1x5xf32>
    %251 = vector.broadcast %250 : vector<1x5xf32> to vector<5x5xf32>
    %252 = arith.subf %248, %251 : vector<5x5xf32>
    %253 = math.exp %252 : vector<5x5xf32>
    %cst_109 = arith.constant dense<0.000000e+00> : vector<5xf32>
    %254 = vector.multi_reduction <add>, %253, %cst_109 [0] : vector<5x5xf32> to vector<5xf32>
    %255 = vector.shape_cast %254 : vector<5xf32> to vector<1x5xf32>
    %256 = vector.broadcast %255 : vector<1x5xf32> to vector<5x5xf32>
    %257 = arith.divf %253, %256 : vector<5x5xf32>
    %cst_110 = arith.constant dense<0.000000e+00> : vector<5x32xf32>
    %258 = tpu.matmul %257, %245, %cst_110 {dimension_numbers = #tpu.dot_dimension_numbers<[1], [0], [0], [1], [0, 0, 1, 1], [], []>} : vector<5x5xf32>, vector<5x32xf32>, vector<5x32xf32> -> vector<5x32xf32>
    %259 = arith.addf %239, %258 : vector<5x32xf32>
    %260 = vector.broadcast %23 : vector<1x32xf32> to vector<5x32xf32>
    %261 = arith.mulf %236, %260 : vector<5x32xf32>
    %262 = vector.broadcast %23 : vector<1x32xf32> to vector<5x32xf32>
    %263 = arith.mulf %237, %262 : vector<5x32xf32>
    %264 = vector.broadcast %23 : vector<1x32xf32> to vector<5x32xf32>
    %265 = arith.mulf %238, %264 : vector<5x32xf32>
    %cst_111 = arith.constant dense<0.000000e+00> : vector<5x5xf32>
    %266 = tpu.matmul %261, %263, %cst_111 {dimension_numbers = #tpu.dot_dimension_numbers<[1], [1], [0], [0], [0, 0, 1, 0], [], []>} : vector<5x32xf32>, vector<5x32xf32>, vector<5x5xf32> -> vector<5x5xf32>
    %cst_112 = arith.constant 5.000000e-01 : f32
    %267 = vector.broadcast %cst_112 : f32 to vector<5x5xf32>
    %268 = arith.mulf %266, %267 : vector<5x5xf32>
    %cst_113 = arith.constant dense<0xFF800000> : vector<5xf32>
    %269 = vector.multi_reduction <maximumf>, %268, %cst_113 [0] : vector<5x5xf32> to vector<5xf32>
    %270 = vector.shape_cast %269 : vector<5xf32> to vector<1x5xf32>
    %271 = vector.broadcast %270 : vector<1x5xf32> to vector<5x5xf32>
    %272 = arith.subf %268, %271 : vector<5x5xf32>
    %273 = math.exp %272 : vector<5x5xf32>
    %cst_114 = arith.constant dense<0.000000e+00> : vector<5xf32>
    %274 = vector.multi_reduction <add>, %273, %cst_114 [0] : vector<5x5xf32> to vector<5xf32>
    %275 = vector.shape_cast %274 : vector<5xf32> to vector<1x5xf32>
    %276 = vector.broadcast %275 : vector<1x5xf32> to vector<5x5xf32>
    %277 = arith.divf %273, %276 : vector<5x5xf32>
    %cst_115 = arith.constant dense<0.000000e+00> : vector<5x32xf32>
    %278 = tpu.matmul %277, %265, %cst_115 {dimension_numbers = #tpu.dot_dimension_numbers<[1], [0], [0], [1], [0, 0, 1, 1], [], []>} : vector<5x5xf32>, vector<5x32xf32>, vector<5x32xf32> -> vector<5x32xf32>
    %279 = arith.addf %259, %278 : vector<5x32xf32>
    %280 = vector.broadcast %31 : vector<1x32xf32> to vector<5x32xf32>
    %281 = arith.mulf %236, %280 : vector<5x32xf32>
    %282 = vector.broadcast %31 : vector<1x32xf32> to vector<5x32xf32>
    %283 = arith.mulf %237, %282 : vector<5x32xf32>
    %284 = vector.broadcast %31 : vector<1x32xf32> to vector<5x32xf32>
    %285 = arith.mulf %238, %284 : vector<5x32xf32>
    %cst_116 = arith.constant dense<0.000000e+00> : vector<5x5xf32>
    %286 = tpu.matmul %281, %283, %cst_116 {dimension_numbers = #tpu.dot_dimension_numbers<[1], [1], [0], [0], [0, 0, 1, 0], [], []>} : vector<5x32xf32>, vector<5x32xf32>, vector<5x5xf32> -> vector<5x5xf32>
    %cst_117 = arith.constant 5.000000e-01 : f32
    %287 = vector.broadcast %cst_117 : f32 to vector<5x5xf32>
    %288 = arith.mulf %286, %287 : vector<5x5xf32>
    %cst_118 = arith.constant dense<0xFF800000> : vector<5xf32>
    %289 = vector.multi_reduction <maximumf>, %288, %cst_118 [0] : vector<5x5xf32> to vector<5xf32>
    %290 = vector.shape_cast %289 : vector<5xf32> to vector<1x5xf32>
    %291 = vector.broadcast %290 : vector<1x5xf32> to vector<5x5xf32>
    %292 = arith.subf %288, %291 : vector<5x5xf32>
    %293 = math.exp %292 : vector<5x5xf32>
    %cst_119 = arith.constant dense<0.000000e+00> : vector<5xf32>
    %294 = vector.multi_reduction <add>, %293, %cst_119 [0] : vector<5x5xf32> to vector<5xf32>
    %295 = vector.shape_cast %294 : vector<5xf32> to vector<1x5xf32>
    %296 = vector.broadcast %295 : vector<1x5xf32> to vector<5x5xf32>
    %297 = arith.divf %293, %296 : vector<5x5xf32>
    %cst_120 = arith.constant dense<0.000000e+00> : vector<5x32xf32>
    %298 = tpu.matmul %297, %285, %cst_120 {dimension_numbers = #tpu.dot_dimension_numbers<[1], [0], [0], [1], [0, 0, 1, 1], [], []>} : vector<5x5xf32>, vector<5x32xf32>, vector<5x32xf32> -> vector<5x32xf32>
    %299 = arith.addf %279, %298 : vector<5x32xf32>
    %300 = vector.broadcast %39 : vector<1x32xf32> to vector<5x32xf32>
    %301 = arith.mulf %236, %300 : vector<5x32xf32>
    %302 = vector.broadcast %39 : vector<1x32xf32> to vector<5x32xf32>
    %303 = arith.mulf %237, %302 : vector<5x32xf32>
    %304 = vector.broadcast %39 : vector<1x32xf32> to vector<5x32xf32>
    %305 = arith.mulf %238, %304 : vector<5x32xf32>
    %cst_121 = arith.constant dense<0.000000e+00> : vector<5x5xf32>
    %306 = tpu.matmul %301, %303, %cst_121 {dimension_numbers = #tpu.dot_dimension_numbers<[1], [1], [0], [0], [0, 0, 1, 0], [], []>} : vector<5x32xf32>, vector<5x32xf32>, vector<5x5xf32> -> vector<5x5xf32>
    %cst_122 = arith.constant 5.000000e-01 : f32
    %307 = vector.broadcast %cst_122 : f32 to vector<5x5xf32>
    %308 = arith.mulf %306, %307 : vector<5x5xf32>
    %cst_123 = arith.constant dense<0xFF800000> : vector<5xf32>
    %309 = vector.multi_reduction <maximumf>, %308, %cst_123 [0] : vector<5x5xf32> to vector<5xf32>
    %310 = vector.shape_cast %309 : vector<5xf32> to vector<1x5xf32>
    %311 = vector.broadcast %310 : vector<1x5xf32> to vector<5x5xf32>
    %312 = arith.subf %308, %311 : vector<5x5xf32>
    %313 = math.exp %312 : vector<5x5xf32>
    %cst_124 = arith.constant dense<0.000000e+00> : vector<5xf32>
    %314 = vector.multi_reduction <add>, %313, %cst_124 [0] : vector<5x5xf32> to vector<5xf32>
    %315 = vector.shape_cast %314 : vector<5xf32> to vector<1x5xf32>
    %316 = vector.broadcast %315 : vector<1x5xf32> to vector<5x5xf32>
    %317 = arith.divf %313, %316 : vector<5x5xf32>
    %cst_125 = arith.constant dense<0.000000e+00> : vector<5x32xf32>
    %318 = tpu.matmul %317, %305, %cst_125 {dimension_numbers = #tpu.dot_dimension_numbers<[1], [0], [0], [1], [0, 0, 1, 1], [], []>} : vector<5x5xf32>, vector<5x32xf32>, vector<5x32xf32> -> vector<5x32xf32>
    %319 = arith.addf %299, %318 : vector<5x32xf32>
    %320 = arith.addf %194, %319 : vector<5x32xf32>
    %cst_126 = arith.constant dense<0.000000e+00> : vector<5xf32>
    %321 = vector.multi_reduction <add>, %320, %cst_126 [1] : vector<5x32xf32> to vector<5xf32>
    %322 = vector.shape_cast %321 : vector<5xf32> to vector<5x1xf32>
    %cst_127 = arith.constant 3.200000e+01 : f32
    %323 = vector.broadcast %cst_127 : f32 to vector<5x1xf32>
    %324 = arith.divf %322, %323 : vector<5x1xf32>
    %325 = vector.broadcast %324 : vector<5x1xf32> to vector<5x32xf32>
    %326 = arith.subf %320, %325 : vector<5x32xf32>
    %327 = arith.mulf %326, %326 : vector<5x32xf32>
    %cst_128 = arith.constant dense<0.000000e+00> : vector<5xf32>
    %328 = vector.multi_reduction <add>, %327, %cst_128 [1] : vector<5x32xf32> to vector<5xf32>
    %329 = vector.shape_cast %328 : vector<5xf32> to vector<5x1xf32>
    %cst_129 = arith.constant 3.200000e+01 : f32
    %330 = vector.broadcast %cst_129 : f32 to vector<5x1xf32>
    %331 = arith.divf %329, %330 : vector<5x1xf32>
    %332 = vector.broadcast %324 : vector<5x1xf32> to vector<5x32xf32>
    %333 = arith.subf %320, %332 : vector<5x32xf32>
    %cst_130 = arith.constant 9.99999974E-6 : f32
    %334 = vector.broadcast %cst_130 : f32 to vector<5x1xf32>
    %335 = arith.addf %331, %334 : vector<5x1xf32>
    %336 = math.rsqrt %335 : vector<5x1xf32>
    %337 = vector.broadcast %336 : vector<5x1xf32> to vector<5x32xf32>
    %338 = arith.mulf %333, %337 : vector<5x32xf32>
    %339 = vector.broadcast %196 : vector<1x32xf32> to vector<5x32xf32>
    %340 = arith.mulf %338, %339 : vector<5x32xf32>
    %341 = vector.broadcast %198 : vector<1x32xf32> to vector<5x32xf32>
    %342 = arith.addf %340, %341 : vector<5x32xf32>
    %cst_131 = arith.constant dense<0.000000e+00> : vector<5x128xf32>
    %343 = tpu.matmul %342, %204, %cst_131 {dimension_numbers = #tpu.dot_dimension_numbers<[1], [0], [0], [1], [0, 0, 1, 1], [], []>} : vector<5x32xf32>, vector<32x128xf32>, vector<5x128xf32> -> vector<5x128xf32>
    %344 = vector.broadcast %206 : vector<1x128xf32> to vector<5x128xf32>
    %345 = arith.addf %343, %344 : vector<5x128xf32>
    %cst_132 = arith.constant dense<0.000000e+00> : vector<5x32xf32>
    %346 = tpu.matmul %345, %208, %cst_132 {dimension_numbers = #tpu.dot_dimension_numbers<[1], [0], [0], [1], [0, 0, 1, 1], [], []>} : vector<5x128xf32>, vector<128x32xf32>, vector<5x32xf32> -> vector<5x32xf32>
    %347 = vector.broadcast %210 : vector<1x32xf32> to vector<5x32xf32>
    %348 = arith.addf %346, %347 : vector<5x32xf32>
    %349 = arith.addf %320, %348 : vector<5x32xf32>
    %c0_133 = arith.constant 0 : index
    %c0_134 = arith.constant 0 : index
    %350 = vector.load %arg12[%c0_133, %c0_134] : memref<32x16xf32, #tpu.memory_space<vmem>>, vector<32x16xf32>
    %cst_135 = arith.constant dense<0.000000e+00> : vector<5x16xf32>
    %351 = tpu.matmul %349, %350, %cst_135 {dimension_numbers = #tpu.dot_dimension_numbers<[1], [0], [0], [1], [0, 0, 1, 1], [], []>} : vector<5x32xf32>, vector<32x16xf32>, vector<5x16xf32> -> vector<5x16xf32>
    %c0_136 = arith.constant 0 : index
    %c0_137 = arith.constant 0 : index
    %352 = vector.load %arg13[%c0_136, %c0_137] : memref<1x16xf32, #tpu.memory_space<vmem>>, vector<1x16xf32>
    %353 = vector.broadcast %352 : vector<1x16xf32> to vector<5x16xf32>
    %354 = arith.addf %351, %353 : vector<5x16xf32>
    %c0_138 = arith.constant 0 : index
    %c0_139 = arith.constant 0 : index
    %c0_140 = arith.constant 0 : index
    %355 = vector.load %arg14[%c0_138, %c0_139, %c0_140] : memref<1x5x16xf32, #tpu.memory_space<vmem>>, vector<1x5x16xf32>
    %356 = vector.shape_cast %355 : vector<1x5x16xf32> to vector<5x16xf32>
    %357 = vector.shape_cast %354 : vector<5x16xf32> to vector<1x5x16xf32>
    tpu.vector_store %arg14[%c0_138, %c0_139, %c0_140], %357 {strides = array<i32>} : memref<1x5x16xf32, #tpu.memory_space<vmem>>, vector<1x5x16xf32>,
    return
  }
  func.func @transform_0(%arg0: i32) -> (i32, i32, i32) {
    %c0_i32 = arith.constant 0 : i32
    %c0_i32_0 = arith.constant 0 : i32
    %c0_i32_1 = arith.constant 0 : i32
    return %arg0, %c0_i32, %c0_i32_0 : i32, i32, i32
  }
  func.func @transform_1(%arg0: i32) -> (i32, i32, i32) {
    %c0_i32 = arith.constant 0 : i32
    %c0_i32_0 = arith.constant 0 : i32
    %c0_i32_1 = arith.constant 0 : i32
    return %arg0, %c0_i32, %c0_i32_0 : i32, i32, i32
  }
  func.func @transform_2(%arg0: i32) -> (i32, i32) {
    %c0_i32 = arith.constant 0 : i32
    %c0_i32_0 = arith.constant 0 : i32
    %c0_i32_1 = arith.constant 0 : i32
    return %c0_i32, %c0_i32_0 : i32, i32
  }
  func.func @transform_3(%arg0: i32) -> (i32, i32, i32) {
    %c0_i32 = arith.constant 0 : i32
    %c0_i32_0 = arith.constant 0 : i32
    %c0_i32_1 = arith.constant 0 : i32
    %c0_i32_2 = arith.constant 0 : i32
    return %c0_i32, %c0_i32_0, %c0_i32_1 : i32, i32, i32
  }
  func.func @transform_4(%arg0: i32) -> (i32, i32, i32) {
    %c0_i32 = arith.constant 0 : i32
    %c0_i32_0 = arith.constant 0 : i32
    %c0_i32_1 = arith.constant 0 : i32
    %c0_i32_2 = arith.constant 0 : i32
    return %c0_i32, %c0_i32_0, %c0_i32_1 : i32, i32, i32
  }
  func.func @transform_5(%arg0: i32) -> (i32, i32, i32) {
    %c0_i32 = arith.constant 0 : i32
    %c0_i32_0 = arith.constant 0 : i32
    %c0_i32_1 = arith.constant 0 : i32
    %c0_i32_2 = arith.constant 0 : i32
    return %c0_i32, %c0_i32_0, %c0_i32_1 : i32, i32, i32
  }
  func.func @transform_6(%arg0: i32) -> (i32, i32, i32) {
    %c0_i32 = arith.constant 0 : i32
    %c0_i32_0 = arith.constant 0 : i32
    %c0_i32_1 = arith.constant 0 : i32
    %c0_i32_2 = arith.constant 0 : i32
    return %c0_i32, %c0_i32_0, %c0_i32_1 : i32, i32, i32
  }
  func.func @transform_7(%arg0: i32) -> (i32, i32, i32) {
    %c0_i32 = arith.constant 0 : i32
    %c0_i32_0 = arith.constant 0 : i32
    %c0_i32_1 = arith.constant 0 : i32
    %c0_i32_2 = arith.constant 0 : i32
    return %c0_i32, %c0_i32_0, %c0_i32_1 : i32, i32, i32
  }
  func.func @transform_8(%arg0: i32) -> (i32, i32, i32) {
    %c0_i32 = arith.constant 0 : i32
    %c0_i32_0 = arith.constant 0 : i32
    %c0_i32_1 = arith.constant 0 : i32
    %c0_i32_2 = arith.constant 0 : i32
    return %c0_i32, %c0_i32_0, %c0_i32_1 : i32, i32, i32
  }
  func.func @transform_9(%arg0: i32) -> (i32, i32, i32) {
    %c0_i32 = arith.constant 0 : i32
    %c0_i32_0 = arith.constant 0 : i32
    %c0_i32_1 = arith.constant 0 : i32
    %c0_i32_2 = arith.constant 0 : i32
    return %c0_i32, %c0_i32_0, %c0_i32_1 : i32, i32, i32
  }
  func.func @transform_10(%arg0: i32) -> (i32, i32, i32) {
    %c0_i32 = arith.constant 0 : i32
    %c0_i32_0 = arith.constant 0 : i32
    %c0_i32_1 = arith.constant 0 : i32
    %c0_i32_2 = arith.constant 0 : i32
    return %c0_i32, %c0_i32_0, %c0_i32_1 : i32, i32, i32
  }
  func.func @transform_11(%arg0: i32) -> (i32, i32) {
    %c0_i32 = arith.constant 0 : i32
    %c0_i32_0 = arith.constant 0 : i32
    %c0_i32_1 = arith.constant 0 : i32
    return %c0_i32, %c0_i32_0 : i32, i32
  }
  func.func @transform_12(%arg0: i32) -> (i32, i32) {
    %c0_i32 = arith.constant 0 : i32
    %c0_i32_0 = arith.constant 0 : i32
    %c0_i32_1 = arith.constant 0 : i32
    return %c0_i32, %c0_i32_0 : i32, i32
  }
  func.func @transform_13(%arg0: i32) -> (i32, i32, i32) {
    %c0_i32 = arith.constant 0 : i32
    %c0_i32_0 = arith.constant 0 : i32
    %c0_i32_1 = arith.constant 0 : i32
    return %arg0, %c0_i32, %c0_i32_0 : i32, i32, i32
  }
}

module attributes {stable_mosaic.version = 11 : i64} {
  func.func @_decoder_stack_kernel(%arg0: i32, %arg1: memref<1x17x16xf32, #tpu.memory_space<vmem>>, %arg2: memref<2x1x16xf32, #tpu.memory_space<vmem>>, %arg3: memref<2x1x16xf32, #tpu.memory_space<vmem>>, %arg4: memref<2x16x48xf32, #tpu.memory_space<vmem>>, %arg5: memref<2x1x48xf32, #tpu.memory_space<vmem>>, %arg6: memref<2x16x64xf32, #tpu.memory_space<vmem>>, %arg7: memref<2x1x64xf32, #tpu.memory_space<vmem>>, %arg8: memref<2x64x16xf32, #tpu.memory_space<vmem>>, %arg9: memref<2x1x16xf32, #tpu.memory_space<vmem>>, %arg10: memref<16x48xf32, #tpu.memory_space<vmem>>, %arg11: memref<1x48xf32, #tpu.memory_space<vmem>>, %arg12: memref<1x16x48xf32, #tpu.memory_space<vmem>>, %arg13: memref<48x48xf32, #tpu.memory_space<vmem>>, %arg14: memref<1x48xf32, #tpu.memory_space<vmem>>, %arg15: memref<1x16x1xf32, #tpu.memory_space<vmem>>, %arg16: memref<1x16x48xf32, #tpu.memory_space<vmem>>, %arg17: memref<1x1x1xf32, #tpu.memory_space<vmem>>) attributes {dimension_semantics = [#tpu.dimension_semantics<parallel>], iteration_bounds = array<i64: 2>, scalar_prefetch = 0 : i64, scratch_operands = 0 : i64, tpu.core_type = #tpu.core_type<tc>, window_params = [{transform_indices = @transform_0, window_bounds = array<i64: 1, 17, 16>}, {pipeline_mode = #tpu.pipeline_mode<synchronous>, transform_indices = @transform_1, window_bounds = array<i64: 2, 1, 16>}, {pipeline_mode = #tpu.pipeline_mode<synchronous>, transform_indices = @transform_2, window_bounds = array<i64: 2, 1, 16>}, {pipeline_mode = #tpu.pipeline_mode<synchronous>, transform_indices = @transform_3, window_bounds = array<i64: 2, 16, 48>}, {pipeline_mode = #tpu.pipeline_mode<synchronous>, transform_indices = @transform_4, window_bounds = array<i64: 2, 1, 48>}, {pipeline_mode = #tpu.pipeline_mode<synchronous>, transform_indices = @transform_5, window_bounds = array<i64: 2, 16, 64>}, {pipeline_mode = #tpu.pipeline_mode<synchronous>, transform_indices = @transform_6, window_bounds = array<i64: 2, 1, 64>}, {pipeline_mode = #tpu.pipeline_mode<synchronous>, transform_indices = @transform_7, window_bounds = array<i64: 2, 64, 16>}, {pipeline_mode = #tpu.pipeline_mode<synchronous>, transform_indices = @transform_8, window_bounds = array<i64: 2, 1, 16>}, {pipeline_mode = #tpu.pipeline_mode<synchronous>, transform_indices = @transform_9, window_bounds = array<i64: 16, 48>}, {pipeline_mode = #tpu.pipeline_mode<synchronous>, transform_indices = @transform_10, window_bounds = array<i64: 1, 48>}, {transform_indices = @transform_11, window_bounds = array<i64: 1, 16, 48>}, {pipeline_mode = #tpu.pipeline_mode<synchronous>, transform_indices = @transform_12, window_bounds = array<i64: 48, 48>}, {pipeline_mode = #tpu.pipeline_mode<synchronous>, transform_indices = @transform_13, window_bounds = array<i64: 1, 48>}, {transform_indices = @transform_14, window_bounds = array<i64: 1, 16, 1>}, {transform_indices = @transform_15, window_bounds = array<i64: 1, 16, 48>}, {transform_indices = @transform_16, window_bounds = array<i64: 1, 1, 1>}]} {
    %c0 = arith.constant 0 : index
    %c0_0 = arith.constant 0 : index
    %c0_1 = arith.constant 0 : index
    %0 = vector.load %arg1[%c0, %c0_0, %c0_1] : memref<1x17x16xf32, #tpu.memory_space<vmem>>, vector<1x17x16xf32>
    %1 = vector.shape_cast %0 : vector<1x17x16xf32> to vector<17x16xf32>
    %2 = tpu.iota {dimensions = array<i32: 1>} : vector<1x16xi32>
    %c0_i32 = arith.constant 0 : i32
    %3 = vector.broadcast %c0_i32 : i32 to vector<1x16xi32>
    %4 = arith.cmpi sge, %2, %3 : vector<1x16xi32>
    %c4_i32 = arith.constant 4 : i32
    %5 = vector.broadcast %c4_i32 : i32 to vector<1x16xi32>
    %6 = arith.cmpi slt, %2, %5 : vector<1x16xi32>
    %7 = arith.andi %4, %6 : vector<1x16xi1>
    %cst = arith.constant 1.000000e+00 : f32
    %cst_2 = arith.constant 0.000000e+00 : f32
    %8 = vector.broadcast %cst : f32 to vector<1x16xf32>
    %9 = vector.broadcast %cst_2 : f32 to vector<1x16xf32>
    %10 = arith.select %7, %8, %9 : vector<1x16xi1>, vector<1x16xf32>
    %c4_i32_3 = arith.constant 4 : i32
    %11 = vector.broadcast %c4_i32_3 : i32 to vector<1x16xi32>
    %12 = arith.cmpi sge, %2, %11 : vector<1x16xi32>
    %c8_i32 = arith.constant 8 : i32
    %13 = vector.broadcast %c8_i32 : i32 to vector<1x16xi32>
    %14 = arith.cmpi slt, %2, %13 : vector<1x16xi32>
    %15 = arith.andi %12, %14 : vector<1x16xi1>
    %cst_4 = arith.constant 1.000000e+00 : f32
    %cst_5 = arith.constant 0.000000e+00 : f32
    %16 = vector.broadcast %cst_4 : f32 to vector<1x16xf32>
    %17 = vector.broadcast %cst_5 : f32 to vector<1x16xf32>
    %18 = arith.select %15, %16, %17 : vector<1x16xi1>, vector<1x16xf32>
    %c8_i32_6 = arith.constant 8 : i32
    %19 = vector.broadcast %c8_i32_6 : i32 to vector<1x16xi32>
    %20 = arith.cmpi sge, %2, %19 : vector<1x16xi32>
    %c12_i32 = arith.constant 12 : i32
    %21 = vector.broadcast %c12_i32 : i32 to vector<1x16xi32>
    %22 = arith.cmpi slt, %2, %21 : vector<1x16xi32>
    %23 = arith.andi %20, %22 : vector<1x16xi1>
    %cst_7 = arith.constant 1.000000e+00 : f32
    %cst_8 = arith.constant 0.000000e+00 : f32
    %24 = vector.broadcast %cst_7 : f32 to vector<1x16xf32>
    %25 = vector.broadcast %cst_8 : f32 to vector<1x16xf32>
    %26 = arith.select %23, %24, %25 : vector<1x16xi1>, vector<1x16xf32>
    %c12_i32_9 = arith.constant 12 : i32
    %27 = vector.broadcast %c12_i32_9 : i32 to vector<1x16xi32>
    %28 = arith.cmpi sge, %2, %27 : vector<1x16xi32>
    %c16_i32 = arith.constant 16 : i32
    %29 = vector.broadcast %c16_i32 : i32 to vector<1x16xi32>
    %30 = arith.cmpi slt, %2, %29 : vector<1x16xi32>
    %31 = arith.andi %28, %30 : vector<1x16xi1>
    %cst_10 = arith.constant 1.000000e+00 : f32
    %cst_11 = arith.constant 0.000000e+00 : f32
    %32 = vector.broadcast %cst_10 : f32 to vector<1x16xf32>
    %33 = vector.broadcast %cst_11 : f32 to vector<1x16xf32>
    %34 = arith.select %31, %32, %33 : vector<1x16xi1>, vector<1x16xf32>
    %c0_12 = arith.constant 0 : index
    %c0_13 = arith.constant 0 : index
    %c0_14 = arith.constant 0 : index
    %35 = vector.load %arg2[%c0_12, %c0_13, %c0_14] : memref<2x1x16xf32, #tpu.memory_space<vmem>>, vector<1x1x16xf32>
    %36 = vector.shape_cast %35 : vector<1x1x16xf32> to vector<1x16xf32>
    %c0_15 = arith.constant 0 : index
    %c0_16 = arith.constant 0 : index
    %c0_17 = arith.constant 0 : index
    %37 = vector.load %arg3[%c0_15, %c0_16, %c0_17] : memref<2x1x16xf32, #tpu.memory_space<vmem>>, vector<1x1x16xf32>
    %38 = vector.shape_cast %37 : vector<1x1x16xf32> to vector<1x16xf32>
    %c0_18 = arith.constant 0 : index
    %c0_19 = arith.constant 0 : index
    %c0_20 = arith.constant 0 : index
    %39 = vector.load %arg4[%c0_18, %c0_19, %c0_20] : memref<2x16x48xf32, #tpu.memory_space<vmem>>, vector<1x16x48xf32>
    %40 = vector.shape_cast %39 : vector<1x16x48xf32> to vector<16x48xf32>
    %c0_21 = arith.constant 0 : index
    %c0_22 = arith.constant 0 : index
    %c0_23 = arith.constant 0 : index
    %41 = vector.load %arg5[%c0_21, %c0_22, %c0_23] : memref<2x1x48xf32, #tpu.memory_space<vmem>>, vector<1x1x48xf32>
    %42 = vector.shape_cast %41 : vector<1x1x48xf32> to vector<1x48xf32>
    %c0_24 = arith.constant 0 : index
    %c0_25 = arith.constant 0 : index
    %c0_26 = arith.constant 0 : index
    %43 = vector.load %arg6[%c0_24, %c0_25, %c0_26] : memref<2x16x64xf32, #tpu.memory_space<vmem>>, vector<1x16x64xf32>
    %44 = vector.shape_cast %43 : vector<1x16x64xf32> to vector<16x64xf32>
    %c0_27 = arith.constant 0 : index
    %c0_28 = arith.constant 0 : index
    %c0_29 = arith.constant 0 : index
    %45 = vector.load %arg7[%c0_27, %c0_28, %c0_29] : memref<2x1x64xf32, #tpu.memory_space<vmem>>, vector<1x1x64xf32>
    %46 = vector.shape_cast %45 : vector<1x1x64xf32> to vector<1x64xf32>
    %c0_30 = arith.constant 0 : index
    %c0_31 = arith.constant 0 : index
    %c0_32 = arith.constant 0 : index
    %47 = vector.load %arg8[%c0_30, %c0_31, %c0_32] : memref<2x64x16xf32, #tpu.memory_space<vmem>>, vector<1x64x16xf32>
    %48 = vector.shape_cast %47 : vector<1x64x16xf32> to vector<64x16xf32>
    %c0_33 = arith.constant 0 : index
    %c0_34 = arith.constant 0 : index
    %c0_35 = arith.constant 0 : index
    %49 = vector.load %arg9[%c0_33, %c0_34, %c0_35] : memref<2x1x16xf32, #tpu.memory_space<vmem>>, vector<1x1x16xf32>
    %50 = vector.shape_cast %49 : vector<1x1x16xf32> to vector<1x16xf32>
    %cst_36 = arith.constant dense<0.000000e+00> : vector<17xf32>
    %51 = vector.multi_reduction <add>, %1, %cst_36 [1] : vector<17x16xf32> to vector<17xf32>
    %52 = vector.shape_cast %51 : vector<17xf32> to vector<17x1xf32>
    %cst_37 = arith.constant 1.600000e+01 : f32
    %53 = vector.broadcast %cst_37 : f32 to vector<17x1xf32>
    %54 = arith.divf %52, %53 : vector<17x1xf32>
    %55 = vector.broadcast %54 : vector<17x1xf32> to vector<17x16xf32>
    %56 = arith.subf %1, %55 : vector<17x16xf32>
    %57 = arith.mulf %56, %56 : vector<17x16xf32>
    %cst_38 = arith.constant dense<0.000000e+00> : vector<17xf32>
    %58 = vector.multi_reduction <add>, %57, %cst_38 [1] : vector<17x16xf32> to vector<17xf32>
    %59 = vector.shape_cast %58 : vector<17xf32> to vector<17x1xf32>
    %cst_39 = arith.constant 1.600000e+01 : f32
    %60 = vector.broadcast %cst_39 : f32 to vector<17x1xf32>
    %61 = arith.divf %59, %60 : vector<17x1xf32>
    %62 = vector.broadcast %54 : vector<17x1xf32> to vector<17x16xf32>
    %63 = arith.subf %1, %62 : vector<17x16xf32>
    %cst_40 = arith.constant 9.99999974E-6 : f32
    %64 = vector.broadcast %cst_40 : f32 to vector<17x1xf32>
    %65 = arith.addf %61, %64 : vector<17x1xf32>
    %66 = math.rsqrt %65 : vector<17x1xf32>
    %67 = vector.broadcast %66 : vector<17x1xf32> to vector<17x16xf32>
    %68 = arith.mulf %63, %67 : vector<17x16xf32>
    %69 = vector.broadcast %36 : vector<1x16xf32> to vector<17x16xf32>
    %70 = arith.mulf %68, %69 : vector<17x16xf32>
    %71 = vector.broadcast %38 : vector<1x16xf32> to vector<17x16xf32>
    %72 = arith.addf %70, %71 : vector<17x16xf32>
    %cst_41 = arith.constant dense<0.000000e+00> : vector<17x48xf32>
    %73 = tpu.matmul %72, %40, %cst_41 {dimension_numbers = #tpu.dot_dimension_numbers<[1], [0], [0], [1], [0, 0, 1, 1], [], []>} : vector<17x16xf32>, vector<16x48xf32>, vector<17x48xf32> -> vector<17x48xf32>
    %74 = vector.broadcast %42 : vector<1x48xf32> to vector<17x48xf32>
    %75 = arith.addf %73, %74 : vector<17x48xf32>
    %76 = vector.extract_strided_slice %75 {offsets = [0, 0], sizes = [17, 16], strides = [1, 1]} : vector<17x48xf32> to vector<17x16xf32>
    %77 = vector.extract_strided_slice %75 {offsets = [0, 16], sizes = [17, 16], strides = [1, 1]} : vector<17x48xf32> to vector<17x16xf32>
    %78 = vector.extract_strided_slice %75 {offsets = [0, 32], sizes = [17, 16], strides = [1, 1]} : vector<17x48xf32> to vector<17x16xf32>
    %cst_42 = arith.constant 0.000000e+00 : f32
    %79 = vector.broadcast %cst_42 : f32 to vector<17x16xf32>
    %80 = vector.broadcast %10 : vector<1x16xf32> to vector<17x16xf32>
    %81 = arith.mulf %76, %80 : vector<17x16xf32>
    %82 = vector.broadcast %10 : vector<1x16xf32> to vector<17x16xf32>
    %83 = arith.mulf %77, %82 : vector<17x16xf32>
    %84 = vector.broadcast %10 : vector<1x16xf32> to vector<17x16xf32>
    %85 = arith.mulf %78, %84 : vector<17x16xf32>
    %cst_43 = arith.constant dense<0.000000e+00> : vector<17x17xf32>
    %86 = tpu.matmul %81, %83, %cst_43 {dimension_numbers = #tpu.dot_dimension_numbers<[1], [1], [0], [0], [0, 0, 1, 0], [], []>} : vector<17x16xf32>, vector<17x16xf32>, vector<17x17xf32> -> vector<17x17xf32>
    %cst_44 = arith.constant 5.000000e-01 : f32
    %87 = vector.broadcast %cst_44 : f32 to vector<17x17xf32>
    %88 = arith.mulf %86, %87 : vector<17x17xf32>
    %cst_45 = arith.constant dense<0xFF800000> : vector<17xf32>
    %89 = vector.multi_reduction <maximumf>, %88, %cst_45 [0] : vector<17x17xf32> to vector<17xf32>
    %90 = vector.shape_cast %89 : vector<17xf32> to vector<1x17xf32>
    %91 = vector.broadcast %90 : vector<1x17xf32> to vector<17x17xf32>
    %92 = arith.subf %88, %91 : vector<17x17xf32>
    %93 = math.exp %92 : vector<17x17xf32>
    %cst_46 = arith.constant dense<0.000000e+00> : vector<17xf32>
    %94 = vector.multi_reduction <add>, %93, %cst_46 [0] : vector<17x17xf32> to vector<17xf32>
    %95 = vector.shape_cast %94 : vector<17xf32> to vector<1x17xf32>
    %96 = vector.broadcast %95 : vector<1x17xf32> to vector<17x17xf32>
    %97 = arith.divf %93, %96 : vector<17x17xf32>
    %cst_47 = arith.constant dense<0.000000e+00> : vector<17x16xf32>
    %98 = tpu.matmul %97, %85, %cst_47 {dimension_numbers = #tpu.dot_dimension_numbers<[1], [0], [0], [1], [0, 0, 1, 1], [], []>} : vector<17x17xf32>, vector<17x16xf32>, vector<17x16xf32> -> vector<17x16xf32>
    %99 = arith.addf %79, %98 : vector<17x16xf32>
    %100 = vector.broadcast %18 : vector<1x16xf32> to vector<17x16xf32>
    %101 = arith.mulf %76, %100 : vector<17x16xf32>
    %102 = vector.broadcast %18 : vector<1x16xf32> to vector<17x16xf32>
    %103 = arith.mulf %77, %102 : vector<17x16xf32>
    %104 = vector.broadcast %18 : vector<1x16xf32> to vector<17x16xf32>
    %105 = arith.mulf %78, %104 : vector<17x16xf32>
    %cst_48 = arith.constant dense<0.000000e+00> : vector<17x17xf32>
    %106 = tpu.matmul %101, %103, %cst_48 {dimension_numbers = #tpu.dot_dimension_numbers<[1], [1], [0], [0], [0, 0, 1, 0], [], []>} : vector<17x16xf32>, vector<17x16xf32>, vector<17x17xf32> -> vector<17x17xf32>
    %cst_49 = arith.constant 5.000000e-01 : f32
    %107 = vector.broadcast %cst_49 : f32 to vector<17x17xf32>
    %108 = arith.mulf %106, %107 : vector<17x17xf32>
    %cst_50 = arith.constant dense<0xFF800000> : vector<17xf32>
    %109 = vector.multi_reduction <maximumf>, %108, %cst_50 [0] : vector<17x17xf32> to vector<17xf32>
    %110 = vector.shape_cast %109 : vector<17xf32> to vector<1x17xf32>
    %111 = vector.broadcast %110 : vector<1x17xf32> to vector<17x17xf32>
    %112 = arith.subf %108, %111 : vector<17x17xf32>
    %113 = math.exp %112 : vector<17x17xf32>
    %cst_51 = arith.constant dense<0.000000e+00> : vector<17xf32>
    %114 = vector.multi_reduction <add>, %113, %cst_51 [0] : vector<17x17xf32> to vector<17xf32>
    %115 = vector.shape_cast %114 : vector<17xf32> to vector<1x17xf32>
    %116 = vector.broadcast %115 : vector<1x17xf32> to vector<17x17xf32>
    %117 = arith.divf %113, %116 : vector<17x17xf32>
    %cst_52 = arith.constant dense<0.000000e+00> : vector<17x16xf32>
    %118 = tpu.matmul %117, %105, %cst_52 {dimension_numbers = #tpu.dot_dimension_numbers<[1], [0], [0], [1], [0, 0, 1, 1], [], []>} : vector<17x17xf32>, vector<17x16xf32>, vector<17x16xf32> -> vector<17x16xf32>
    %119 = arith.addf %99, %118 : vector<17x16xf32>
    %120 = vector.broadcast %26 : vector<1x16xf32> to vector<17x16xf32>
    %121 = arith.mulf %76, %120 : vector<17x16xf32>
    %122 = vector.broadcast %26 : vector<1x16xf32> to vector<17x16xf32>
    %123 = arith.mulf %77, %122 : vector<17x16xf32>
    %124 = vector.broadcast %26 : vector<1x16xf32> to vector<17x16xf32>
    %125 = arith.mulf %78, %124 : vector<17x16xf32>
    %cst_53 = arith.constant dense<0.000000e+00> : vector<17x17xf32>
    %126 = tpu.matmul %121, %123, %cst_53 {dimension_numbers = #tpu.dot_dimension_numbers<[1], [1], [0], [0], [0, 0, 1, 0], [], []>} : vector<17x16xf32>, vector<17x16xf32>, vector<17x17xf32> -> vector<17x17xf32>
    %cst_54 = arith.constant 5.000000e-01 : f32
    %127 = vector.broadcast %cst_54 : f32 to vector<17x17xf32>
    %128 = arith.mulf %126, %127 : vector<17x17xf32>
    %cst_55 = arith.constant dense<0xFF800000> : vector<17xf32>
    %129 = vector.multi_reduction <maximumf>, %128, %cst_55 [0] : vector<17x17xf32> to vector<17xf32>
    %130 = vector.shape_cast %129 : vector<17xf32> to vector<1x17xf32>
    %131 = vector.broadcast %130 : vector<1x17xf32> to vector<17x17xf32>
    %132 = arith.subf %128, %131 : vector<17x17xf32>
    %133 = math.exp %132 : vector<17x17xf32>
    %cst_56 = arith.constant dense<0.000000e+00> : vector<17xf32>
    %134 = vector.multi_reduction <add>, %133, %cst_56 [0] : vector<17x17xf32> to vector<17xf32>
    %135 = vector.shape_cast %134 : vector<17xf32> to vector<1x17xf32>
    %136 = vector.broadcast %135 : vector<1x17xf32> to vector<17x17xf32>
    %137 = arith.divf %133, %136 : vector<17x17xf32>
    %cst_57 = arith.constant dense<0.000000e+00> : vector<17x16xf32>
    %138 = tpu.matmul %137, %125, %cst_57 {dimension_numbers = #tpu.dot_dimension_numbers<[1], [0], [0], [1], [0, 0, 1, 1], [], []>} : vector<17x17xf32>, vector<17x16xf32>, vector<17x16xf32> -> vector<17x16xf32>
    %139 = arith.addf %119, %138 : vector<17x16xf32>
    %140 = vector.broadcast %34 : vector<1x16xf32> to vector<17x16xf32>
    %141 = arith.mulf %76, %140 : vector<17x16xf32>
    %142 = vector.broadcast %34 : vector<1x16xf32> to vector<17x16xf32>
    %143 = arith.mulf %77, %142 : vector<17x16xf32>
    %144 = vector.broadcast %34 : vector<1x16xf32> to vector<17x16xf32>
    %145 = arith.mulf %78, %144 : vector<17x16xf32>
    %cst_58 = arith.constant dense<0.000000e+00> : vector<17x17xf32>
    %146 = tpu.matmul %141, %143, %cst_58 {dimension_numbers = #tpu.dot_dimension_numbers<[1], [1], [0], [0], [0, 0, 1, 0], [], []>} : vector<17x16xf32>, vector<17x16xf32>, vector<17x17xf32> -> vector<17x17xf32>
    %cst_59 = arith.constant 5.000000e-01 : f32
    %147 = vector.broadcast %cst_59 : f32 to vector<17x17xf32>
    %148 = arith.mulf %146, %147 : vector<17x17xf32>
    %cst_60 = arith.constant dense<0xFF800000> : vector<17xf32>
    %149 = vector.multi_reduction <maximumf>, %148, %cst_60 [0] : vector<17x17xf32> to vector<17xf32>
    %150 = vector.shape_cast %149 : vector<17xf32> to vector<1x17xf32>
    %151 = vector.broadcast %150 : vector<1x17xf32> to vector<17x17xf32>
    %152 = arith.subf %148, %151 : vector<17x17xf32>
    %153 = math.exp %152 : vector<17x17xf32>
    %cst_61 = arith.constant dense<0.000000e+00> : vector<17xf32>
    %154 = vector.multi_reduction <add>, %153, %cst_61 [0] : vector<17x17xf32> to vector<17xf32>
    %155 = vector.shape_cast %154 : vector<17xf32> to vector<1x17xf32>
    %156 = vector.broadcast %155 : vector<1x17xf32> to vector<17x17xf32>
    %157 = arith.divf %153, %156 : vector<17x17xf32>
    %cst_62 = arith.constant dense<0.000000e+00> : vector<17x16xf32>
    %158 = tpu.matmul %157, %145, %cst_62 {dimension_numbers = #tpu.dot_dimension_numbers<[1], [0], [0], [1], [0, 0, 1, 1], [], []>} : vector<17x17xf32>, vector<17x16xf32>, vector<17x16xf32> -> vector<17x16xf32>
    %159 = arith.addf %139, %158 : vector<17x16xf32>
    %160 = arith.addf %1, %159 : vector<17x16xf32>
    %cst_63 = arith.constant dense<0.000000e+00> : vector<17xf32>
    %161 = vector.multi_reduction <add>, %160, %cst_63 [1] : vector<17x16xf32> to vector<17xf32>
    %162 = vector.shape_cast %161 : vector<17xf32> to vector<17x1xf32>
    %cst_64 = arith.constant 1.600000e+01 : f32
    %163 = vector.broadcast %cst_64 : f32 to vector<17x1xf32>
    %164 = arith.divf %162, %163 : vector<17x1xf32>
    %165 = vector.broadcast %164 : vector<17x1xf32> to vector<17x16xf32>
    %166 = arith.subf %160, %165 : vector<17x16xf32>
    %167 = arith.mulf %166, %166 : vector<17x16xf32>
    %cst_65 = arith.constant dense<0.000000e+00> : vector<17xf32>
    %168 = vector.multi_reduction <add>, %167, %cst_65 [1] : vector<17x16xf32> to vector<17xf32>
    %169 = vector.shape_cast %168 : vector<17xf32> to vector<17x1xf32>
    %cst_66 = arith.constant 1.600000e+01 : f32
    %170 = vector.broadcast %cst_66 : f32 to vector<17x1xf32>
    %171 = arith.divf %169, %170 : vector<17x1xf32>
    %172 = vector.broadcast %164 : vector<17x1xf32> to vector<17x16xf32>
    %173 = arith.subf %160, %172 : vector<17x16xf32>
    %cst_67 = arith.constant 9.99999974E-6 : f32
    %174 = vector.broadcast %cst_67 : f32 to vector<17x1xf32>
    %175 = arith.addf %171, %174 : vector<17x1xf32>
    %176 = math.rsqrt %175 : vector<17x1xf32>
    %177 = vector.broadcast %176 : vector<17x1xf32> to vector<17x16xf32>
    %178 = arith.mulf %173, %177 : vector<17x16xf32>
    %179 = vector.broadcast %36 : vector<1x16xf32> to vector<17x16xf32>
    %180 = arith.mulf %178, %179 : vector<17x16xf32>
    %181 = vector.broadcast %38 : vector<1x16xf32> to vector<17x16xf32>
    %182 = arith.addf %180, %181 : vector<17x16xf32>
    %cst_68 = arith.constant dense<0.000000e+00> : vector<17x64xf32>
    %183 = tpu.matmul %182, %44, %cst_68 {dimension_numbers = #tpu.dot_dimension_numbers<[1], [0], [0], [1], [0, 0, 1, 1], [], []>} : vector<17x16xf32>, vector<16x64xf32>, vector<17x64xf32> -> vector<17x64xf32>
    %184 = vector.broadcast %46 : vector<1x64xf32> to vector<17x64xf32>
    %185 = arith.addf %183, %184 : vector<17x64xf32>
    %cst_69 = arith.constant dense<0.000000e+00> : vector<17x16xf32>
    %186 = tpu.matmul %185, %48, %cst_69 {dimension_numbers = #tpu.dot_dimension_numbers<[1], [0], [0], [1], [0, 0, 1, 1], [], []>} : vector<17x64xf32>, vector<64x16xf32>, vector<17x16xf32> -> vector<17x16xf32>
    %187 = vector.broadcast %50 : vector<1x16xf32> to vector<17x16xf32>
    %188 = arith.addf %186, %187 : vector<17x16xf32>
    %189 = arith.addf %160, %188 : vector<17x16xf32>
    %c1 = arith.constant 1 : index
    %c0_70 = arith.constant 0 : index
    %c0_71 = arith.constant 0 : index
    %190 = vector.load %arg2[%c1, %c0_70, %c0_71] : memref<2x1x16xf32, #tpu.memory_space<vmem>>, vector<1x1x16xf32>
    %191 = vector.shape_cast %190 : vector<1x1x16xf32> to vector<1x16xf32>
    %c1_72 = arith.constant 1 : index
    %c0_73 = arith.constant 0 : index
    %c0_74 = arith.constant 0 : index
    %192 = vector.load %arg3[%c1_72, %c0_73, %c0_74] : memref<2x1x16xf32, #tpu.memory_space<vmem>>, vector<1x1x16xf32>
    %193 = vector.shape_cast %192 : vector<1x1x16xf32> to vector<1x16xf32>
    %c1_75 = arith.constant 1 : index
    %c0_76 = arith.constant 0 : index
    %c0_77 = arith.constant 0 : index
    %194 = vector.load %arg4[%c1_75, %c0_76, %c0_77] : memref<2x16x48xf32, #tpu.memory_space<vmem>>, vector<1x16x48xf32>
    %195 = vector.shape_cast %194 : vector<1x16x48xf32> to vector<16x48xf32>
    %c1_78 = arith.constant 1 : index
    %c0_79 = arith.constant 0 : index
    %c0_80 = arith.constant 0 : index
    %196 = vector.load %arg5[%c1_78, %c0_79, %c0_80] : memref<2x1x48xf32, #tpu.memory_space<vmem>>, vector<1x1x48xf32>
    %197 = vector.shape_cast %196 : vector<1x1x48xf32> to vector<1x48xf32>
    %c1_81 = arith.constant 1 : index
    %c0_82 = arith.constant 0 : index
    %c0_83 = arith.constant 0 : index
    %198 = vector.load %arg6[%c1_81, %c0_82, %c0_83] : memref<2x16x64xf32, #tpu.memory_space<vmem>>, vector<1x16x64xf32>
    %199 = vector.shape_cast %198 : vector<1x16x64xf32> to vector<16x64xf32>
    %c1_84 = arith.constant 1 : index
    %c0_85 = arith.constant 0 : index
    %c0_86 = arith.constant 0 : index
    %200 = vector.load %arg7[%c1_84, %c0_85, %c0_86] : memref<2x1x64xf32, #tpu.memory_space<vmem>>, vector<1x1x64xf32>
    %201 = vector.shape_cast %200 : vector<1x1x64xf32> to vector<1x64xf32>
    %c1_87 = arith.constant 1 : index
    %c0_88 = arith.constant 0 : index
    %c0_89 = arith.constant 0 : index
    %202 = vector.load %arg8[%c1_87, %c0_88, %c0_89] : memref<2x64x16xf32, #tpu.memory_space<vmem>>, vector<1x64x16xf32>
    %203 = vector.shape_cast %202 : vector<1x64x16xf32> to vector<64x16xf32>
    %c1_90 = arith.constant 1 : index
    %c0_91 = arith.constant 0 : index
    %c0_92 = arith.constant 0 : index
    %204 = vector.load %arg9[%c1_90, %c0_91, %c0_92] : memref<2x1x16xf32, #tpu.memory_space<vmem>>, vector<1x1x16xf32>
    %205 = vector.shape_cast %204 : vector<1x1x16xf32> to vector<1x16xf32>
    %cst_93 = arith.constant dense<0.000000e+00> : vector<17xf32>
    %206 = vector.multi_reduction <add>, %189, %cst_93 [1] : vector<17x16xf32> to vector<17xf32>
    %207 = vector.shape_cast %206 : vector<17xf32> to vector<17x1xf32>
    %cst_94 = arith.constant 1.600000e+01 : f32
    %208 = vector.broadcast %cst_94 : f32 to vector<17x1xf32>
    %209 = arith.divf %207, %208 : vector<17x1xf32>
    %210 = vector.broadcast %209 : vector<17x1xf32> to vector<17x16xf32>
    %211 = arith.subf %189, %210 : vector<17x16xf32>
    %212 = arith.mulf %211, %211 : vector<17x16xf32>
    %cst_95 = arith.constant dense<0.000000e+00> : vector<17xf32>
    %213 = vector.multi_reduction <add>, %212, %cst_95 [1] : vector<17x16xf32> to vector<17xf32>
    %214 = vector.shape_cast %213 : vector<17xf32> to vector<17x1xf32>
    %cst_96 = arith.constant 1.600000e+01 : f32
    %215 = vector.broadcast %cst_96 : f32 to vector<17x1xf32>
    %216 = arith.divf %214, %215 : vector<17x1xf32>
    %217 = vector.broadcast %209 : vector<17x1xf32> to vector<17x16xf32>
    %218 = arith.subf %189, %217 : vector<17x16xf32>
    %cst_97 = arith.constant 9.99999974E-6 : f32
    %219 = vector.broadcast %cst_97 : f32 to vector<17x1xf32>
    %220 = arith.addf %216, %219 : vector<17x1xf32>
    %221 = math.rsqrt %220 : vector<17x1xf32>
    %222 = vector.broadcast %221 : vector<17x1xf32> to vector<17x16xf32>
    %223 = arith.mulf %218, %222 : vector<17x16xf32>
    %224 = vector.broadcast %191 : vector<1x16xf32> to vector<17x16xf32>
    %225 = arith.mulf %223, %224 : vector<17x16xf32>
    %226 = vector.broadcast %193 : vector<1x16xf32> to vector<17x16xf32>
    %227 = arith.addf %225, %226 : vector<17x16xf32>
    %cst_98 = arith.constant dense<0.000000e+00> : vector<17x48xf32>
    %228 = tpu.matmul %227, %195, %cst_98 {dimension_numbers = #tpu.dot_dimension_numbers<[1], [0], [0], [1], [0, 0, 1, 1], [], []>} : vector<17x16xf32>, vector<16x48xf32>, vector<17x48xf32> -> vector<17x48xf32>
    %229 = vector.broadcast %197 : vector<1x48xf32> to vector<17x48xf32>
    %230 = arith.addf %228, %229 : vector<17x48xf32>
    %231 = vector.extract_strided_slice %230 {offsets = [0, 0], sizes = [17, 16], strides = [1, 1]} : vector<17x48xf32> to vector<17x16xf32>
    %232 = vector.extract_strided_slice %230 {offsets = [0, 16], sizes = [17, 16], strides = [1, 1]} : vector<17x48xf32> to vector<17x16xf32>
    %233 = vector.extract_strided_slice %230 {offsets = [0, 32], sizes = [17, 16], strides = [1, 1]} : vector<17x48xf32> to vector<17x16xf32>
    %cst_99 = arith.constant 0.000000e+00 : f32
    %234 = vector.broadcast %cst_99 : f32 to vector<17x16xf32>
    %235 = vector.broadcast %10 : vector<1x16xf32> to vector<17x16xf32>
    %236 = arith.mulf %231, %235 : vector<17x16xf32>
    %237 = vector.broadcast %10 : vector<1x16xf32> to vector<17x16xf32>
    %238 = arith.mulf %232, %237 : vector<17x16xf32>
    %239 = vector.broadcast %10 : vector<1x16xf32> to vector<17x16xf32>
    %240 = arith.mulf %233, %239 : vector<17x16xf32>
    %cst_100 = arith.constant dense<0.000000e+00> : vector<17x17xf32>
    %241 = tpu.matmul %236, %238, %cst_100 {dimension_numbers = #tpu.dot_dimension_numbers<[1], [1], [0], [0], [0, 0, 1, 0], [], []>} : vector<17x16xf32>, vector<17x16xf32>, vector<17x17xf32> -> vector<17x17xf32>
    %cst_101 = arith.constant 5.000000e-01 : f32
    %242 = vector.broadcast %cst_101 : f32 to vector<17x17xf32>
    %243 = arith.mulf %241, %242 : vector<17x17xf32>
    %cst_102 = arith.constant dense<0xFF800000> : vector<17xf32>
    %244 = vector.multi_reduction <maximumf>, %243, %cst_102 [0] : vector<17x17xf32> to vector<17xf32>
    %245 = vector.shape_cast %244 : vector<17xf32> to vector<1x17xf32>
    %246 = vector.broadcast %245 : vector<1x17xf32> to vector<17x17xf32>
    %247 = arith.subf %243, %246 : vector<17x17xf32>
    %248 = math.exp %247 : vector<17x17xf32>
    %cst_103 = arith.constant dense<0.000000e+00> : vector<17xf32>
    %249 = vector.multi_reduction <add>, %248, %cst_103 [0] : vector<17x17xf32> to vector<17xf32>
    %250 = vector.shape_cast %249 : vector<17xf32> to vector<1x17xf32>
    %251 = vector.broadcast %250 : vector<1x17xf32> to vector<17x17xf32>
    %252 = arith.divf %248, %251 : vector<17x17xf32>
    %cst_104 = arith.constant dense<0.000000e+00> : vector<17x16xf32>
    %253 = tpu.matmul %252, %240, %cst_104 {dimension_numbers = #tpu.dot_dimension_numbers<[1], [0], [0], [1], [0, 0, 1, 1], [], []>} : vector<17x17xf32>, vector<17x16xf32>, vector<17x16xf32> -> vector<17x16xf32>
    %254 = arith.addf %234, %253 : vector<17x16xf32>
    %255 = vector.broadcast %18 : vector<1x16xf32> to vector<17x16xf32>
    %256 = arith.mulf %231, %255 : vector<17x16xf32>
    %257 = vector.broadcast %18 : vector<1x16xf32> to vector<17x16xf32>
    %258 = arith.mulf %232, %257 : vector<17x16xf32>
    %259 = vector.broadcast %18 : vector<1x16xf32> to vector<17x16xf32>
    %260 = arith.mulf %233, %259 : vector<17x16xf32>
    %cst_105 = arith.constant dense<0.000000e+00> : vector<17x17xf32>
    %261 = tpu.matmul %256, %258, %cst_105 {dimension_numbers = #tpu.dot_dimension_numbers<[1], [1], [0], [0], [0, 0, 1, 0], [], []>} : vector<17x16xf32>, vector<17x16xf32>, vector<17x17xf32> -> vector<17x17xf32>
    %cst_106 = arith.constant 5.000000e-01 : f32
    %262 = vector.broadcast %cst_106 : f32 to vector<17x17xf32>
    %263 = arith.mulf %261, %262 : vector<17x17xf32>
    %cst_107 = arith.constant dense<0xFF800000> : vector<17xf32>
    %264 = vector.multi_reduction <maximumf>, %263, %cst_107 [0] : vector<17x17xf32> to vector<17xf32>
    %265 = vector.shape_cast %264 : vector<17xf32> to vector<1x17xf32>
    %266 = vector.broadcast %265 : vector<1x17xf32> to vector<17x17xf32>
    %267 = arith.subf %263, %266 : vector<17x17xf32>
    %268 = math.exp %267 : vector<17x17xf32>
    %cst_108 = arith.constant dense<0.000000e+00> : vector<17xf32>
    %269 = vector.multi_reduction <add>, %268, %cst_108 [0] : vector<17x17xf32> to vector<17xf32>
    %270 = vector.shape_cast %269 : vector<17xf32> to vector<1x17xf32>
    %271 = vector.broadcast %270 : vector<1x17xf32> to vector<17x17xf32>
    %272 = arith.divf %268, %271 : vector<17x17xf32>
    %cst_109 = arith.constant dense<0.000000e+00> : vector<17x16xf32>
    %273 = tpu.matmul %272, %260, %cst_109 {dimension_numbers = #tpu.dot_dimension_numbers<[1], [0], [0], [1], [0, 0, 1, 1], [], []>} : vector<17x17xf32>, vector<17x16xf32>, vector<17x16xf32> -> vector<17x16xf32>
    %274 = arith.addf %254, %273 : vector<17x16xf32>
    %275 = vector.broadcast %26 : vector<1x16xf32> to vector<17x16xf32>
    %276 = arith.mulf %231, %275 : vector<17x16xf32>
    %277 = vector.broadcast %26 : vector<1x16xf32> to vector<17x16xf32>
    %278 = arith.mulf %232, %277 : vector<17x16xf32>
    %279 = vector.broadcast %26 : vector<1x16xf32> to vector<17x16xf32>
    %280 = arith.mulf %233, %279 : vector<17x16xf32>
    %cst_110 = arith.constant dense<0.000000e+00> : vector<17x17xf32>
    %281 = tpu.matmul %276, %278, %cst_110 {dimension_numbers = #tpu.dot_dimension_numbers<[1], [1], [0], [0], [0, 0, 1, 0], [], []>} : vector<17x16xf32>, vector<17x16xf32>, vector<17x17xf32> -> vector<17x17xf32>
    %cst_111 = arith.constant 5.000000e-01 : f32
    %282 = vector.broadcast %cst_111 : f32 to vector<17x17xf32>
    %283 = arith.mulf %281, %282 : vector<17x17xf32>
    %cst_112 = arith.constant dense<0xFF800000> : vector<17xf32>
    %284 = vector.multi_reduction <maximumf>, %283, %cst_112 [0] : vector<17x17xf32> to vector<17xf32>
    %285 = vector.shape_cast %284 : vector<17xf32> to vector<1x17xf32>
    %286 = vector.broadcast %285 : vector<1x17xf32> to vector<17x17xf32>
    %287 = arith.subf %283, %286 : vector<17x17xf32>
    %288 = math.exp %287 : vector<17x17xf32>
    %cst_113 = arith.constant dense<0.000000e+00> : vector<17xf32>
    %289 = vector.multi_reduction <add>, %288, %cst_113 [0] : vector<17x17xf32> to vector<17xf32>
    %290 = vector.shape_cast %289 : vector<17xf32> to vector<1x17xf32>
    %291 = vector.broadcast %290 : vector<1x17xf32> to vector<17x17xf32>
    %292 = arith.divf %288, %291 : vector<17x17xf32>
    %cst_114 = arith.constant dense<0.000000e+00> : vector<17x16xf32>
    %293 = tpu.matmul %292, %280, %cst_114 {dimension_numbers = #tpu.dot_dimension_numbers<[1], [0], [0], [1], [0, 0, 1, 1], [], []>} : vector<17x17xf32>, vector<17x16xf32>, vector<17x16xf32> -> vector<17x16xf32>
    %294 = arith.addf %274, %293 : vector<17x16xf32>
    %295 = vector.broadcast %34 : vector<1x16xf32> to vector<17x16xf32>
    %296 = arith.mulf %231, %295 : vector<17x16xf32>
    %297 = vector.broadcast %34 : vector<1x16xf32> to vector<17x16xf32>
    %298 = arith.mulf %232, %297 : vector<17x16xf32>
    %299 = vector.broadcast %34 : vector<1x16xf32> to vector<17x16xf32>
    %300 = arith.mulf %233, %299 : vector<17x16xf32>
    %cst_115 = arith.constant dense<0.000000e+00> : vector<17x17xf32>
    %301 = tpu.matmul %296, %298, %cst_115 {dimension_numbers = #tpu.dot_dimension_numbers<[1], [1], [0], [0], [0, 0, 1, 0], [], []>} : vector<17x16xf32>, vector<17x16xf32>, vector<17x17xf32> -> vector<17x17xf32>
    %cst_116 = arith.constant 5.000000e-01 : f32
    %302 = vector.broadcast %cst_116 : f32 to vector<17x17xf32>
    %303 = arith.mulf %301, %302 : vector<17x17xf32>
    %cst_117 = arith.constant dense<0xFF800000> : vector<17xf32>
    %304 = vector.multi_reduction <maximumf>, %303, %cst_117 [0] : vector<17x17xf32> to vector<17xf32>
    %305 = vector.shape_cast %304 : vector<17xf32> to vector<1x17xf32>
    %306 = vector.broadcast %305 : vector<1x17xf32> to vector<17x17xf32>
    %307 = arith.subf %303, %306 : vector<17x17xf32>
    %308 = math.exp %307 : vector<17x17xf32>
    %cst_118 = arith.constant dense<0.000000e+00> : vector<17xf32>
    %309 = vector.multi_reduction <add>, %308, %cst_118 [0] : vector<17x17xf32> to vector<17xf32>
    %310 = vector.shape_cast %309 : vector<17xf32> to vector<1x17xf32>
    %311 = vector.broadcast %310 : vector<1x17xf32> to vector<17x17xf32>
    %312 = arith.divf %308, %311 : vector<17x17xf32>
    %cst_119 = arith.constant dense<0.000000e+00> : vector<17x16xf32>
    %313 = tpu.matmul %312, %300, %cst_119 {dimension_numbers = #tpu.dot_dimension_numbers<[1], [0], [0], [1], [0, 0, 1, 1], [], []>} : vector<17x17xf32>, vector<17x16xf32>, vector<17x16xf32> -> vector<17x16xf32>
    %314 = arith.addf %294, %313 : vector<17x16xf32>
    %315 = arith.addf %189, %314 : vector<17x16xf32>
    %cst_120 = arith.constant dense<0.000000e+00> : vector<17xf32>
    %316 = vector.multi_reduction <add>, %315, %cst_120 [1] : vector<17x16xf32> to vector<17xf32>
    %317 = vector.shape_cast %316 : vector<17xf32> to vector<17x1xf32>
    %cst_121 = arith.constant 1.600000e+01 : f32
    %318 = vector.broadcast %cst_121 : f32 to vector<17x1xf32>
    %319 = arith.divf %317, %318 : vector<17x1xf32>
    %320 = vector.broadcast %319 : vector<17x1xf32> to vector<17x16xf32>
    %321 = arith.subf %315, %320 : vector<17x16xf32>
    %322 = arith.mulf %321, %321 : vector<17x16xf32>
    %cst_122 = arith.constant dense<0.000000e+00> : vector<17xf32>
    %323 = vector.multi_reduction <add>, %322, %cst_122 [1] : vector<17x16xf32> to vector<17xf32>
    %324 = vector.shape_cast %323 : vector<17xf32> to vector<17x1xf32>
    %cst_123 = arith.constant 1.600000e+01 : f32
    %325 = vector.broadcast %cst_123 : f32 to vector<17x1xf32>
    %326 = arith.divf %324, %325 : vector<17x1xf32>
    %327 = vector.broadcast %319 : vector<17x1xf32> to vector<17x16xf32>
    %328 = arith.subf %315, %327 : vector<17x16xf32>
    %cst_124 = arith.constant 9.99999974E-6 : f32
    %329 = vector.broadcast %cst_124 : f32 to vector<17x1xf32>
    %330 = arith.addf %326, %329 : vector<17x1xf32>
    %331 = math.rsqrt %330 : vector<17x1xf32>
    %332 = vector.broadcast %331 : vector<17x1xf32> to vector<17x16xf32>
    %333 = arith.mulf %328, %332 : vector<17x16xf32>
    %334 = vector.broadcast %191 : vector<1x16xf32> to vector<17x16xf32>
    %335 = arith.mulf %333, %334 : vector<17x16xf32>
    %336 = vector.broadcast %193 : vector<1x16xf32> to vector<17x16xf32>
    %337 = arith.addf %335, %336 : vector<17x16xf32>
    %cst_125 = arith.constant dense<0.000000e+00> : vector<17x64xf32>
    %338 = tpu.matmul %337, %199, %cst_125 {dimension_numbers = #tpu.dot_dimension_numbers<[1], [0], [0], [1], [0, 0, 1, 1], [], []>} : vector<17x16xf32>, vector<16x64xf32>, vector<17x64xf32> -> vector<17x64xf32>
    %339 = vector.broadcast %201 : vector<1x64xf32> to vector<17x64xf32>
    %340 = arith.addf %338, %339 : vector<17x64xf32>
    %cst_126 = arith.constant dense<0.000000e+00> : vector<17x16xf32>
    %341 = tpu.matmul %340, %203, %cst_126 {dimension_numbers = #tpu.dot_dimension_numbers<[1], [0], [0], [1], [0, 0, 1, 1], [], []>} : vector<17x64xf32>, vector<64x16xf32>, vector<17x16xf32> -> vector<17x16xf32>
    %342 = vector.broadcast %205 : vector<1x16xf32> to vector<17x16xf32>
    %343 = arith.addf %341, %342 : vector<17x16xf32>
    %344 = arith.addf %315, %343 : vector<17x16xf32>
    %345 = vector.extract_strided_slice %344 {offsets = [1, 0], sizes = [16, 16], strides = [1, 1]} : vector<17x16xf32> to vector<16x16xf32>
    %c0_127 = arith.constant 0 : index
    %c0_128 = arith.constant 0 : index
    %346 = vector.load %arg10[%c0_127, %c0_128] : memref<16x48xf32, #tpu.memory_space<vmem>>, vector<16x48xf32>
    %cst_129 = arith.constant dense<0.000000e+00> : vector<16x48xf32>
    %347 = tpu.matmul %345, %346, %cst_129 {dimension_numbers = #tpu.dot_dimension_numbers<[1], [0], [0], [1], [0, 0, 1, 1], [], []>} : vector<16x16xf32>, vector<16x48xf32>, vector<16x48xf32> -> vector<16x48xf32>
    %c0_130 = arith.constant 0 : index
    %c0_131 = arith.constant 0 : index
    %348 = vector.load %arg11[%c0_130, %c0_131] : memref<1x48xf32, #tpu.memory_space<vmem>>, vector<1x48xf32>
    %349 = vector.broadcast %348 : vector<1x48xf32> to vector<16x48xf32>
    %350 = arith.addf %347, %349 : vector<16x48xf32>
    %c0_132 = arith.constant 0 : index
    %c0_133 = arith.constant 0 : index
    %c0_134 = arith.constant 0 : index
    %351 = vector.load %arg16[%c0_132, %c0_133, %c0_134] : memref<1x16x48xf32, #tpu.memory_space<vmem>>, vector<1x16x48xf32>
    %352 = vector.shape_cast %351 : vector<1x16x48xf32> to vector<16x48xf32>
    %353 = vector.shape_cast %350 : vector<16x48xf32> to vector<1x16x48xf32>
    tpu.vector_store %arg16[%c0_132, %c0_133, %c0_134], %353 {strides = array<i32>} : memref<1x16x48xf32, #tpu.memory_space<vmem>>, vector<1x16x48xf32>,
    %c0_135 = arith.constant 0 : index
    %c0_136 = arith.constant 0 : index
    %c0_137 = arith.constant 0 : index
    %354 = vector.load %arg12[%c0_135, %c0_136, %c0_137] : memref<1x16x48xf32, #tpu.memory_space<vmem>>, vector<1x16x48xf32>
    %355 = vector.shape_cast %354 : vector<1x16x48xf32> to vector<16x48xf32>
    %c0_138 = arith.constant 0 : index
    %c0_139 = arith.constant 0 : index
    %356 = vector.load %arg13[%c0_138, %c0_139] : memref<48x48xf32, #tpu.memory_space<vmem>>, vector<48x48xf32>
    %cst_140 = arith.constant dense<0.000000e+00> : vector<16x48xf32>
    %357 = tpu.matmul %355, %356, %cst_140 {dimension_numbers = #tpu.dot_dimension_numbers<[1], [0], [0], [1], [0, 0, 1, 1], [], []>} : vector<16x48xf32>, vector<48x48xf32>, vector<16x48xf32> -> vector<16x48xf32>
    %c0_141 = arith.constant 0 : index
    %c0_142 = arith.constant 0 : index
    %358 = vector.load %arg14[%c0_141, %c0_142] : memref<1x48xf32, #tpu.memory_space<vmem>>, vector<1x48xf32>
    %359 = vector.broadcast %358 : vector<1x48xf32> to vector<16x48xf32>
    %360 = arith.addf %357, %359 : vector<16x48xf32>
    %361 = arith.subf %350, %360 : vector<16x48xf32>
    %362 = arith.mulf %361, %361 : vector<16x48xf32>
    %cst_143 = arith.constant dense<0.000000e+00> : vector<16xf32>
    %363 = vector.multi_reduction <add>, %362, %cst_143 [1] : vector<16x48xf32> to vector<16xf32>
    %364 = vector.shape_cast %363 : vector<16xf32> to vector<16x1xf32>
    %cst_144 = arith.constant 4.800000e+01 : f32
    %365 = vector.broadcast %cst_144 : f32 to vector<16x1xf32>
    %366 = arith.divf %364, %365 : vector<16x1xf32>
    %c0_145 = arith.constant 0 : index
    %c0_146 = arith.constant 0 : index
    %c0_147 = arith.constant 0 : index
    %367 = vector.load %arg15[%c0_145, %c0_146, %c0_147] : memref<1x16x1xf32, #tpu.memory_space<vmem>>, vector<1x16x1xf32>
    %368 = vector.shape_cast %367 : vector<1x16x1xf32> to vector<16x1xf32>
    %369 = arith.mulf %366, %368 : vector<16x1xf32>
    %370 = vector.shape_cast %369 : vector<16x1xf32> to vector<1x16x1xf32>
    %cst_148 = arith.constant dense<0.000000e+00> : vector<1xf32>
    %371 = vector.multi_reduction <add>, %370, %cst_148 [1, 2] : vector<1x16x1xf32> to vector<1xf32>
    %372 = vector.shape_cast %371 : vector<1xf32> to vector<1x1x1xf32>
    %373 = vector.extract %372[0, 0, 0] : f32 from vector<1x1x1xf32>
    %374 = vector.broadcast %373 : f32 to vector<1x1xf32>
    %c0_149 = arith.constant 0 : index
    %c0_150 = arith.constant 0 : index
    %c0_151 = arith.constant 0 : index
    %375 = vector.load %arg17[%c0_149, %c0_150, %c0_151] : memref<1x1x1xf32, #tpu.memory_space<vmem>>, vector<1x1x1xf32>
    %376 = vector.shape_cast %375 : vector<1x1x1xf32> to vector<1x1xf32>
    %377 = vector.shape_cast %374 : vector<1x1xf32> to vector<1x1x1xf32>
    tpu.vector_store %arg17[%c0_149, %c0_150, %c0_151], %377 {strides = array<i32>} : memref<1x1x1xf32, #tpu.memory_space<vmem>>, vector<1x1x1xf32>,
    return
  }
  func.func @transform_0(%arg0: i32) -> (i32, i32, i32) {
    %c0_i32 = arith.constant 0 : i32
    %c0_i32_0 = arith.constant 0 : i32
    %c0_i32_1 = arith.constant 0 : i32
    return %arg0, %c0_i32, %c0_i32_0 : i32, i32, i32
  }
  func.func @transform_1(%arg0: i32) -> (i32, i32, i32) {
    %c0_i32 = arith.constant 0 : i32
    %c0_i32_0 = arith.constant 0 : i32
    %c0_i32_1 = arith.constant 0 : i32
    %c0_i32_2 = arith.constant 0 : i32
    return %c0_i32, %c0_i32_0, %c0_i32_1 : i32, i32, i32
  }
  func.func @transform_2(%arg0: i32) -> (i32, i32, i32) {
    %c0_i32 = arith.constant 0 : i32
    %c0_i32_0 = arith.constant 0 : i32
    %c0_i32_1 = arith.constant 0 : i32
    %c0_i32_2 = arith.constant 0 : i32
    return %c0_i32, %c0_i32_0, %c0_i32_1 : i32, i32, i32
  }
  func.func @transform_3(%arg0: i32) -> (i32, i32, i32) {
    %c0_i32 = arith.constant 0 : i32
    %c0_i32_0 = arith.constant 0 : i32
    %c0_i32_1 = arith.constant 0 : i32
    %c0_i32_2 = arith.constant 0 : i32
    return %c0_i32, %c0_i32_0, %c0_i32_1 : i32, i32, i32
  }
  func.func @transform_4(%arg0: i32) -> (i32, i32, i32) {
    %c0_i32 = arith.constant 0 : i32
    %c0_i32_0 = arith.constant 0 : i32
    %c0_i32_1 = arith.constant 0 : i32
    %c0_i32_2 = arith.constant 0 : i32
    return %c0_i32, %c0_i32_0, %c0_i32_1 : i32, i32, i32
  }
  func.func @transform_5(%arg0: i32) -> (i32, i32, i32) {
    %c0_i32 = arith.constant 0 : i32
    %c0_i32_0 = arith.constant 0 : i32
    %c0_i32_1 = arith.constant 0 : i32
    %c0_i32_2 = arith.constant 0 : i32
    return %c0_i32, %c0_i32_0, %c0_i32_1 : i32, i32, i32
  }
  func.func @transform_6(%arg0: i32) -> (i32, i32, i32) {
    %c0_i32 = arith.constant 0 : i32
    %c0_i32_0 = arith.constant 0 : i32
    %c0_i32_1 = arith.constant 0 : i32
    %c0_i32_2 = arith.constant 0 : i32
    return %c0_i32, %c0_i32_0, %c0_i32_1 : i32, i32, i32
  }
  func.func @transform_7(%arg0: i32) -> (i32, i32, i32) {
    %c0_i32 = arith.constant 0 : i32
    %c0_i32_0 = arith.constant 0 : i32
    %c0_i32_1 = arith.constant 0 : i32
    %c0_i32_2 = arith.constant 0 : i32
    return %c0_i32, %c0_i32_0, %c0_i32_1 : i32, i32, i32
  }
  func.func @transform_8(%arg0: i32) -> (i32, i32, i32) {
    %c0_i32 = arith.constant 0 : i32
    %c0_i32_0 = arith.constant 0 : i32
    %c0_i32_1 = arith.constant 0 : i32
    %c0_i32_2 = arith.constant 0 : i32
    return %c0_i32, %c0_i32_0, %c0_i32_1 : i32, i32, i32
  }
  func.func @transform_9(%arg0: i32) -> (i32, i32) {
    %c0_i32 = arith.constant 0 : i32
    %c0_i32_0 = arith.constant 0 : i32
    %c0_i32_1 = arith.constant 0 : i32
    return %c0_i32, %c0_i32_0 : i32, i32
  }
  func.func @transform_10(%arg0: i32) -> (i32, i32) {
    %c0_i32 = arith.constant 0 : i32
    %c0_i32_0 = arith.constant 0 : i32
    %c0_i32_1 = arith.constant 0 : i32
    return %c0_i32, %c0_i32_0 : i32, i32
  }
  func.func @transform_11(%arg0: i32) -> (i32, i32, i32) {
    %c0_i32 = arith.constant 0 : i32
    %c0_i32_0 = arith.constant 0 : i32
    %c0_i32_1 = arith.constant 0 : i32
    return %arg0, %c0_i32, %c0_i32_0 : i32, i32, i32
  }
  func.func @transform_12(%arg0: i32) -> (i32, i32) {
    %c0_i32 = arith.constant 0 : i32
    %c0_i32_0 = arith.constant 0 : i32
    %c0_i32_1 = arith.constant 0 : i32
    return %c0_i32, %c0_i32_0 : i32, i32
  }
  func.func @transform_13(%arg0: i32) -> (i32, i32) {
    %c0_i32 = arith.constant 0 : i32
    %c0_i32_0 = arith.constant 0 : i32
    %c0_i32_1 = arith.constant 0 : i32
    return %c0_i32, %c0_i32_0 : i32, i32
  }
  func.func @transform_14(%arg0: i32) -> (i32, i32, i32) {
    %c0_i32 = arith.constant 0 : i32
    %c0_i32_0 = arith.constant 0 : i32
    %c0_i32_1 = arith.constant 0 : i32
    return %arg0, %c0_i32, %c0_i32_0 : i32, i32, i32
  }
  func.func @transform_15(%arg0: i32) -> (i32, i32, i32) {
    %c0_i32 = arith.constant 0 : i32
    %c0_i32_0 = arith.constant 0 : i32
    %c0_i32_1 = arith.constant 0 : i32
    return %arg0, %c0_i32, %c0_i32_0 : i32, i32, i32
  }
  func.func @transform_16(%arg0: i32) -> (i32, i32, i32) {
    %c0_i32 = arith.constant 0 : i32
    %c0_i32_0 = arith.constant 0 : i32
    %c0_i32_1 = arith.constant 0 : i32
    return %arg0, %c0_i32, %c0_i32_0 : i32, i32, i32
  }
}

</mosaic_0001>

<bundles_post_ra>
// kernel: mae_forward.2
= control target key start
LH: loop header
LB: loop body
LE: loop exit
PB: predicated region body
PF: predicated region fallthrough
CT: control target
= control target key end

     0   :  { %s3427_s25 = smov 0   ;;  %s3967_s0 = inlined_call_operand.vmem [shape: f32[2,5,48], index: 0, kind: input, shape index: {}]   ;;  %s3968_s1 = inlined_call_operand.vmem [shape: f32[2,5,32], index: 1, kind: input, shape index: {}]   ;;  %s3969_s2 = inlined_call_operand.vmem [shape: f32[48,32], index: 2, kind: input, shape index: {}]   ;;  %s3970_s3 = inlined_call_operand.vmem [shape: f32[2,1,32], index: 3, kind: input, shape index: {}]   ;;  %s3971_s4 = inlined_call_operand.vmem [shape: f32[2,1,32], index: 4, kind: input, shape index: {}]   ;;  %s3972_s5 = inlined_call_operand.vmem [shape: f32[2,32,96], index: 5, kind: input, shape index: {}]   ;;  %s3973_s6 = inlined_call_operand.vmem [shape: f32[2,1,96], index: 6, kind: input, shape index: {}]   ;;  %s3974_s7 = inlined_call_operand.vmem [shape: f32[2,32,128], index: 7, kind: input, shape index: {}]   ;;  %s3975_s8 = inlined_call_operand.vmem [shape: f32[2,1,128], index: 8, kind: input, shape index: {}]   ;;  %s3976_s9 = inlined_call_operand.vmem [shape: f32[2,128,32], index: 9, kind: input, shape index: {}]   ;;  %s3977_s10 = inlined_call_operand.vmem [shape: f32[2,1,32], index: 10, kind: input, shape index: {}]   ;;  %s3978_s11 = inlined_call_operand.vmem [shape: f32[32,16], index: 11, kind: input, shape index: {}]   ;;  %s3979_s12 = inlined_call_operand.vmem [shape: f32[1,16], index: 12, kind: input, shape index: {}]   ;;  %s3980_s13 = inlined_call_operand.vmem [shape: f32[2,5,16], index: 13, kind: output, shape index: {}]  }
   0x1 LB: > { %s2796_s26 = sadd.s32 4294967295, %s3349_s25   ;;  %p2800_p0 = scmp.ge.s32.totalorder %s3349_s25, 1  ;;  %s3349_s25 = sphi %s3427_s25, %s23_s25  }
   0x2   : > { %p395_p1 = scmp.lt.s32.totalorder %s3349_s25, 3 }
   0x4   : > { %p396_p2 = pnand %p2800_p0, %p395_p1 }
   0x5   : > { %v454_v0 = vld [vmem:[%s3969_s2] sm:$0xff] (!%p396_p2)  ;;  %v455_v1 = vld [vmem:[%s3969_s2 + $0x8] sm:$0xff] (!%p396_p2)  ;;  %v456_v2 = vld [vmem:[%s3969_s2 + $0x10] sm:$0xff] (!%p396_p2)  ;;  %v3351_v3 = vmov (!%p396_p2), 0.0|0.0   ;;  %vm3352_vm0 = vmmov (!%p396_p2), 0   ;;  %v3353_v6 = vmov (!%p396_p2), 0.0   ;;  %v535_v28 = vlaneseq (!%p396_p2) }
   0x6   : > { %399 = sbr.rel (%p396_p2) target bundleno = 4759 (0x1297), region = 72  ;;  %3202 = vmatprep.subr.bf16.mxu1 (!%p396_p2), %v3351_v3  ;;  %v3203_v4 = vpack.c.bf16 (!%p396_p2), %v455_v1, %v454_v0  ;;  %v457_v5 = vld [vmem:[%s3969_s2 + $0x18] sm:$0xff] (!%p396_p2)  ;;  %2994 = vmatprep.mubr.msk.f32.mxu1 (!%p396_p2), %vm3352_vm0, %v3353_v6  ;;  %p441_p3 = scmp.lt.s32.totalorder (!%p396_p2), %s2796_s26, 1  ;;  %v458_v8 = vld [vmem:[%s3969_s2 + $0x20] sm:$0xff] (!%p396_p2)  ;;  %v459_v9 = vld [vmem:[%s3969_s2 + $0x28] sm:$0xff] (!%p396_p2)  ;;  %vm461_vm1 = vcmask (!%p396_p2), 392192  }
   0x7   : > { %3013 = vmatprep.subr.mxu0 (!%p396_p2), %v3353_v6  ;;  %3015 = vmatprep.mubr.msk.f32.mxu0 (!%p396_p2), %vm3352_vm0, %v3353_v6  ;;  %v3206_v7 = vpack.c.bf16 (!%p396_p2), %v457_v5, %v456_v2  ;;  %v3209_v10 = vpack.c.bf16 (!%p396_p2), %v459_v9, %v458_v8  ;;  %vm582_vm2 = vcmask (!%p396_p2), 258048   ;;  %v555_v22 = vld [vmem:[%s3972_s5] sm:$0xff] (!%p396_p2)  ;;  %v556_v23 = vld [vmem:[%s3972_s5 + $0x8] sm:$0xff] (!%p396_p2)  ;;  %v557_v25 = vld [vmem:[%s3972_s5 + $0x10] sm:$0xff] (!%p396_p2)  ;;  %v536_v29 = vand.u32 (!%p396_p2), 127, %v535_v28  ;;  %s3354_s21 = smov (!%p396_p2), 32  }
   0x8   : > { %3204 = vmatpush3.bf16.msra.mxu1 (!%p396_p2), %v3203_v4  ;;  %v3212_v24 = vpack.c.bf16 (!%p396_p2), %v556_v23, %v555_v22  ;;  %v558_v26 = vld [vmem:[%s3972_s5 + $0x18] sm:$0xff] (!%p396_p2)  ;;  %v3507_v36 = vld [vmem:[%s3970_s3] ss:$0 sm:$0xff] (!%p396_p2)  ;;  %vm617_vm7 = vcmask (!%p396_p2), 261120   ;;  %s3355_s30 = smov (!%p396_p2), 96   ;;  %s3356_s14 = smov (!%p396_p2), 64  }
   0x9   : > { %3205 = vmatprep.subr.bf16.mxu1 (!%p396_p2), %v3351_v3  ;;  %v3215_v27 = vpack.c.bf16 (!%p396_p2), %v558_v26, %v557_v25  ;;  %vm541_vm3 = vcmp.ge.s32.totalorder (!%p396_p2), %v536_v29, 8  ;;  %vm542_vm4 = vcmp.lt.s32.totalorder (!%p396_p2), %v536_v29, 16  ;;  %vm538_vm5 = vcmp.lt.s32.totalorder (!%p396_p2), %v536_v29, 8  ;;  %v3512_v38 = vld [vmem:[%s3971_s4] ss:$0 sm:$0xff] (!%p396_p2) }
   0xa   : > { %vm543_vm6 = vmand (!%p396_p2), %vm541_vm3, %vm542_vm4  ;;  %v3495_v30 = vsel (!%p396_p2), %vm538_vm5, 1.0, %v3353_v6  ;;  %v2807_v41 = vld [vmem:[%s3973_s6] ss:$0 sm:$0xff] (!%p396_p2)  ;;  %vm545_vm8 = vcmp.ge.s32.totalorder (!%p396_p2), %v536_v29, 16  ;;  %vm546_vm9 = vcmp.lt.s32.totalorder (!%p396_p2), %v536_v29, 24  ;;  %vm549_vm11 = vcmp.ge.s32.totalorder (!%p396_p2), %v536_v29, 24 }
   0xb   : > { %v3498_v31 = vsel (!%p396_p2), %vm543_vm6, 1.0, %v3353_v6  ;;  %vm547_vm10 = vmand (!%p396_p2), %vm545_vm8, %vm546_vm9  ;;  %vm550_vm12 = vcmp.lt.s32.totalorder (!%p396_p2), %v536_v29, 32  ;;  %vm915_vm14 = vcmask (!%p396_p2), 1044480   ;;  %vm780_vm15 = vcmask (!%p396_p2), 36864  }
   0xc   : > { %3207 = vmatpush3.bf16.msra.mxu1 (!%p396_p2), %v3206_v7  ;;  %802 = vrot.lane.b32.xlu1 (!%p396_p2), %v3498_v31, %s3354_s21  ;;  %v3532_v47 = vsel (!%p396_p2), %vm547_vm10, 1.0, %v3353_v6  ;;  %vm551_vm13 = vmand (!%p396_p2), %vm549_vm11, %vm550_vm12 }
   0xd   : > { %s3982_s26 = smov (!%p441_p3, %s2796_s26), 1  ;;  %3208 = vmatprep.subr.bf16.mxu1 %v3351_v3  ;;  %v3539_v49 = vsel %vm551_vm13, 1.0, %v3353_v6 }
   0xe   : > { %s3460_s22 = sshll.u32 %s3982_s26, 3 }
   0xf   : > { %s444_s27 = scalar_lea.vmem %s3967_s0, %s3460_s22  ;;  %s448_s29 = scalar_lea.vmem %s3968_s1, %s3460_s22 }
  0x10   : > { %3210 = vmatpush3.bf16.msra.mxu1 %v3209_v10  ;;  %v453_v11 = vld [vmem:[%s444_s27] sm:$0x1f]  ;;  %s452_s17 = scalar_lea.vmem %s3980_s13, %s3460_s22 }
  0x11   : > { %3211 = vmatprep.subr.bf16.mxu1 %v3351_v3  ;;  %v460_v12 = vld [vmem:[%s448_s29] sm:$0x1f] }
  0x13   : > { %2995 = vmatmul.mubr.msk.f32.vlgmr.msra.gmra.mrb[0].mxu1 %vm461_vm1, %v453_v11  ;;  %vm911_vm1 = vcmask 39936  }
  0x14   : > { %3005 = vmatprep.mubr.msk.f32.mxu1 %vm3352_vm0, %v3353_v6  ;;  %3213 = vmatpush3.bf16.msra.mxu1 %v3212_v24 }
  0x15   : > { %3214 = vmatprep.subr.bf16.mxu1 %v3351_v3 }
  0x18   : > { %3216 = vmatpush3.bf16.msra.mxu1 %v3215_v27 }
  0x19   : > { %3008 = vmatprep.subr.mxu1 %v3353_v6 }
  0x7e   : > { %v3522_v43 = vpop.permute.xlu1 %802 }
  0xe6   : > { %v531_v13 = vpop.f32.mrb[0].mxu1 }
  0xe7   : > { %v3474_v14 = vadd.f32 %v531_v13, %v460_v12  ;;  %v2996_v15 = vpop.f32.mrb[1].mxu1 }
  0xe9   : > { %v583_v16 = vsel %vm582_vm2, %v3474_v14, 0.0 }
  0xea   : > { %584 = vadd.xlane.f32.xlu0 %v583_v16 }
 0x177   : > { %v585_v17 = vpop.xlane.xlu0 %584 }
 0x178   : > { %v587_v18 = vmul.f32 0.03125, %v585_v17 }
 0x17a   : > { %v588_v19 = vsub.f32 %v3474_v14, %v587_v18 }
 0x17c   : > { %v589_v20 = vmul.f32 %v588_v19, %v588_v19 }
 0x17e   : > { %v590_v21 = vsel %vm582_vm2, %v589_v20, 0.0 }
 0x17f   : > { %591 = vadd.xlane.f32.xlu0 %v590_v21 }
 0x195   : > { %693 = vrot.lane.b32.xlu0 %v3495_v30, %s3354_s21 }
 0x20c   : > { %v592_v32 = vpop.xlane.xlu0 %591 }
 0x20d   : > { %v593_v33 = vmul.f32 0.03125, %v592_v32 }
 0x20f   : > { %v594_v34 = vadd.f32 1e-05, %v593_v33 }
 0x210   : > { %v3536_v48 = vpop.permute.xlu0 %693 }
 0x211   : > { %3303 = vrsqrt.f32 %v594_v34 }
 0x21b   : > { %v3304_v35 = vpop.eup %3303 }
 0x21c   : > { %v596_v37 = vmul.f32 %v3304_v35, %v588_v19 }
 0x21e   : > { %v603_v39 = vmul.f32 %v3507_v36, %v596_v37 }
 0x220   : > { %v610_v40 = vadd.f32 %v3512_v38, %v603_v39 }
 0x222   : > { %3006 = vmatmul.mubr.msk.f32.vlgmr.msra.gmra.mrb[2].mxu1 %vm617_vm7, %v610_v40 }
 0x223   : > { %3010 = vmatprep.mubr.msk.f32.mxu1 %vm3352_vm0, %v3353_v6 }
 0x2f5   : > { %v687_v42 = vpop.f32.mrb[2].mxu1 }
 0x2f6   : > { %v3524_v44 = vadd.f32 %v2807_v41, %v687_v42  ;;  %v3007_v45 = vpop.f32.mrb[3].mxu1 }
 0x2f8   : > { %v805_v46 = vmul.f32 %v3522_v43, %v3524_v44  ;;  %v696_v50 = vmul.f32 %v3536_v48, %v3524_v44  ;;  %v800_v52 = vmul.f32 %v3524_v44, %v3498_v31  ;;  %v691_v60 = vmul.f32 %v3524_v44, %v3495_v30 }
 0x2fa   : > { %811 = vrot.lane.b32.xlu1 %v805_v46, %s3355_s30 }
 0x2fe   : > { %806 = vrot.lane.b32.xlu1 %v3498_v31, %s3356_s14 }
 0x302   : > { %1068 = vrot.lane.b32.xlu1 %v3532_v47, %s3354_s21 }
 0x306   : > { %1255 = vrot.lane.b32.xlu1 %v3539_v49, %s3354_s21 }
 0x30a   : > { %702 = vrot.lane.b32.xlu1 %v696_v50, %s3355_s30 }
 0x36c   : > { %v812_v51 = vpop.permute.xlu1 %811 }
 0x36d   : > { %3014 = vmatpush3.xpose.msk.msra.mxu0 %vm617_vm7, %v812_v51 }
 0x36e   : > { %3023 = vmatprep.subr.mxu0 %v3353_v6 }
 0x370   : > { %v3550_v53 = vpop.permute.xlu1 %806  ;;  %3016 = vmatmul.mubr.msk.f32.vlgmr.msra.gmra.mrb[0].mxu0 %vm617_vm7, %v800_v52 }
 0x371   : > { %v809_v54 = vmul.f32 %v3550_v53, %v3524_v44  ;;  %3025 = vmatprep.mubr.msk.f32.mxu0 %vm3352_vm0, %v3353_v6 }
 0x373   : > { %909 = vrot.lane.b32.xlu1 %v809_v54, %s3356_s14 }
 0x374   : > { %v3558_v55 = vpop.permute.xlu1 %1068 }
 0x375   : > { %v1071_v56 = vmul.f32 %v3558_v55, %v3524_v44 }
 0x377   : > { %1077 = vrot.lane.b32.xlu1 %v1071_v56, %s3355_s30 }
 0x378   : > { %v3563_v57 = vpop.permute.xlu1 %1255 }
 0x379   : > { %v1258_v58 = vmul.f32 %v3563_v57, %v3524_v44 }
 0x37b   : > { %1264 = vrot.lane.b32.xlu0 %v1258_v58, %s3355_s30  ;;  %697 = vrot.lane.b32.xlu1 %v3495_v30, %s3356_s14 }
 0x37c   : > { %v703_v59 = vpop.permute.xlu1 %702 }
 0x37d   : > { %3009 = vmatpush3.xpose.msk.msra.mxu1 %vm617_vm7, %v703_v59 }
 0x37e   : > { %3018 = vmatprep.subr.mxu1 %v3353_v6 }
 0x37f   : > { %1072 = vrot.lane.b32.xlu0 %v3532_v47, %s3356_s14  ;;  %1259 = vrot.lane.b32.xlu1 %v3539_v49, %s3356_s14 }
 0x380   : > { %3011 = vmatmul.mubr.msk.f32.vlgmr.msra.gmra.mrb[4].mxu1 %vm617_vm7, %v691_v60 }
 0x381   : > { %3020 = vmatprep.mubr.msk.f32.mxu1 %vm3352_vm0, %v3353_v6 }
 0x3e5   : > { %v910_v61 = vpop.permute.xlu1 %909 }
 0x3e6   : > { %3019 = vmatpush3.msk.msra.mxu1 %vm915_vm14, %v910_v61 }
 0x3e7   : > { %3028 = vmatprep.subr.mxu1 %v3353_v6 }
 0x3e9   : > { %v1078_v62 = vpop.permute.xlu1 %1077 }
 0x3ed   : > { %v3583_v63 = vpop.permute.xlu0 %1264  ;;  %v3585_v0 = vpop.permute.xlu1 %697 }
 0x3ee   : > { %v700_v1 = vmul.f32 %v3585_v0, %v3524_v44 }
 0x3f0   : > { %989 = vrot.lane.b32.xlu0 %v700_v1, %s3356_s14 }
 0x3f1   : > { %v3590_v2 = vpop.permute.xlu0 %1072  ;;  %v3592_v4 = vpop.permute.xlu1 %1259 }
 0x3f2   : > { %v1075_v5 = vmul.f32 %v3590_v2, %v3524_v44  ;;  %v1262_v7 = vmul.f32 %v3592_v4, %v3524_v44 }
 0x3f4   : > { %1175 = vrot.lane.b32.xlu1 %v1075_v5, %s3356_s14  ;;  %1362 = vrot.lane.b32.xlu0 %v1262_v7, %s3356_s14  ;;  %v1066_v7 = vmul.f32 %v3524_v44, %v3532_v47 }
 0x443   : > { %v884_v8 = vpop.f32.mrb[0].mxu0 }
 0x444   : > { %v888_v9 = vmul.f32 0.5, %v884_v8  ;;  %v3017_v10 = vpop.f32.mrb[1].mxu0 }
 0x446   : > { %v889_v11 = vsel %vm780_vm15, %v888_v9, -inf }
 0x447   : > { %v890_v12 = vrot.slane %v889_v11, 4 }
 0x449   : > { %v891_v13 = vmax.f32 %v889_v11, %v890_v12 }
 0x44b   : > { %v892_v15 = vrot.slane %v891_v13, 2 }
 0x44d   : > { %v893_v16 = vmax.f32 %v891_v13, %v892_v15 }
 0x44f   : > { %v894_v17 = vrot.slane %v893_v16, 1 }
 0x451   : > { %v895_v18 = vmax.f32 %v893_v16, %v894_v17 }
 0x453   : > { %v896_v19 = vsub.f32 %v888_v9, %v895_v18  ;;  %v775_v20 = vpop.f32.mrb[4].mxu1 }
 0x454   : > { %v779_v21 = vmul.f32 0.5, %v775_v20  ;;  %v3012_v22 = vpop.f32.mrb[5].mxu1 }
 0x455   : > { %v897_v23 = vmul.f32 1.442695, %v896_v19 }
 0x456   : > { %v781_v24 = vsel %vm780_vm15, %v779_v21, -inf }
 0x457   : > { %3305 = vpow2.f32 %v897_v23  ;;  %v782_v25 = vrot.slane %v781_v24, 4 }
 0x459   : > { %v783_v26 = vmax.f32 %v781_v24, %v782_v25 }
 0x45b   : > { %v784_v27 = vrot.slane %v783_v26, 2 }
 0x45d   : > { %v785_v28 = vmax.f32 %v783_v26, %v784_v27 }
 0x45f   : > { %v786_v29 = vrot.slane %v785_v28, 1 }
 0x461   : > { %v3306_v32 = vpop.eup %3305  ;;  %v787_v33 = vmax.f32 %v785_v28, %v786_v29 }
 0x462   : > { %v899_v34 = vsel %vm780_vm15, %v3306_v32, 0.0  ;;  %v990_v35 = vpop.permute.xlu0 %989 }
 0x463   : > { %v900_v37 = vrot.slane %v899_v34, 4  ;;  %v788_v39 = vsub.f32 %v779_v21, %v787_v33  ;;  %3024 = vmatpush3.msk.msra.mxu0 %vm915_vm14, %v990_v35 }
 0x464   : > { %3033 = vmatprep.subr.mxu0 %v3353_v6 }
 0x465   : > { %v901_v40 = vadd.f32 %v900_v37, %v899_v34  ;;  %v789_v41 = vmul.f32 1.442695, %v788_v39 }
 0x466   : > { %v1176_v10 = vpop.permute.xlu1 %1175 }
 0x467   : > { %v902_v42 = vrot.slane %v901_v40, 2  ;;  %3307 = vpow2.f32 %v789_v41 }
 0x469   : > { %v903_v45 = vadd.f32 %v902_v42, %v901_v40 }
 0x46b   : > { %v904_v46 = vrot.slane %v903_v45, 1 }
 0x46d   : > { %v905_v50 = vadd.f32 %v904_v46, %v903_v45 }
 0x46f   : > { %3309 = vrcp.f32 %v905_v50 }
 0x471   : > { %v3308_v51 = vpop.eup %3307 }
 0x472   : > { %v791_v52 = vsel %vm780_vm15, %v3308_v51, 0.0 }
 0x473   : > { %v792_v54 = vrot.slane %v791_v52, 4 }
 0x475   : > { %v793_v56 = vadd.f32 %v792_v54, %v791_v52 }
 0x477   : > { %v794_v58 = vrot.slane %v793_v56, 2 }
 0x479   : > { %v3310_v59 = vpop.eup %3309  ;;  %v795_v60 = vadd.f32 %v794_v58, %v793_v56 }
 0x47a   : > { %v907_v61 = vmul.f32 %v3310_v59, %v3306_v32 }
 0x47b   : > { %v796_v1 = vrot.slane %v795_v60, 1 }
 0x47c   : > { %3021 = vmatmul.mubr.msk.f32.vlgmr.msra.gmra.mrb[6].mxu1 %vm911_vm1, %v907_v61 }
 0x47d   : > { %v797_v5 = vadd.f32 %v796_v1, %v795_v60  ;;  %3029 = vmatpush3.xpose.msk.msra.mxu1 %vm617_vm7, %v1078_v62  ;;  %3030 = vmatprep.mubr.msk.f32.mxu1 %vm3352_vm0, %v3353_v6  ;;  %v1253_v62 = vmul.f32 %v3524_v44, %v3539_v49 }
 0x47e   : > { %3038 = vmatprep.subr.mxu1 %v3353_v6 }
 0x47f   : > { %3311 = vrcp.f32 %v797_v5 }
 0x480   : > { %3031 = vmatmul.mubr.msk.f32.vlgmr.msra.gmra.mrb[8].mxu1 %vm617_vm7, %v1066_v7 }
 0x481   : > { %3039 = vmatpush3.xpose.msk.msra.mxu1 %vm617_vm7, %v3583_v63  ;;  %3040 = vmatprep.mubr.msk.f32.mxu1 %vm3352_vm0, %v3353_v6 }
 0x482   : > { %3217 = vmatprep.subr.bf16.mxu1 %v3351_v3 }
 0x484   : > { %3041 = vmatmul.mubr.msk.f32.vlgmr.msra.gmra.mrb[10].mxu1 %vm617_vm7, %v1253_v62 }
 0x485   : > { %3056 = vmatprep.mubr.msk.f32.mxu1 %vm3352_vm0, %v3353_v6 }
 0x489   : > { %v3312_v8 = vpop.eup %3311 }
 0x48a   : > { %v799_v9 = vmul.f32 %v3312_v8, %v3308_v51 }
 0x48c   : > { %3026 = vmatmul.mubr.msk.f32.vlgmr.msra.gmra.mrb[2].mxu0 %vm911_vm1, %v799_v9 }
 0x48d   : > { %3034 = vmatpush3.msk.msra.mxu0 %vm915_vm14, %v1176_v10  ;;  %3035 = vmatprep.mubr.msk.f32.mxu0 %vm3352_vm0, %v3353_v6 }
 0x48e   : > { %3043 = vmatprep.subr.mxu0 %v3353_v6 }
 0x54f   : > { %v984_v44 = vpop.f32.mrb[6].mxu1 }
 0x550   : > { %v3022_v63 = vpop.f32.mrb[7].mxu1 }
 0x553   : > { %v1150_v11 = vpop.f32.mrb[8].mxu1 }
 0x554   : > { %v1154_v12 = vmul.f32 0.5, %v1150_v11  ;;  %v3032_v13 = vpop.f32.mrb[9].mxu1 }
 0x556   : > { %v1155_v15 = vsel %vm780_vm15, %v1154_v12, -inf }
 0x557   : > { %v1156_v16 = vrot.slane %v1155_v15, 4  ;;  %v1337_v17 = vpop.f32.mrb[10].mxu1 }
 0x558   : > { %v1341_v18 = vmul.f32 0.5, %v1337_v17  ;;  %v3042_v19 = vpop.f32.mrb[11].mxu1 }
 0x559   : > { %v1157_v20 = vmax.f32 %v1155_v15, %v1156_v16 }
 0x55a   : > { %v1342_v21 = vsel %vm780_vm15, %v1341_v18, -inf }
 0x55b   : > { %v1158_v22 = vrot.slane %v1157_v20, 2  ;;  %v1343_v23 = vrot.slane %v1342_v21, 4 }
 0x55d   : > { %v1159_v24 = vmax.f32 %v1157_v20, %v1158_v22  ;;  %v1344_v25 = vmax.f32 %v1342_v21, %v1343_v23 }
 0x55f   : > { %v1160_v26 = vrot.slane %v1159_v24, 1  ;;  %v1345_v27 = vrot.slane %v1344_v25, 2  ;;  %v1062_v28 = vpop.f32.mrb[2].mxu0 }
 0x560   : > { %v1063_v29 = vadd.f32 %v1062_v28, %v984_v44  ;;  %v3027_v32 = vpop.f32.mrb[3].mxu0  ;;  %v1363_v44 = vpop.permute.xlu0 %1362  ;;  %v562_v28 = vld [vmem:[%s3974_s7 + $0x10] sm:$0xff] }
 0x561   : > { %v1161_v33 = vmax.f32 %v1159_v24, %v1160_v26  ;;  %v1346_v34 = vmax.f32 %v1344_v25, %v1345_v27  ;;  %v560_v26 = vld [vmem:[%s3974_s7] sm:$0xff] }
 0x563   : > { %v1162_v35 = vsub.f32 %v1154_v12, %v1161_v33  ;;  %v1347_v37 = vrot.slane %v1346_v34, 1  ;;  %v565_v33 = vld [vmem:[%s3976_s9] sm:$0xff] }
 0x565   : > { %v1163_v39 = vmul.f32 1.442695, %v1162_v35  ;;  %v1348_v40 = vmax.f32 %v1346_v34, %v1347_v37  ;;  %v566_v34 = vld [vmem:[%s3976_s9 + $0x8] sm:$0xff]  ;;  %v567_v35 = vld [vmem:[%s3976_s9 + $0x10] sm:$0xff] }
 0x566   : > { %v3224_v37 = vpack.c.bf16 %v566_v34, %v565_v33  ;;  %v2833_v33 = vld [vmem:[%s3972_s5 + $0x38] sm:$0xff] }
 0x567   : > { %3313 = vpow2.f32 %v1163_v39  ;;  %v1349_v41 = vsub.f32 %v1341_v18, %v1348_v40  ;;  %v568_v39 = vld [vmem:[%s3976_s9 + $0x18] sm:$0xff] }
 0x568   : > { %v3227_v40 = vpack.c.bf16 %v568_v39, %v567_v35 }
 0x569   : > { %v1350_v42 = vmul.f32 1.442695, %v1349_v41  ;;  %v569_v41 = vld [vmem:[%s3976_s9 + $0x20] sm:$0xff] }
 0x56b   : > { %3315 = vpow2.f32 %v1350_v42  ;;  %v570_v42 = vld [vmem:[%s3976_s9 + $0x28] sm:$0xff] }
 0x571   : > { %v3314_v45 = vpop.eup %3313 }
 0x572   : > { %v1165_v46 = vsel %vm780_vm15, %v3314_v45, 0.0 }
 0x573   : > { %v1166_v50 = vrot.slane %v1165_v46, 4 }
 0x575   : > { %v3316_v51 = vpop.eup %3315  ;;  %v1167_v52 = vadd.f32 %v1166_v50, %v1165_v46  ;;  %v571_v46 = vld [vmem:[%s3976_s9 + $0x30] sm:$0xff]  ;;  %v572_v50 = vld [vmem:[%s3976_s9 + $0x38] sm:$0xff] }
 0x576   : > { %v1352_v54 = vsel %vm780_vm15, %v3316_v51, 0.0 }
 0x577   : > { %v1168_v56 = vrot.slane %v1167_v52, 2  ;;  %v1353_v58 = vrot.slane %v1352_v54, 4 }
 0x579   : > { %v1169_v59 = vadd.f32 %v1168_v56, %v1167_v52  ;;  %v1354_v60 = vadd.f32 %v1353_v58, %v1352_v54  ;;  %v573_v52 = vld [vmem:[%s3976_s9 + $0x40] sm:$0xff]  ;;  %v574_v54 = vld [vmem:[%s3976_s9 + $0x48] sm:$0xff]  ;;  %v575_v58 = vld [vmem:[%s3976_s9 + $0x50] sm:$0xff] }
 0x57a   : > { %v3236_v56 = vpack.c.bf16 %v574_v54, %v573_v52 }
 0x57b   : > { %v1170_v61 = vrot.slane %v1169_v59, 1  ;;  %v1355_v1 = vrot.slane %v1354_v60, 2 }
 0x57d   : > { %v1171_v5 = vadd.f32 %v1170_v61, %v1169_v59  ;;  %v1356_v7 = vadd.f32 %v1355_v1, %v1354_v60  ;;  %v576_v59 = vld [vmem:[%s3976_s9 + $0x58] sm:$0xff]  ;;  %v577_v61 = vld [vmem:[%s3976_s9 + $0x60] sm:$0xff]  ;;  %v578_v1 = vld [vmem:[%s3976_s9 + $0x68] sm:$0xff] }
 0x57e   : > { %v3239_v60 = vpack.c.bf16 %v576_v59, %v575_v58 }
 0x57f   : > { %3317 = vrcp.f32 %v1171_v5  ;;  %v1357_v62 = vrot.slane %v1356_v7, 1  ;;  %v3242_v5 = vpack.c.bf16 %v578_v1, %v577_v61 }
 0x581   : > { %v1358_v8 = vadd.f32 %v1357_v62, %v1356_v7 }
 0x583   : > { %3319 = vrcp.f32 %v1358_v8 }
 0x589   : > { %v3318_v9 = vpop.eup %3317 }
 0x58a   : > { %v1173_v10 = vmul.f32 %v3318_v9, %v3314_v45  ;;  %v3230_v45 = vpack.c.bf16 %v570_v42, %v569_v41  ;;  %v3755_v41 = vld [vmem:[%s3970_s3 + $0x1] ss:$0 sm:$0xff] }
 0x58c   : > { %3036 = vmatmul.mubr.msk.f32.vlgmr.msra.gmra.mrb[4].mxu0 %vm911_vm1, %v1173_v10 }
 0x58d   : > { %v3320_v63 = vpop.eup %3319  ;;  %3044 = vmatpush3.msk.msra.mxu0 %vm915_vm14, %v1363_v44  ;;  %3045 = vmatprep.mubr.msk.f32.mxu0 %vm3352_vm0, %v3353_v6 }
 0x58e   : > { %v1360_v11 = vmul.f32 %v3320_v63, %v3316_v51  ;;  %3223 = vmatprep.subr.bf16.mxu0 %v3351_v3  ;;  %v3233_v51 = vpack.c.bf16 %v572_v50, %v571_v46 }
 0x590   : > { %3046 = vmatmul.mubr.msk.f32.vlgmr.msra.gmra.mrb[6].mxu0 %vm911_vm1, %v1360_v11  ;;  %v579_v11 = vld [vmem:[%s3976_s9 + $0x70] sm:$0xff] }
 0x591   : > { %3091 = vmatprep.mubr.msk.f32.mxu0 %vm3352_vm0, %v3353_v6  ;;  %3225 = vmatpush3.bf16.msra.mxu0 %v3224_v37 }
 0x592   : > { %3226 = vmatprep.subr.bf16.mxu0 %v3351_v3 }
 0x595   : > { %3228 = vmatpush3.bf16.msra.mxu0 %v3227_v40 }
 0x596   : > { %3229 = vmatprep.subr.bf16.mxu0 %v3351_v3 }
 0x599   : > { %3231 = vmatpush3.bf16.msra.mxu0 %v3230_v45  ;;  %v3760_v45 = vld [vmem:[%s3971_s4 + $0x1] ss:$0 sm:$0xff] }
 0x59a   : > { %3232 = vmatprep.subr.bf16.mxu0 %v3351_v3 }
 0x59d   : > { %3234 = vmatpush3.bf16.msra.mxu0 %v3233_v51  ;;  %v2859_v51 = vld [vmem:[%s3973_s6 + $0x1] ss:$0 sm:$0xff] }
 0x59e   : > { %3235 = vmatprep.subr.bf16.mxu0 %v3351_v3 }
 0x5a1   : > { %3237 = vmatpush3.bf16.msra.mxu0 %v3236_v56 }
 0x5a2   : > { %3238 = vmatprep.subr.bf16.mxu0 %v3351_v3 }
 0x5a5   : > { %3240 = vmatpush3.bf16.msra.mxu0 %v3239_v60 }
 0x5a6   : > { %3241 = vmatprep.subr.bf16.mxu0 %v3351_v3 }
 0x5a9   : > { %3243 = vmatpush3.bf16.msra.mxu0 %v3242_v5 }
 0x5aa   : > { %3244 = vmatprep.subr.bf16.mxu0 %v3351_v3 }
 0x65f   : > { %v1248_v12 = vpop.f32.mrb[4].mxu0 }
 0x660   : > { %v1252_v13 = vadd.f32 %v1248_v12, %v1063_v29  ;;  %v3037_v15 = vpop.f32.mrb[5].mxu0  ;;  %v563_v29 = vld [vmem:[%s3974_s7 + $0x18] sm:$0xff] }
 0x661   : > { %v3221_v32 = vpack.c.bf16 %v563_v29, %v562_v28  ;;  %v580_v12 = vld [vmem:[%s3976_s9 + $0x78] sm:$0xff]  ;;  %v2830_v28 = vld [vmem:[%s3972_s5 + $0x20] sm:$0xff] }
 0x663   : > { %v1435_v16 = vpop.f32.mrb[6].mxu0 }
 0x664   : > { %v1439_v17 = vadd.f32 %v1435_v16, %v1252_v13  ;;  %v3047_v18 = vpop.f32.mrb[7].mxu0  ;;  %v3245_v13 = vpack.c.bf16 %v580_v12, %v579_v11 }
 0x666   : > { %v3642_v19 = vadd.f32 %v1439_v17, %v3474_v14  ;;  %v561_v14 = vld [vmem:[%s3974_s7 + $0x8] sm:$0xff]  ;;  %3246 = vmatpush3.bf16.msra.mxu0 %v3245_v13  ;;  %v2827_v17 = vld [vmem:[%s3977_s10] ss:$0 sm:$0xff] }
 0x667   : > { %v3218_v27 = vpack.c.bf16 %v561_v14, %v560_v26  ;;  %3130 = vmatprep.subr.mxu0 %v3353_v6 }
 0x668   : > { %v1441_v20 = vsel %vm582_vm2, %v3642_v19, 0.0 }
 0x669   : > { %1442 = vadd.xlane.f32.xlu1 %v1441_v20  ;;  %3219 = vmatpush3.bf16.msra.mxu1 %v3218_v27 }
 0x66a   : > { %3220 = vmatprep.subr.bf16.mxu1 %v3351_v3 }
 0x66d   : > { %3222 = vmatpush3.bf16.msra.mxu1 %v3221_v32  ;;  %v2832_v32 = vld [vmem:[%s3972_s5 + $0x30] sm:$0xff] }
 0x66e   : > { %3247 = vmatprep.subr.bf16.mxu1 %v3351_v3  ;;  %v3251_v34 = vpack.c.bf16 %v2833_v33, %v2832_v32 }
 0x6f6   : > { %v1443_v21 = vpop.xlane.xlu1 %1442 }
 0x6f7   : > { %v1444_v22 = vmul.f32 0.03125, %v1443_v21 }
 0x6f9   : > { %v1445_v23 = vsub.f32 %v3642_v19, %v1444_v22 }
 0x6fb   : > { %v1446_v24 = vmul.f32 %v1445_v23, %v1445_v23 }
 0x6fd   : > { %v1447_v25 = vsel %vm582_vm2, %v1446_v24, 0.0 }
 0x6fe   : > { %1448 = vadd.xlane.f32.xlu0 %v1447_v25 }
 0x78b   : > { %v1449_v7 = vpop.xlane.xlu0 %1448 }
 0x78c   : > { %v1450_v62 = vmul.f32 0.03125, %v1449_v7 }
 0x78e   : > { %v1451_v8 = vadd.f32 1e-05, %v1450_v62 }
 0x790   : > { %3321 = vrsqrt.f32 %v1451_v8 }
 0x79a   : > { %v3322_v9 = vpop.eup %3321 }
 0x79b   : > { %v1453_v10 = vmul.f32 %v3322_v9, %v1445_v23 }
 0x79d   : > { %v1454_v44 = vmul.f32 %v3507_v36, %v1453_v10  ;;  %v2825_v36 = vld [vmem:[%s3975_s8] ss:$0 sm:$0xff] }
 0x79f   : > { %v1455_v63 = vadd.f32 %v3512_v38, %v1454_v44 }
 0x7a1   : > { %3057 = vmatmul.mubr.msk.f32.vlgmr.msra.gmra.mrb[12].mxu1 %vm617_vm7, %v1455_v63 }
 0x7a2   : > { %3102 = vmatprep.mubr.msk.f32.mxu1 %vm3352_vm0, %v3353_v6 }
 0x874   : > { %v1531_v38 = vpop.f32.mrb[12].mxu1 }
 0x875   : > { %v1532_v15 = vadd.f32 %v2825_v36, %v1531_v38  ;;  %v3058_v16 = vpop.f32.mrb[13].mxu1 }
 0x877   : > { %3092 = vmatmul.mubr.f32.vlgmr.msra.gmra.mrb[8].mxu0 %v1532_v15 }
 0x878   : > { %3132 = vmatprep.mubr.msk.f32.mxu0 %vm3352_vm0, %v3353_v6 }
 0x94a   : > { %v1607_v18 = vpop.f32.mrb[8].mxu0 }
 0x94b   : > { %v1608_v20 = vadd.f32 %v2827_v17, %v1607_v18  ;;  %v3093_v21 = vpop.f32.mrb[9].mxu0 }
 0x94d   : > { %v3732_v22 = vadd.f32 %v1608_v20, %v3642_v19  ;;  %v2831_v19 = vld [vmem:[%s3972_s5 + $0x28] sm:$0xff] }
 0x94e   : > { %v3248_v29 = vpack.c.bf16 %v2831_v19, %v2830_v28 }
 0x94f   : > { %v1649_v23 = vsel %vm582_vm2, %v3732_v22, 0.0 }
 0x950   : > { %1650 = vadd.xlane.f32.xlu0 %v1649_v23  ;;  %3249 = vmatpush3.bf16.msra.mxu1 %v3248_v29 }
 0x951   : > { %3250 = vmatprep.subr.bf16.mxu1 %v3351_v3 }
 0x954   : > { %3252 = vmatpush3.bf16.msra.mxu1 %v3251_v34 }
 0x955   : > { %3105 = vmatprep.subr.mxu1 %v3353_v6 }
 0x9dd   : > { %v1651_v24 = vpop.xlane.xlu0 %1650 }
 0x9de   : > { %v1652_v25 = vmul.f32 0.03125, %v1651_v24 }
 0x9e0   : > { %v1653_v26 = vsub.f32 %v3732_v22, %v1652_v25 }
 0x9e2   : > { %v1654_v14 = vmul.f32 %v1653_v26, %v1653_v26 }
 0x9e4   : > { %v1655_v27 = vsel %vm582_vm2, %v1654_v14, 0.0 }
 0x9e5   : > { %1656 = vadd.xlane.f32.xlu1 %v1655_v27 }
 0xa72   : > { %v1657_v35 = vpop.xlane.xlu1 %1656 }
 0xa73   : > { %v1658_v37 = vmul.f32 0.03125, %v1657_v35 }
 0xa75   : > { %v1659_v39 = vadd.f32 1e-05, %v1658_v37 }
 0xa77   : > { %3323 = vrsqrt.f32 %v1659_v39 }
 0xa81   : > { %v3324_v40 = vpop.eup %3323 }
 0xa82   : > { %v1661_v42 = vmul.f32 %v3324_v40, %v1653_v26 }
 0xa84   : > { %v1668_v46 = vmul.f32 %v3755_v41, %v1661_v42 }
 0xa86   : > { %v1675_v50 = vadd.f32 %v3760_v45, %v1668_v46 }
 0xa88   : > { %3103 = vmatmul.mubr.msk.f32.vlgmr.msra.gmra.mrb[14].mxu1 %vm617_vm7, %v1675_v50 }
 0xa89   : > { %3107 = vmatprep.mubr.msk.f32.mxu1 %vm3352_vm0, %v3353_v6 }
 0xb5b   : > { %v1751_v52 = vpop.f32.mrb[14].mxu1 }
 0xb5c   : > { %v3770_v54 = vadd.f32 %v2859_v51, %v1751_v52  ;;  %v3104_v56 = vpop.f32.mrb[15].mxu1 }
 0xb5e   : > { %v1857_v58 = vmul.f32 %v3770_v54, %v3522_v43  ;;  %v1756_v59 = vmul.f32 %v3770_v54, %v3536_v48  ;;  %v1858_v60 = vmul.f32 %v3770_v54, %v3550_v53  ;;  %v1757_v61 = vmul.f32 %v3770_v54, %v3585_v0 }
 0xb5f   : > { %v2114_v43 = vmul.f32 %v3770_v54, %v3558_v55  ;;  %v2294_v48 = vmul.f32 %v3770_v54, %v3563_v57  ;;  %v2115_v53 = vmul.f32 %v3770_v54, %v3590_v2  ;;  %v2295_v0 = vmul.f32 %v3770_v54, %v3592_v4 }
 0xb60   : > { %1860 = vrot.lane.b32.xlu1 %v1857_v58, %s3355_s30  ;;  %1759 = vrot.lane.b32.xlu0 %v1756_v59, %s3355_s30  ;;  %v1755_v55 = vmul.f32 %v3770_v54, %v3495_v30  ;;  %v1856_v2 = vmul.f32 %v3770_v54, %v3498_v31 }
 0xb64   : > { %1958 = vrot.lane.b32.xlu1 %v1858_v60, %s3356_s14  ;;  %2036 = vrot.lane.b32.xlu0 %v1757_v61, %s3356_s14 }
 0xb68   : > { %2117 = vrot.lane.b32.xlu1 %v2114_v43, %s3355_s30  ;;  %2297 = vrot.lane.b32.xlu0 %v2294_v48, %s3355_s30  ;;  %v2113_v43 = vmul.f32 %v3770_v54, %v3532_v47 }
 0xb6c   : > { %2215 = vrot.lane.b32.xlu1 %v2115_v53, %s3356_s14  ;;  %2395 = vrot.lane.b32.xlu0 %v2295_v0, %s3356_s14  ;;  %v2293_v53 = vmul.f32 %v3770_v54, %v3539_v49 }
 0xbd2   : > { %v1861_v1 = vpop.permute.xlu1 %1860  ;;  %v1760_v5 = vpop.permute.xlu0 %1759 }
 0xbd3   : > { %3106 = vmatpush3.xpose.msk.msra.mxu1 %vm617_vm7, %v1760_v5 }
 0xbd4   : > { %3110 = vmatprep.subr.mxu1 %v3353_v6 }
 0xbd6   : > { %v1959_v57 = vpop.permute.xlu1 %1958  ;;  %3108 = vmatmul.mubr.msk.f32.vlgmr.msra.gmra.mrb[16].mxu1 %vm617_vm7, %v1755_v55  ;;  %v2037_v60 = vpop.permute.xlu0 %2036 }
 0xbd7   : > { %3111 = vmatpush3.xpose.msk.msra.mxu1 %vm617_vm7, %v1861_v1  ;;  %3112 = vmatprep.mubr.msk.f32.mxu1 %vm3352_vm0, %v3353_v6 }
 0xbd8   : > { %3115 = vmatprep.subr.mxu1 %v3353_v6 }
 0xbda   : > { %v3807_v4 = vpop.permute.xlu1 %2117  ;;  %3113 = vmatmul.mubr.msk.f32.vlgmr.msra.gmra.mrb[18].mxu1 %vm617_vm7, %v1856_v2  ;;  %v2298_v48 = vpop.permute.xlu0 %2297 }
 0xbdb   : > { %3116 = vmatpush3.msk.msra.mxu1 %vm915_vm14, %v1959_v57  ;;  %3117 = vmatprep.mubr.msk.f32.mxu1 %vm3352_vm0, %v3353_v6 }
 0xbdc   : > { %3120 = vmatprep.subr.mxu1 %v3353_v6 }
 0xbde   : > { %v2216_v30 = vpop.permute.xlu1 %2215 }
 0xbdf   : > { %3131 = vmatpush3.msk.msra.mxu0 %vm915_vm14, %v2216_v30 }
 0xbe0   : > { %3140 = vmatprep.subr.mxu0 %v3353_v6 }
 0xca9   : > { %v1832_v7 = vpop.f32.mrb[16].mxu1 }
 0xcaa   : > { %v1836_v31 = vmul.f32 0.5, %v1832_v7  ;;  %v3109_v62 = vpop.f32.mrb[17].mxu1 }
 0xcac   : > { %v1837_v8 = vsel %vm780_vm15, %v1836_v31, -inf }
 0xcad   : > { %v1838_v9 = vrot.slane %v1837_v8, 4  ;;  %v1933_v10 = vpop.f32.mrb[18].mxu1 }
 0xcae   : > { %v1937_v44 = vmul.f32 0.5, %v1933_v10  ;;  %v3114_v63 = vpop.f32.mrb[19].mxu1 }
 0xcaf   : > { %v1839_v11 = vmax.f32 %v1837_v8, %v1838_v9 }
 0xcb0   : > { %v1938_v12 = vsel %vm780_vm15, %v1937_v44, -inf }
 0xcb1   : > { %v1840_v13 = vrot.slane %v1839_v11, 2  ;;  %v1939_v36 = vrot.slane %v1938_v12, 4 }
 0xcb3   : > { %v1841_v38 = vmax.f32 %v1839_v11, %v1840_v13  ;;  %v1940_v15 = vmax.f32 %v1938_v12, %v1939_v36 }
 0xcb5   : > { %v1842_v16 = vrot.slane %v1841_v38, 1  ;;  %v1941_v17 = vrot.slane %v1940_v15, 2 }
 0xcb7   : > { %v1843_v18 = vmax.f32 %v1841_v38, %v1842_v16  ;;  %v1942_v20 = vmax.f32 %v1940_v15, %v1941_v17 }
 0xcb9   : > { %v1844_v21 = vsub.f32 %v1836_v31, %v1843_v18  ;;  %v1943_v23 = vrot.slane %v1942_v20, 1 }
 0xcbb   : > { %v1845_v24 = vmul.f32 1.442695, %v1844_v21  ;;  %v1944_v25 = vmax.f32 %v1942_v20, %v1943_v23 }
 0xcbd   : > { %3325 = vpow2.f32 %v1845_v24  ;;  %v1945_v26 = vsub.f32 %v1937_v44, %v1944_v25 }
 0xcbf   : > { %v1946_v14 = vmul.f32 1.442695, %v1945_v26 }
 0xcc1   : > { %3327 = vpow2.f32 %v1946_v14 }
 0xcc7   : > { %v3326_v27 = vpop.eup %3325 }
 0xcc8   : > { %v1847_v28 = vsel %vm780_vm15, %v3326_v27, 0.0 }
 0xcc9   : > { %v1848_v19 = vrot.slane %v1847_v28, 4 }
 0xccb   : > { %v3328_v29 = vpop.eup %3327  ;;  %v1849_v32 = vadd.f32 %v1848_v19, %v1847_v28 }
 0xccc   : > { %v1948_v33 = vsel %vm780_vm15, %v3328_v29, 0.0 }
 0xccd   : > { %v1850_v34 = vrot.slane %v1849_v32, 2  ;;  %v1949_v35 = vrot.slane %v1948_v33, 4 }
 0xccf   : > { %v1851_v37 = vadd.f32 %v1850_v34, %v1849_v32  ;;  %v1950_v39 = vadd.f32 %v1949_v35, %v1948_v33 }
 0xcd1   : > { %v1951_v40 = vrot.slane %v1950_v39, 2  ;;  %v1852_v42 = vrot.slane %v1851_v37, 1 }
 0xcd3   : > { %v1952_v46 = vadd.f32 %v1951_v40, %v1950_v39  ;;  %v1853_v51 = vadd.f32 %v1852_v42, %v1851_v37 }
 0xcd5   : > { %v1953_v50 = vrot.slane %v1952_v46, 1 }
 0xcd7   : > { %v1954_v52 = vadd.f32 %v1953_v50, %v1952_v46  ;;  %v2396_v46 = vpop.permute.xlu0 %2395 }
 0xcd9   : > { %3329 = vrcp.f32 %v1954_v52 }
 0xcda   : > { %3331 = vrcp.f32 %v1853_v51 }
 0xce3   : > { %v3330_v56 = vpop.eup %3329 }
 0xce4   : > { %v1956_v58 = vmul.f32 %v3330_v56, %v3328_v29  ;;  %v3332_v59 = vpop.eup %3331 }
 0xce5   : > { %v1855_v61 = vmul.f32 %v3332_v59, %v3326_v27 }
 0xce6   : > { %3118 = vmatmul.mubr.msk.f32.vlgmr.msra.gmra.mrb[20].mxu1 %vm911_vm1, %v1956_v58 }
 0xce7   : > { %3121 = vmatpush3.msk.msra.mxu1 %vm915_vm14, %v2037_v60  ;;  %3122 = vmatprep.mubr.msk.f32.mxu1 %vm3352_vm0, %v3353_v6 }
 0xce8   : > { %3125 = vmatprep.subr.mxu1 %v3353_v6 }
 0xcea   : > { %3123 = vmatmul.mubr.msk.f32.vlgmr.msra.gmra.mrb[22].mxu1 %vm911_vm1, %v1855_v61 }
 0xceb   : > { %3127 = vmatprep.mubr.msk.f32.mxu1 %vm3352_vm0, %v3353_v6 }
 0xcee   : > { %3126 = vmatpush3.xpose.msk.msra.mxu1 %vm617_vm7, %v3807_v4 }
 0xcef   : > { %3135 = vmatprep.subr.mxu1 %v3353_v6 }
 0xcf1   : > { %3128 = vmatmul.mubr.msk.f32.vlgmr.msra.gmra.mrb[24].mxu1 %vm617_vm7, %v2113_v43 }
 0xcf2   : > { %3136 = vmatpush3.xpose.msk.msra.mxu1 %vm617_vm7, %v2298_v48  ;;  %3137 = vmatprep.mubr.msk.f32.mxu1 %vm3352_vm0, %v3353_v6 }
 0xcf3   : > { %3253 = vmatprep.subr.bf16.mxu1 %v3351_v3 }
 0xcf5   : > { %3138 = vmatmul.mubr.msk.f32.vlgmr.msra.gmra.mrb[26].mxu1 %vm617_vm7, %v2293_v53 }
 0xcf6   : > { %3153 = vmatprep.mubr.msk.f32.mxu1 %vm3352_vm0, %v3353_v6 }
 0xdb9   : > { %v2031_v47 = vpop.f32.mrb[20].mxu1 }
 0xdba   : > { %v3119_v0 = vpop.f32.mrb[21].mxu1 }
 0xdbd   : > { %v2109_v1 = vpop.f32.mrb[22].mxu1 }
 0xdbe   : > { %v2110_v5 = vadd.f32 %v2109_v1, %v2031_v47  ;;  %v3124_v55 = vpop.f32.mrb[23].mxu1 }
 0xdc4   : > { %v2190_v57 = vpop.f32.mrb[24].mxu1 }
 0xdc5   : > { %v2194_v2 = vmul.f32 0.5, %v2190_v57  ;;  %v3129_v4 = vpop.f32.mrb[25].mxu1 }
 0xdc6   : > { %v2838_v4 = vld [vmem:[%s3974_s7 + $0x38] sm:$0xff] }
 0xdc7   : > { %v2195_v30 = vsel %vm780_vm15, %v2194_v2, -inf }
 0xdc8   : > { %v2196_v7 = vrot.slane %v2195_v30, 4  ;;  %v2370_v31 = vpop.f32.mrb[26].mxu1 }
 0xdc9   : > { %v2374_v49 = vmul.f32 0.5, %v2370_v31  ;;  %v3139_v54 = vpop.f32.mrb[27].mxu1  ;;  %v2841_v31 = vld [vmem:[%s3976_s9 + $0x88] sm:$0xff] }
 0xdca   : > { %v2197_v62 = vmax.f32 %v2195_v30, %v2196_v7  ;;  %v2840_v7 = vld [vmem:[%s3976_s9 + $0x80] sm:$0xff] }
 0xdcb   : > { %v2375_v8 = vsel %vm780_vm15, %v2374_v49, -inf  ;;  %v3260_v54 = vpack.c.bf16 %v2841_v31, %v2840_v7 }
 0xdcc   : > { %v2198_v9 = vrot.slane %v2197_v62, 2  ;;  %v2376_v10 = vrot.slane %v2375_v8, 4 }
 0xdce   : > { %v2199_v44 = vmax.f32 %v2197_v62, %v2198_v9  ;;  %v2377_v63 = vmax.f32 %v2375_v8, %v2376_v10  ;;  %v2843_v62 = vld [vmem:[%s3976_s9 + $0x98] sm:$0xff]  ;;  %v2844_v9 = vld [vmem:[%s3976_s9 + $0xa0] sm:$0xff]  ;;  %v2845_v10 = vld [vmem:[%s3976_s9 + $0xa8] sm:$0xff] }
 0xdd0   : > { %v2200_v11 = vrot.slane %v2199_v44, 1  ;;  %v2378_v12 = vrot.slane %v2377_v63, 2 }
 0xdd2   : > { %v2201_v13 = vmax.f32 %v2199_v44, %v2200_v11  ;;  %v2379_v36 = vmax.f32 %v2377_v63, %v2378_v12  ;;  %v3266_v44 = vpack.c.bf16 %v2845_v10, %v2844_v9  ;;  %v2846_v63 = vld [vmem:[%s3976_s9 + $0xb0] sm:$0xff]  ;;  %v2847_v11 = vld [vmem:[%s3976_s9 + $0xb8] sm:$0xff] }
 0xdd3   : > { %v3269_v12 = vpack.c.bf16 %v2847_v11, %v2846_v63 }
 0xdd4   : > { %v2202_v38 = vsub.f32 %v2194_v2, %v2201_v13  ;;  %v2380_v15 = vrot.slane %v2379_v36, 1  ;;  %v2837_v2 = vld [vmem:[%s3974_s7 + $0x30] sm:$0xff]  ;;  %v2848_v13 = vld [vmem:[%s3976_s9 + $0xc0] sm:$0xff] }
 0xdd5   : > { %v3257_v30 = vpack.c.bf16 %v2838_v4, %v2837_v2 }
 0xdd6   : > { %v2203_v16 = vmul.f32 1.442695, %v2202_v38  ;;  %v2381_v17 = vmax.f32 %v2379_v36, %v2380_v15  ;;  %v2849_v36 = vld [vmem:[%s3976_s9 + $0xc8] sm:$0xff]  ;;  %v2850_v15 = vld [vmem:[%s3976_s9 + $0xd0] sm:$0xff] }
 0xdd7   : > { %v3272_v38 = vpack.c.bf16 %v2849_v36, %v2848_v13 }
 0xdd8   : > { %3333 = vpow2.f32 %v2203_v16  ;;  %v2382_v18 = vsub.f32 %v2374_v49, %v2381_v17  ;;  %v2842_v49 = vld [vmem:[%s3976_s9 + $0x90] sm:$0xff]  ;;  %v2851_v16 = vld [vmem:[%s3976_s9 + $0xd8] sm:$0xff] }
 0xdd9   : > { %v3263_v8 = vpack.c.bf16 %v2843_v62, %v2842_v49  ;;  %v3275_v17 = vpack.c.bf16 %v2851_v16, %v2850_v15 }
 0xdda   : > { %v2383_v20 = vmul.f32 1.442695, %v2382_v18  ;;  %v2852_v18 = vld [vmem:[%s3976_s9 + $0xe0] sm:$0xff] }
 0xddc   : > { %3335 = vpow2.f32 %v2383_v20  ;;  %v2853_v20 = vld [vmem:[%s3976_s9 + $0xe8] sm:$0xff] }
 0xde2   : > { %v3334_v21 = vpop.eup %3333 }
 0xde3   : > { %v2205_v23 = vsel %vm780_vm15, %v3334_v21, 0.0 }
 0xde4   : > { %v2206_v24 = vrot.slane %v2205_v23, 4 }
 0xde6   : > { %v3336_v25 = vpop.eup %3335  ;;  %v2207_v26 = vadd.f32 %v2206_v24, %v2205_v23 }
 0xde7   : > { %v2385_v14 = vsel %vm780_vm15, %v3336_v25, 0.0 }
 0xde8   : > { %v2208_v27 = vrot.slane %v2207_v26, 2  ;;  %v2386_v28 = vrot.slane %v2385_v14, 4 }
 0xdea   : > { %v2209_v19 = vadd.f32 %v2208_v27, %v2207_v26  ;;  %v2387_v29 = vadd.f32 %v2386_v28, %v2385_v14 }
 0xdec   : > { %v2210_v32 = vrot.slane %v2209_v19, 1  ;;  %v2388_v33 = vrot.slane %v2387_v29, 2 }
 0xdee   : > { %v2211_v34 = vadd.f32 %v2210_v32, %v2209_v19  ;;  %v2389_v35 = vadd.f32 %v2388_v33, %v2387_v29  ;;  %v2854_v19 = vld [vmem:[%s3976_s9 + $0xf0] sm:$0xff]  ;;  %v2855_v29 = vld [vmem:[%s3976_s9 + $0xf8] sm:$0xff] }
 0xdef   : > { %v3281_v32 = vpack.c.bf16 %v2855_v29, %v2854_v19 }
 0xdf0   : > { %3337 = vrcp.f32 %v2211_v34  ;;  %v2390_v37 = vrot.slane %v2389_v35, 1 }
 0xdf2   : > { %v2391_v39 = vadd.f32 %v2390_v37, %v2389_v35 }
 0xdf4   : > { %3339 = vrcp.f32 %v2391_v39  ;;  %v2647_v39 = vld [vmem:[%s3978_s11 + $0x10] sm:$0xff] }
 0xdfa   : > { %v3338_v40 = vpop.eup %3337 }
 0xdfb   : > { %v2213_v42 = vmul.f32 %v3338_v40, %v3334_v21  ;;  %v3278_v21 = vpack.c.bf16 %v2853_v20, %v2852_v18  ;;  %v2648_v40 = vld [vmem:[%s3978_s11 + $0x18] sm:$0xff] }
 0xdfd   : > { %3133 = vmatmul.mubr.msk.f32.vlgmr.msra.gmra.mrb[10].mxu0 %vm911_vm1, %v2213_v42  ;;  %v3287_v42 = vpack.c.bf16 %v2648_v40, %v2647_v39 }
 0xdfe   : > { %v3340_v50 = vpop.eup %3339  ;;  %3141 = vmatpush3.msk.msra.mxu0 %vm915_vm14, %v2396_v46  ;;  %3142 = vmatprep.mubr.msk.f32.mxu0 %vm3352_vm0, %v3353_v6 }
 0xdff   : > { %v2393_v51 = vmul.f32 %v3340_v50, %v3336_v25  ;;  %3259 = vmatprep.subr.bf16.mxu0 %v3351_v3 }
 0xe01   : > { %3143 = vmatmul.mubr.msk.f32.vlgmr.msra.gmra.mrb[12].mxu0 %vm911_vm1, %v2393_v51 }
 0xe02   : > { %3188 = vmatprep.mubr.msk.f32.mxu0 %vm3352_vm0, %v3353_v6  ;;  %3261 = vmatpush3.bf16.msra.mxu0 %v3260_v54 }
 0xe03   : > { %3262 = vmatprep.subr.bf16.mxu0 %v3351_v3 }
 0xe06   : > { %3264 = vmatpush3.bf16.msra.mxu0 %v3263_v8 }
 0xe07   : > { %3265 = vmatprep.subr.bf16.mxu0 %v3351_v3 }
 0xe0a   : > { %3267 = vmatpush3.bf16.msra.mxu0 %v3266_v44 }
 0xe0b   : > { %3268 = vmatprep.subr.bf16.mxu0 %v3351_v3 }
 0xe0e   : > { %3270 = vmatpush3.bf16.msra.mxu0 %v3269_v12 }
 0xe0f   : > { %3271 = vmatprep.subr.bf16.mxu0 %v3351_v3 }
 0xe12   : > { %3273 = vmatpush3.bf16.msra.mxu0 %v3272_v38 }
 0xe13   : > { %3274 = vmatprep.subr.bf16.mxu0 %v3351_v3 }
 0xe16   : > { %3276 = vmatpush3.bf16.msra.mxu0 %v3275_v17 }
 0xe17   : > { %3277 = vmatprep.subr.bf16.mxu0 %v3351_v3 }
 0xe1a   : > { %3279 = vmatpush3.bf16.msra.mxu0 %v3278_v21 }
 0xe1b   : > { %3280 = vmatprep.subr.bf16.mxu0 %v3351_v3 }
 0xe1e   : > { %3282 = vmatpush3.bf16.msra.mxu0 %v3281_v32 }
 0xed0   : > { %v2288_v52 = vpop.f32.mrb[10].mxu0 }
 0xed1   : > { %v2292_v56 = vadd.f32 %v2288_v52, %v2110_v5  ;;  %v3134_v58 = vpop.f32.mrb[11].mxu0  ;;  %v2835_v5 = vld [vmem:[%s3974_s7 + $0x20] sm:$0xff] }
 0xed4   : > { %v2468_v59 = vpop.f32.mrb[12].mxu0 }
 0xed5   : > { %v2472_v60 = vadd.f32 %v2468_v59, %v2292_v56  ;;  %v3144_v61 = vpop.f32.mrb[13].mxu0  ;;  %v2880_v56 = vld [vmem:[%s3979_s12] ss:$0 sm:$0xff] }
 0xed7   : > { %v3856_v43 = vadd.f32 %v2472_v60, %v3732_v22  ;;  %v2836_v22 = vld [vmem:[%s3974_s7 + $0x28] sm:$0xff] }
 0xed8   : > { %v3254_v57 = vpack.c.bf16 %v2836_v22, %v2835_v5 }
 0xed9   : > { %v2474_v48 = vsel %vm582_vm2, %v3856_v43, 0.0 }
 0xeda   : > { %2475 = vadd.xlane.f32.xlu1 %v2474_v48  ;;  %3255 = vmatpush3.bf16.msra.mxu1 %v3254_v57 }
 0xedb   : > { %3256 = vmatprep.subr.bf16.mxu1 %v3351_v3 }
 0xede   : > { %3258 = vmatpush3.bf16.msra.mxu1 %v3257_v30 }
 0xedf   : > { %3283 = vmatprep.subr.bf16.mxu1 %v3351_v3 }
 0xf67   : > { %v2476_v53 = vpop.xlane.xlu1 %2475 }
 0xf68   : > { %v2477_v47 = vmul.f32 0.03125, %v2476_v53 }
 0xf6a   : > { %v2478_v0 = vsub.f32 %v3856_v43, %v2477_v47 }
 0xf6c   : > { %v2479_v1 = vmul.f32 %v2478_v0, %v2478_v0 }
 0xf6e   : > { %v2480_v55 = vsel %vm582_vm2, %v2479_v1, 0.0 }
 0xf6f   : > { %2481 = vadd.xlane.f32.xlu0 %v2480_v55 }
 0xffc   : > { %v2482_v23 = vpop.xlane.xlu0 %2481 }
 0xffd   : > { %v2483_v24 = vmul.f32 0.03125, %v2482_v23 }
 0xfff   : > { %v2484_v25 = vadd.f32 1e-05, %v2483_v24 }
0x1001   : > { %3341 = vrsqrt.f32 %v2484_v25 }
0x100b   : > { %v3342_v26 = vpop.eup %3341 }
0x100c   : > { %v2486_v14 = vmul.f32 %v3342_v26, %v2478_v0 }
0x100e   : > { %v2487_v27 = vmul.f32 %v3755_v41, %v2486_v14  ;;  %v2645_v41 = vld [vmem:[%s3978_s11] sm:$0xff] }
0x1010   : > { %v2488_v28 = vadd.f32 %v3760_v45, %v2487_v27  ;;  %v2646_v45 = vld [vmem:[%s3978_s11 + $0x8] sm:$0xff] }
0x1011   : > { %v3284_v33 = vpack.c.bf16 %v2646_v45, %v2645_v41 }
0x1012   : > { %3154 = vmatmul.mubr.msk.f32.vlgmr.msra.gmra.mrb[28].mxu1 %vm617_vm7, %v2488_v28 }
0x1013   : > { %3199 = vmatprep.mubr.msk.f32.mxu1 %vm3352_vm0, %v3353_v6  ;;  %3285 = vmatpush3.bf16.msra.mxu1 %v3284_v33  ;;  %v2877_v6 = vld [vmem:[%s3975_s8 + $0x1] ss:$0 sm:$0xff]  ;;  %vm2729_vm0 = vcmask 126976  }
0x1014   : > { %3286 = vmatprep.subr.bf16.mxu1 %v3351_v3  ;;  %v2879_v3 = vld [vmem:[%s3977_s10 + $0x1] ss:$0 sm:$0xff] }
0x1017   : > { %3288 = vmatpush3.bf16.msra.mxu1 %v3287_v42 }
0x10e5   : > { %v2564_v34 = vpop.f32.mrb[28].mxu1 }
0x10e6   : > { %v2565_v35 = vadd.f32 %v2877_v6, %v2564_v34  ;;  %v3155_v37 = vpop.f32.mrb[29].mxu1 }
0x10e8   : > { %3189 = vmatmul.mubr.f32.vlgmr.msra.gmra.mrb[14].mxu0 %v2565_v35 }
0x11bb   : > { %v2640_v46 = vpop.f32.mrb[14].mxu0 }
0x11bc   : > { %v2641_v50 = vadd.f32 %v2879_v3, %v2640_v46  ;;  %v3190_v51 = vpop.f32.mrb[15].mxu0 }
0x11be   : > { %v2644_v52 = vadd.f32 %v2641_v50, %v3856_v43 }
0x11c0   : > { %3200 = vmatmul.mubr.msk.f32.vlgmr.msra.gmra.mrb[30].mxu1 %vm617_vm7, %v2644_v52 }
0x1293   : > { %v2725_v58 = vpop.f32.mrb[30].mxu1 }
0x1294   : > { %v2726_v59 = vadd.f32 %v2880_v56, %v2725_v58  ;;  %v3201_v60 = vpop.f32.mrb[31].mxu1 }
0x1296   : > { %2730 = vst.msk [vmem:[%s452_s17] sm:$0x1f] %vm2729_vm0, %v2726_v59 }
0x1297 PF: > { %s23_s25 = sadd.s32 1, %s3349_s25  }
0x1298   : > { %p20_p4 = scmp.ge.s32.totalorder %s23_s25, 4  }
0x129a   :  { %22 = sbr.rel (!%p20_p4) target bundleno = 1 (0x1), region = 113 }

// kernel: mae_forward.3
= control target key start
LH: loop header
LB: loop body
LE: loop exit
PB: predicated region body
PF: predicated region fallthrough
CT: control target
= control target key end

     0   :  { %s5985_s0 = inlined_call_operand.vmem [shape: f32[2,17,16], index: 0, kind: input, shape index: {}]   ;;  %s5986_s1 = inlined_call_operand.vmem [shape: f32[2,1,16], index: 1, kind: input, shape index: {}]   ;;  %s5987_s2 = inlined_call_operand.vmem [shape: f32[2,1,16], index: 2, kind: input, shape index: {}]   ;;  %s5988_s3 = inlined_call_operand.vmem [shape: f32[2,16,48], index: 3, kind: input, shape index: {}]   ;;  %s5989_s4 = inlined_call_operand.vmem [shape: f32[2,1,48], index: 4, kind: input, shape index: {}]   ;;  %s5990_s5 = inlined_call_operand.vmem [shape: f32[2,16,64], index: 5, kind: input, shape index: {}]   ;;  %s5991_s6 = inlined_call_operand.vmem [shape: f32[2,1,64], index: 6, kind: input, shape index: {}]   ;;  %s5992_s7 = inlined_call_operand.vmem [shape: f32[2,64,16], index: 7, kind: input, shape index: {}]   ;;  %s5993_s8 = inlined_call_operand.vmem [shape: f32[2,1,16], index: 8, kind: input, shape index: {}]   ;;  %s5994_s9 = inlined_call_operand.vmem [shape: f32[16,48], index: 9, kind: input, shape index: {}]   ;;  %s5995_s10 = inlined_call_operand.vmem [shape: f32[1,48], index: 10, kind: input, shape index: {}]   ;;  %s5996_s11 = inlined_call_operand.vmem [shape: f32[2,16,48], index: 11, kind: input, shape index: {}]   ;;  %s5997_s12 = inlined_call_operand.vmem [shape: f32[48,48], index: 12, kind: input, shape index: {}]   ;;  %s5998_s13 = inlined_call_operand.vmem [shape: f32[1,48], index: 13, kind: input, shape index: {}]   ;;  %s5999_s14 = inlined_call_operand.vmem [shape: f32[2,16,1], index: 14, kind: input, shape index: {}]   ;;  %s6000_s15 = inlined_call_operand.hbm [shape: f32[2,16,48], index: 15, kind: output, shape index: {0}]   ;;  %s6001_s16 = inlined_call_operand.vmem [shape: f32[2,1,1], index: 16, kind: output, shape index: {1}]  }
   0x1   :  { %6015 = sst [smem:[#allocation10_spill]] %s5985_s0 }
   0x2   :  { %6016 = sst [smem:[#allocation11_spill]] %s5986_s1 }
   0x3   :  { %22 = vsyncpa [#allocation3], 0 }
   0x4   :  { %24 = vsyncpa [#allocation3 + $0x1], 0  ;;  %s5001_s21 = smov 0   ;;  %s5003_s22 = smov 0  }
   0x5   :  { %s5005_s23 = smov 0   ;;  %s5007_s24 = smov 0  }
   0x6 LB: > { %6017 = sst [smem:[#allocation5_spill]] %s4892_s21  ;;  %s5022_s25 = sadd.s32 4294967295, %s4904_s24   ;;  %s4904_s24 = sphi %s5007_s24, %s6034_s24   ;;  %s4900_s23 = sphi %s5005_s23, %s6036_s23   ;;  %s4896_s22 = sphi %s5003_s22, %s6038_s22   ;;  %s4892_s21 = sphi %s5001_s21, %s6037_s21  }
   0x7   : > { %6018 = sst [smem:[#allocation6_spill]] %s4900_s23  ;;  %s3843_s26 = sadd.s32 4294967294, %s4904_s24  }
   0x8   : > { %s5026_s27 = sadd.s32 1, %s4904_s24   ;;  %s367_s28 = sadd.s32 1, %s4900_s23 }
   0x9   : > { %6019 = sst [smem:[#allocation7_spill]] %s5026_s27  ;;  %s364_s29 = ssub.s32 %s4904_s24, %s5026_s27 }
   0xa   : > { %p377_p0 = scmp.ne.s32.totalorder %s4900_s23, %s4896_s22  ;;  %p365_p1 = scmp.eq.s32.totalorder %s364_s29, 0 }
   0xb   : > { %p378_p2 = scmp.eq.s32.totalorder %s5022_s25, 1  ;;  %p383_p3 = scmp.ne.s32.totalorder %s4896_s22, %s4892_s21 }
   0xc   : > { %p384_p4 = scmp.eq.s32.totalorder %s3843_s26, 1  ;;  %p3846_p7 = scmp.ge.s32.totalorder %s4904_s24, 1 }
   0xd   : > { %s5037_s30 = scalar_select %p365_p1, %s4900_s23, %s367_s28  }
   0xe   : > { %p5039_p5 = por %p378_p2, %p377_p0  ;;  %p5043_p6 = por %p384_p4, %p383_p3 }
   0xf   : > { %6020 = sst [smem:[#allocation8_spill]] %s5037_s30  ;;  %p488_p8 = scmp.lt.s32.totalorder %s4904_s24, 3 }
  0x10   : > { %s6022_s17 = scalar_select %p5043_p6, 1, 0 }
  0x11   : > { %p489_p9 = pnand %p3846_p7, %p488_p8 }
  0x12   : > { %6023 = sst [smem:[#allocation9_spill]] %s6022_s17  ;;  %p551_p10 = scmp.lt.s32.totalorder (!%p489_p9), %s5022_s25, 1  ;;  %vm607_vm0 = vcmask (!%p489_p9), 130048   ;;  %vm614_vm1 = vcmask (!%p489_p9), 122880   ;;  %v592_v21 = vld [vmem:[%s5988_s3] sm:$0xff] (!%p489_p9)  ;;  %v593_v22 = vld [vmem:[%s5988_s3 + $0x8] sm:$0xff] (!%p489_p9)  ;;  %v572_v26 = vlaneseq (!%p489_p9) }
  0x13   : > { %492 = sbr.rel (%p489_p9) target bundleno = 5054 (0x13be), region = 80  ;;  %s6024_s28 = sld [smem:[#allocation10_spill]] (!%p489_p9)  ;;  %v4906_v23 = vmov (!%p489_p9), 0.0|0.0   ;;  %v4507_v24 = vpack.c.bf16 (!%p489_p9), %v593_v22, %v592_v21  ;;  %vm4907_vm2 = vmmov (!%p489_p9), 0   ;;  %v4908_v25 = vmov (!%p489_p9), 0.0   ;;  %vm5148_vm13 = vmpackc.low (!%p489_p9), %vm607_vm0, %vm607_vm0 }
  0x14   : > { %4506 = vmatprep.subr.bf16.mxu0 (!%p489_p9), %v4906_v23  ;;  %4146 = vmatprep.mubr.msk.f32.mxu0 (!%p489_p9), %vm4907_vm2, %v4908_v25  ;;  %v5081_v27 = vand.u32 (!%p489_p9), 127, %v572_v26  ;;  %s6002_s20 = smov (!%p489_p9), 32   ;;  %s6025_s1 = sld [smem:[#allocation11_spill]] (!%p489_p9)  ;;  %v3854_v42 = vld [vmem:[%s5987_s2] ss:$0 sm:$0xff] (!%p489_p9)  ;;  %vm1100_vm14 = vcmask (!%p489_p9), 1040384  }
  0x15   : > { %4509 = vmatprep.subr.bf16.mxu1 (!%p489_p9), %v4906_v23  ;;  %4161 = vmatprep.mubr.msk.f32.mxu1 (!%p489_p9), %vm4907_vm2, %v4908_v25  ;;  %v3855_v54 = vld [vmem:[%s5989_s4] ss:$0 sm:$0xff] (!%p489_p9)  ;;  %s6008_s26 = smov (!%p489_p9), 112   ;;  %vm885_vm15 = vcmask (!%p489_p9), 138240   ;;  %s6030_s17 = smov (!%p489_p9), 112  }
  0x16   : > { %4508 = vmatpush3.bf16.msra.mxu0 (!%p489_p9), %v4507_v24  ;;  %vm578_vm3 = vcmp.ge.s32.totalorder (!%p489_p9), %v5081_v27, 4  ;;  %vm579_vm4 = vcmp.lt.s32.totalorder (!%p489_p9), %v5081_v27, 8  ;;  %vm586_vm6 = vcmp.ge.s32.totalorder (!%p489_p9), %v5081_v27, 12  ;;  %vm587_vm7 = vcmp.lt.s32.totalorder (!%p489_p9), %v5081_v27, 16 }
  0x17   : > { %4513 = vmatprep.subr.bf16.mxu0 (!%p489_p9), %v4906_v23  ;;  %vm580_vm5 = vmand (!%p489_p9), %vm578_vm3, %vm579_vm4  ;;  %vm575_vm9 = vcmp.lt.s32.totalorder (!%p489_p9), %v5081_v27, 4  ;;  %vm582_vm10 = vcmp.ge.s32.totalorder (!%p489_p9), %v5081_v27, 8  ;;  %vm583_vm11 = vcmp.lt.s32.totalorder (!%p489_p9), %v5081_v27, 12  ;;  %vm888_vm3 = vcmask (!%p489_p9), 131072  }
  0x18   : > { %v5086_v28 = vsel (!%p489_p9), %vm580_vm5, 1.0, %v4908_v25  ;;  %vm588_vm8 = vmand (!%p489_p9), %vm586_vm6, %vm587_vm7  ;;  %vm1960_vm4 = vcmask (!%p489_p9), 523264  }
  0x19   : > { %v5095_v29 = vsel (!%p489_p9), %vm588_vm8, 1.0, %v4908_v25  ;;  %vm584_vm12 = vmand (!%p489_p9), %vm582_vm10, %vm583_vm11 }
  0x1a   : > { %s5051_s18 = scalar_select %p551_p10, %s5022_s25, 1  ;;  %v3853_v40 = vld [vmem:[%s6025_s1] ss:$0 sm:$0xff] }
  0x1c   : > { %s4618_s19 = smul.u32 24, %s5051_s18 }
  0x1e   : > { %s5057_s29 = scalar_lea.vmem %s6024_s28, %s4618_s19  ;;  %s6004_s19 = smov 16  }
  0x1f   : > { %v569_v0 = vld [vmem:[%s5057_s29] sm:$0xff]  ;;  %v571_v1 = vld [vmem:[%s5057_s29 + $0x10] sm:$0x1]  ;;  %v570_v2 = vld [vmem:[%s5057_s29 + $0x8] sm:$0xff]  ;;  %s6026_s28 = smov 16  }
  0x20   : > { %v608_v3 = vsel %vm607_vm0, %v569_v0, 0.0  ;;  %v615_v4 = vsel %vm614_vm1, %v571_v1, 0.0  ;;  %v611_v5 = vsel %vm607_vm0, %v570_v2, 0.0 }
  0x21   : > { %609 = vadd.xlane.f32.xlu0 %v608_v3  ;;  %616 = vadd.xlane.f32.xlu1 %v615_v4  ;;  %v5137_v4 = vsel %vm575_vm9, 1.0, %v4908_v25 }
  0x25   : > { %612 = vadd.xlane.f32.xlu0 %v611_v5  ;;  %v5142_v5 = vsel %vm584_vm12, 1.0, %v4908_v25 }
  0xae   : > { %v610_v6 = vpop.xlane.xlu0 %609  ;;  %v617_v7 = vpop.xlane.xlu1 %616 }
  0xaf   : > { %v619_v8 = vmul.f32 0.0625, %v610_v6  ;;  %v621_v9 = vmul.f32 0.0625, %v617_v7 }
  0xb1   : > { %v622_v10 = vsub.f32 %v569_v0, %v619_v8  ;;  %v624_v11 = vsub.f32 %v571_v1, %v621_v9 }
  0xb2   : > { %v613_v12 = vpop.xlane.xlu0 %612 }
  0xb3   : > { %v620_v13 = vmul.f32 0.0625, %v613_v12  ;;  %v625_v14 = vmul.f32 %v622_v10, %v622_v10  ;;  %v627_v15 = vmul.f32 %v624_v11, %v624_v11 }
  0xb5   : > { %v623_v16 = vsub.f32 %v570_v2, %v620_v13  ;;  %v628_v17 = vsel %vm607_vm0, %v625_v14, 0.0  ;;  %v634_v18 = vsel %vm614_vm1, %v627_v15, 0.0 }
  0xb6   : > { %629 = vadd.xlane.f32.xlu1 %v628_v17 }
  0xb7   : > { %v626_v19 = vmul.f32 %v623_v16, %v623_v16 }
  0xb9   : > { %v631_v20 = vsel %vm607_vm0, %v626_v19, 0.0 }
  0xba   : > { %635 = vadd.xlane.f32.xlu1 %v634_v18  ;;  %632 = vadd.xlane.f32.xlu0 %v631_v20 }
  0xd0   : > { %926 = vrot.lane.b32.xlu0 %v5086_v28, %s6004_s19 }
  0xd4   : > { %932 = vrot.lane.b32.xlu0 %v5086_v28, %s6002_s20  ;;  %s6029_s20 = smov 32  }
  0xd8   : > { %1552 = vrot.lane.b32.xlu0 %v5095_v29, %s6004_s19  ;;  %s6006_s19 = smov 96  }
 0x143   : > { %v630_v30 = vpop.xlane.xlu1 %629 }
 0x144   : > { %v637_v31 = vmul.f32 0.0625, %v630_v30 }
 0x146   : > { %v640_v32 = vadd.f32 1e-05, %v637_v31 }
 0x147   : > { %v636_v33 = vpop.xlane.xlu1 %635  ;;  %v633_v34 = vpop.xlane.xlu0 %632 }
 0x148   : > { %4749 = vrsqrt.f32 %v640_v32  ;;  %v639_v35 = vmul.f32 0.0625, %v636_v33  ;;  %v638_v36 = vmul.f32 0.0625, %v633_v34 }
 0x14a   : > { %v642_v37 = vadd.f32 1e-05, %v639_v35  ;;  %v641_v38 = vadd.f32 1e-05, %v638_v36 }
 0x14b   : > { %v5121_v60 = vpop.permute.xlu0 %926 }
 0x14c   : > { %4751 = vrsqrt.f32 %v642_v37 }
 0x14d   : > { %4753 = vrsqrt.f32 %v641_v38 }
 0x152   : > { %v4750_v39 = vpop.eup %4749 }
 0x153   : > { %v646_v41 = vmul.f32 %v4750_v39, %v622_v10 }
 0x155   : > { %v655_v43 = vmul.f32 %v3853_v40, %v646_v41 }
 0x156   : > { %v4752_v44 = vpop.eup %4751 }
 0x157   : > { %v4754_v45 = vpop.eup %4753  ;;  %v664_v46 = vadd.f32 %v3854_v42, %v655_v43  ;;  %v648_v48 = vmul.f32 %v4752_v44, %v624_v11 }
 0x158   : > { %v647_v47 = vmul.f32 %v4754_v45, %v623_v16  ;;  %v5163_v16 = vpop.permute.xlu0 %932 }
 0x159   : > { %4147 = vmatmul.mubr.msk.f32.vlgmr.msra.gmra.mrb[0].mxu0 %vm607_vm0, %v664_v46  ;;  %v657_v51 = vmul.f32 %v3853_v40, %v648_v48 }
 0x15a   : > { %4149 = vmatprep.mubr.msk.f32.mxu0 %vm4907_vm2, %v4908_v25  ;;  %v656_v49 = vmul.f32 %v3853_v40, %v647_v47 }
 0x15b   : > { %v666_v52 = vadd.f32 %v3854_v42, %v657_v51 }
 0x15c   : > { %v665_v50 = vadd.f32 %v3854_v42, %v656_v49  ;;  %v5190_v31 = vpop.permute.xlu0 %1552 }
 0x15e   : > { %4150 = vmatmul.mubr.msk.f32.gmra.mrb[2].mxu0 %vm607_vm0, %v665_v50 }
 0x15f   : > { %4152 = vmatprep.mubr.msk.f32.mxu0 %vm4907_vm2, %v4908_v25 }
 0x162   : > { %4153 = vmatmul.mubr.msk.f32.gmra.mrb[4].mxu0 %vm607_vm0, %v666_v52 }
 0x163   : > { %4176 = vmatprep.mubr.msk.f32.mxu0 %vm4907_vm2, %v4908_v25 }
 0x22c   : > { %v748_v53 = vpop.f32.mrb[0].mxu0 }
 0x22d   : > { %v4148_v55 = vpop.f32.mrb[1].mxu0  ;;  %v5117_v56 = vadd.f32 %v3855_v54, %v748_v53 }
 0x22f   : > { %v929_v61 = vmul.f32 %v5121_v60, %v5117_v56  ;;  %v935_v21 = vmul.f32 %v5163_v16, %v5117_v56  ;;  %v922_v22 = vmul.f32 %v5117_v56, %v5086_v28  ;;  %v1555_v36 = vmul.f32 %v5190_v31, %v5117_v56 }
 0x230   : > { %v762_v52 = vmul.f32 %v5117_v56, %v5137_v4 }
 0x231   : > { %v753_v57 = vpop.f32.mrb[2].mxu0 }
 0x232   : > { %v5119_v58 = vadd.f32 %v3855_v54, %v753_v57  ;;  %v4151_v59 = vpop.f32.mrb[3].mxu0 }
 0x234   : > { %v930_v62 = vmul.f32 %v5121_v60, %v5119_v58  ;;  %v936_v18 = vmul.f32 %v5163_v16, %v5119_v58  ;;  %v923_v32 = vmul.f32 %v5119_v58, %v5086_v28  ;;  %v1556_v34 = vmul.f32 %v5190_v31, %v5119_v58 }
 0x235   : > { %v758_v63 = vpop.f32.mrb[4].mxu0 }
 0x236   : > { %v5127_v0 = vadd.f32 %v3855_v54, %v758_v63  ;;  %v4154_v1 = vpop.f32.mrb[5].mxu0  ;;  %v4669_v2 = vpack.i.bf16 %v930_v62, %v929_v61  ;;  %v4679_v24 = vpack.i.bf16 %v936_v18, %v935_v21  ;;  %v4689_v38 = vpack.i.bf16 %v1556_v34, %v1555_v36 }
 0x237   : > { %v763_v62 = vmul.f32 %v5119_v58, %v5137_v4 }
 0x238   : > { %4670 = vrot.lane.b32.xlu1 %v4669_v2, %s6008_s26  ;;  %v931_v3 = vmul.f32 %v5121_v60, %v5127_v0  ;;  %v937_v20 = vmul.f32 %v5163_v16, %v5127_v0  ;;  %v1557_v35 = vmul.f32 %v5190_v31, %v5127_v0  ;;  %v924_v37 = vmul.f32 %v5127_v0, %v5086_v28 }
 0x23c   : > { %945 = vrot.lane.b32.xlu1 %v931_v3, %s6008_s26 }
 0x240   : > { %766 = vrot.lane.b32.xlu1 %v5137_v4, %s6026_s28 }
 0x244   : > { %1289 = vrot.lane.b32.xlu1 %v5142_v5, %s6026_s28 }
 0x2aa   : > { %v4671_v6 = vpop.permute.xlu1 %4670 }
 0x2ab   : > { %v4673_v7 = vunpack.i.h.bf16 %v4671_v6  ;;  %v4672_v8 = vunpack.i.l.bf16 %v4671_v6 }
 0x2ad   : > { %v4514_v10 = vpack.c.bf16 %v4673_v7, %v4672_v8  ;;  %v764_v7 = vmul.f32 %v5127_v0, %v5137_v4 }
 0x2ae   : > { %v946_v11 = vpop.permute.xlu1 %945 }
 0x2af   : > { %4516 = vmatpush3.bf16.xpose.msk.msra.mxu0 %vm5148_vm13, %v4514_v10 }
 0x2b0   : > { %4174 = vmatprep.subr.mxu0 %v4908_v25 }
 0x2b2   : > { %v5155_v12 = vpop.permute.xlu1 %766 }
 0x2b3   : > { %v771_v13 = vmul.f32 %v5155_v12, %v5127_v0  ;;  %v769_v14 = vmul.f32 %v5155_v12, %v5117_v56  ;;  %v770_v15 = vmul.f32 %v5155_v12, %v5119_v58 }
 0x2b5   : > { %785 = vrot.lane.b32.xlu0 %v771_v13, %s6008_s26  ;;  %v4674_v17 = vpack.i.bf16 %v770_v15, %v769_v14 }
 0x2b6   : > { %v5168_v19 = vpop.permute.xlu1 %1289 }
 0x2b7   : > { %4675 = vrot.lane.b32.xlu1 %v4674_v17, %s6008_s26  ;;  %4175 = vmatpush3.xpose.msk.msra.mxu0 %vm607_vm0, %v946_v11  ;;  %v1292_v26 = vmul.f32 %v5168_v19, %v5117_v56  ;;  %v1293_v27 = vmul.f32 %v5168_v19, %v5119_v58  ;;  %v1294_v30 = vmul.f32 %v5168_v19, %v5127_v0 }
 0x2b8   : > { %4520 = vmatprep.subr.bf16.mxu0 %v4906_v23 }
 0x2b9   : > { %1087 = vrot.lane.b32.xlu0 %v937_v20, %s6006_s19  ;;  %v4684_v33 = vpack.i.bf16 %v1293_v27, %v1292_v26 }
 0x2ba   : > { %4177 = vmatmul.mubr.msk.f32.vlgmr.msra.gmra.mrb[6].mxu0 %vm607_vm0, %v922_v22 }
 0x2bb   : > { %4680 = vrot.lane.b32.xlu1 %v4679_v24, %s6006_s19  ;;  %4179 = vmatprep.mubr.msk.f32.mxu0 %vm4907_vm2, %v4908_v25 }
 0x2bd   : > { %1308 = vrot.lane.b32.xlu0 %v1294_v30, %s6008_s26 }
 0x2be   : > { %4180 = vmatmul.mubr.msk.f32.gmra.mrb[8].mxu0 %vm607_vm0, %v923_v32 }
 0x2bf   : > { %4685 = vrot.lane.b32.xlu1 %v4684_v33, %s6008_s26  ;;  %4182 = vmatprep.mubr.msk.f32.mxu0 %vm4907_vm2, %v4908_v25 }
 0x2c1   : > { %1571 = vrot.lane.b32.xlu0 %v1557_v35, %s6008_s26 }
 0x2c2   : > { %4183 = vmatmul.mubr.msk.f32.gmra.mrb[10].mxu0 %vm607_vm0, %v924_v37 }
 0x2c3   : > { %4690 = vrot.lane.b32.xlu1 %v4689_v38, %s6008_s26  ;;  %4206 = vmatprep.mubr.msk.f32.mxu0 %vm4907_vm2, %v4908_v25  ;;  %s543_s26 = sand.u32 1, %s4896_s22  }
 0x2c4   : > { %s3847_s27 = sshll.u32 %s543_s26, 4  ;;  %s5940_s28 = scalar_lea.sflag [#allocation3], %s543_s26 }
 0x2c5   : > { %1295 = vrot.lane.b32.xlu0 %v5142_v5, %s6029_s20 }
 0x2c7   : > { %772 = vrot.lane.b32.xlu1 %v5137_v4, %s6029_s20 }
 0x2cb   : > { %1558 = vrot.lane.b32.xlu1 %v5095_v29, %s6029_s20  ;;  %s6031_s20 = smov 96  }
 0x327   : > { %v786_v39 = vpop.permute.xlu0 %785 }
 0x329   : > { %v4676_v40 = vpop.permute.xlu1 %4675 }
 0x32a   : > { %v4678_v41 = vunpack.i.h.bf16 %v4676_v40  ;;  %v4677_v42 = vunpack.i.l.bf16 %v4676_v40 }
 0x32b   : > { %v1088_v43 = vpop.permute.xlu0 %1087 }
 0x32c   : > { %v4510_v44 = vpack.c.bf16 %v4678_v41, %v4677_v42 }
 0x32d   : > { %v4681_v45 = vpop.permute.xlu1 %4680 }
 0x32e   : > { %4512 = vmatpush3.bf16.xpose.msk.msra.mxu1 %vm5148_vm13, %v4510_v44  ;;  %v4683_v49 = vunpack.i.h.bf16 %v4681_v45  ;;  %v4682_v50 = vunpack.i.l.bf16 %v4681_v45 }
 0x32f   : > { %v5220_v46 = vpop.permute.xlu0 %1308  ;;  %4159 = vmatprep.subr.mxu1 %v4908_v25 }
 0x330   : > { %v4518_v53 = vpack.c.bf16 %v4683_v49, %v4682_v50 }
 0x331   : > { %v5223_v47 = vpop.permute.xlu1 %4685 }
 0x333   : > { %v5225_v48 = vpop.permute.xlu0 %1571 }
 0x335   : > { %v5227_v51 = vpop.permute.xlu1 %4690 }
 0x336   : > { %4160 = vmatpush3.xpose.msk.msra.mxu1 %vm607_vm0, %v786_v39 }
 0x337   : > { %4517 = vmatprep.subr.bf16.mxu1 %v4906_v23  ;;  %v5233_v54 = vpop.permute.xlu0 %1295 }
 0x338   : > { %v1298_v1 = vmul.f32 %v5233_v54, %v5117_v56  ;;  %v1299_v2 = vmul.f32 %v5233_v54, %v5119_v58  ;;  %v1300_v6 = vmul.f32 %v5233_v54, %v5127_v0 }
 0x339   : > { %v5235_v55 = vpop.permute.xlu1 %772  ;;  %4162 = vmatmul.mubr.msk.f32.vlgmr.msra.gmra.mrb[0].mxu1 %vm607_vm0, %v762_v52 }
 0x33a   : > { %4519 = vmatpush3.bf16.msra.mxu1 %v4518_v53  ;;  %v777_v57 = vmul.f32 %v5235_v55, %v5127_v0  ;;  %4164 = vmatprep.mubr.msk.f32.mxu1 %vm4907_vm2, %v4908_v25  ;;  %v775_v59 = vmul.f32 %v5235_v55, %v5117_v56  ;;  %v776_v61 = vmul.f32 %v5235_v55, %v5119_v58 }
 0x33b   : > { %4189 = vmatprep.subr.mxu1 %v4908_v25  ;;  %v4699_v8 = vpack.i.bf16 %v1299_v2, %v1298_v1 }
 0x33c   : > { %1190 = vrot.lane.b32.xlu1 %v777_v57, %s6006_s19  ;;  %v4694_v63 = vpack.i.bf16 %v776_v61, %v775_v59 }
 0x33d   : > { %v5254_v3 = vpop.permute.xlu1 %1558  ;;  %4165 = vmatmul.mubr.msk.f32.gmra.mrb[2].mxu1 %vm607_vm0, %v763_v62 }
 0x33e   : > { %4695 = vrot.lane.b32.xlu0 %v4694_v63, %s6006_s19  ;;  %4190 = vmatpush3.msk.msra.mxu1 %vm1100_vm14, %v1088_v43  ;;  %v1561_v10 = vmul.f32 %v5254_v3, %v5117_v56  ;;  %v1562_v11 = vmul.f32 %v5254_v3, %v5119_v58  ;;  %v1563_v13 = vmul.f32 %v5254_v3, %v5127_v0 }
 0x33f   : > { %4167 = vmatprep.mubr.msk.f32.mxu1 %vm4907_vm2, %v4908_v25  ;;  %4523 = vmatprep.subr.bf16.mxu1 %v4906_v23 }
 0x340   : > { %1450 = vrot.lane.b32.xlu1 %v1300_v6, %s6006_s19  ;;  %v4704_v14 = vpack.i.bf16 %v1562_v11, %v1561_v10 }
 0x341   : > { %4168 = vmatmul.mubr.msk.f32.gmra.mrb[4].mxu1 %vm607_vm0, %v764_v7 }
 0x342   : > { %4700 = vrot.lane.b32.xlu0 %v4699_v8, %s6006_s19  ;;  %4191 = vmatprep.mubr.msk.f32.mxu1 %vm4907_vm2, %v4908_v25 }
 0x344   : > { %1713 = vrot.lane.b32.xlu1 %v1563_v13, %s6006_s19 }
 0x346   : > { %4705 = vrot.lane.b32.xlu0 %v4704_v14, %s6006_s19 }
 0x38d   : > { %v1028_v15 = vpop.f32.mrb[6].mxu0 }
 0x38e   : > { %v4178_v17 = vpop.f32.mrb[7].mxu0  ;;  %v1042_v18 = vmul.f32 0.5, %v1028_v15 }
 0x390   : > { %v1045_v24 = vsel %vm885_vm15, %v1042_v18, -inf }
 0x391   : > { %v1033_v20 = vpop.f32.mrb[8].mxu0 }
 0x392   : > { %v1043_v21 = vmul.f32 0.5, %v1033_v20  ;;  %v4181_v22 = vpop.f32.mrb[9].mxu0  ;;  %v4688_v20 = vunpack.i.h.bf16 %v5223_v47 }
 0x394   : > { %v1046_v26 = vsel %vm885_vm15, %v1043_v21, -inf }
 0x395   : > { %v1048_v27 = vmax.f32 %v1045_v24, %v1046_v26  ;;  %v1038_v30 = vpop.f32.mrb[10].mxu0 }
 0x396   : > { %v1044_v32 = vmul.f32 0.5, %v1038_v30  ;;  %v4184_v33 = vpop.f32.mrb[11].mxu0 }
 0x397   : > { %v1285_v33 = vmul.f32 %v5117_v56, %v5142_v5 }
 0x398   : > { %v1047_v34 = vsel %vm888_vm3, %v1044_v32, -inf }
 0x399   : > { %v1049_v35 = vmax.f32 %v1048_v27, %v1047_v34 }
 0x39b   : > { %v1050_v36 = vrot.slane %v1049_v35, 4 }
 0x39d   : > { %v1051_v37 = vmax.f32 %v1049_v35, %v1050_v36  ;;  %v1548_v35 = vmul.f32 %v5117_v56, %v5095_v29  ;;  %v1549_v36 = vmul.f32 %v5119_v58, %v5095_v29 }
 0x39f   : > { %v1052_v38 = vrot.slane %v1051_v37, 2 }
 0x3a1   : > { %v1053_v39 = vmax.f32 %v1051_v37, %v1052_v38 }
 0x3a3   : > { %v1054_v40 = vrot.slane %v1053_v39, 1 }
 0x3a5   : > { %v1055_v41 = vmax.f32 %v1053_v39, %v1054_v40 }
 0x3a7   : > { %v1056_v42 = vsub.f32 %v1042_v18, %v1055_v41  ;;  %v1057_v43 = vsub.f32 %v1043_v21, %v1055_v41  ;;  %v1058_v44 = vsub.f32 %v1044_v32, %v1055_v41  ;;  %v4687_v21 = vunpack.i.l.bf16 %v5223_v47 }
 0x3a8   : > { %v4693_v47 = vunpack.i.h.bf16 %v5227_v51  ;;  %v4692_v32 = vunpack.i.l.bf16 %v5227_v51  ;;  %v1287_v51 = vmul.f32 %v5127_v0, %v5142_v5 }
 0x3a9   : > { %v1059_v45 = vmul.f32 1.442695, %v1056_v42  ;;  %v1061_v49 = vmul.f32 1.442695, %v1057_v43  ;;  %v1063_v50 = vmul.f32 1.442695, %v1058_v44  ;;  %v4524_v30 = vpack.c.bf16 %v4688_v20, %v4687_v21 }
 0x3aa   : > { %v4531_v34 = vpack.c.bf16 %v4693_v47, %v4692_v32 }
 0x3ab   : > { %4755 = vpow2.f32 %v1059_v45 }
 0x3ac   : > { %4757 = vpow2.f32 %v1061_v49 }
 0x3ad   : > { %4759 = vpow2.f32 %v1063_v50 }
 0x3ae   : > { %v1191_v7 = vpop.permute.xlu1 %1190 }
 0x3b0   : > { %v4696_v52 = vpop.permute.xlu0 %4695 }
 0x3b1   : > { %v4698_v53 = vunpack.i.h.bf16 %v4696_v52  ;;  %v4697_v57 = vunpack.i.l.bf16 %v4696_v52 }
 0x3b3   : > { %v4521_v59 = vpack.c.bf16 %v4698_v53, %v4697_v57 }
 0x3b4   : > { %v4701_v47 = vpop.permute.xlu0 %4700 }
 0x3b5   : > { %v4756_v61 = vpop.eup %4755  ;;  %4522 = vmatpush3.bf16.msra.mxu0 %v4521_v59  ;;  %v4703_v32 = vunpack.i.h.bf16 %v4701_v47 }
 0x3b6   : > { %v4758_v62 = vpop.eup %4757  ;;  %v1065_v63 = vsel %vm885_vm15, %v4756_v61, 0.0  ;;  %4204 = vmatprep.subr.mxu0 %v4908_v25 }
 0x3b7   : > { %v4760_v1 = vpop.eup %4759  ;;  %v1066_v2 = vsel %vm885_vm15, %v4758_v62, 0.0 }
 0x3b8   : > { %v1067_v6 = vadd.f32 %v1066_v2, %v1065_v63  ;;  %v1068_v8 = vsel %vm888_vm3, %v4760_v1, 0.0 }
 0x3b9   : > { %4205 = vmatpush3.msk.msra.mxu0 %vm1100_vm14, %v1191_v7 }
 0x3ba   : > { %v1069_v10 = vadd.f32 %v1068_v8, %v1067_v6  ;;  %4527 = vmatprep.subr.bf16.mxu0 %v4906_v23 }
 0x3bc   : > { %v1070_v11 = vrot.slane %v1069_v10, 4 }
 0x3be   : > { %v1071_v13 = vadd.f32 %v1070_v11, %v1069_v10 }
 0x3c0   : > { %v1072_v14 = vrot.slane %v1071_v13, 2 }
 0x3c2   : > { %v1073_v15 = vadd.f32 %v1072_v14, %v1071_v13 }
 0x3c4   : > { %v1074_v17 = vrot.slane %v1073_v15, 1 }
 0x3c6   : > { %v1075_v18 = vadd.f32 %v1074_v17, %v1073_v15 }
 0x3c8   : > { %4761 = vrcp.f32 %v1075_v18 }
 0x3d2   : > { %v4762_v22 = vpop.eup %4761 }
 0x3d3   : > { %v1077_v24 = vmul.f32 %v4762_v22, %v4756_v61  ;;  %v1078_v26 = vmul.f32 %v4762_v22, %v4758_v62  ;;  %v1079_v27 = vmul.f32 %v4762_v22, %v4760_v1 }
 0x3d5   : > { %4192 = vmatmul.mubr.msk.f32.vlgmr.msra.gmra.mrb[6].mxu1 %vm885_vm15, %v1077_v24 }
 0x3d6   : > { %4526 = vmatpush3.bf16.xpose.msk.msra.mxu1 %vm5148_vm13, %v4524_v30  ;;  %4194 = vmatprep.mubr.msk.f32.mxu1 %vm4907_vm2, %v4908_v25 }
 0x3d7   : > { %4219 = vmatprep.subr.mxu1 %v4908_v25 }
 0x3d9   : > { %4195 = vmatmul.mubr.msk.f32.gmra.mrb[8].mxu1 %vm885_vm15, %v1078_v26 }
 0x3da   : > { %4197 = vmatprep.mubr.msk.f32.mxu1 %vm4907_vm2, %v4908_v25 }
 0x3dd   : > { %4198 = vmatmul.mubr.msk.f32.gmra.mrb[10].mxu1 %vm885_vm15, %v1079_v27 }
 0x3de   : > { %4220 = vmatpush3.xpose.msk.msra.mxu1 %vm607_vm0, %v5220_v46  ;;  %4221 = vmatprep.mubr.msk.f32.mxu1 %vm4907_vm2, %v4908_v25  ;;  %v1286_v46 = vmul.f32 %v5119_v58, %v5142_v5 }
 0x3df   : > { %4530 = vmatprep.subr.bf16.mxu1 %v4906_v23 }
 0x3e1   : > { %4222 = vmatmul.mubr.msk.f32.vlgmr.msra.gmra.mrb[12].mxu1 %vm607_vm0, %v1285_v33  ;;  %v4702_v33 = vunpack.i.l.bf16 %v4701_v47 }
 0x3e2   : > { %4533 = vmatpush3.bf16.xpose.msk.msra.mxu1 %vm5148_vm13, %v4531_v34  ;;  %4224 = vmatprep.mubr.msk.f32.mxu1 %vm4907_vm2, %v4908_v25 }
 0x3e3   : > { %4249 = vmatprep.subr.mxu1 %v4908_v25 }
 0x3e5   : > { %4225 = vmatmul.mubr.msk.f32.gmra.mrb[14].mxu1 %vm607_vm0, %v1286_v46 }
 0x3e6   : > { %4227 = vmatprep.mubr.msk.f32.mxu1 %vm4907_vm2, %v4908_v25 }
 0x3e9   : > { %4228 = vmatmul.mubr.msk.f32.gmra.mrb[16].mxu1 %vm607_vm0, %v1287_v51 }
 0x3ea   : > { %4250 = vmatpush3.xpose.msk.msra.mxu1 %vm607_vm0, %v5225_v48  ;;  %4251 = vmatprep.mubr.msk.f32.mxu1 %vm4907_vm2, %v4908_v25  ;;  %v1550_v48 = vmul.f32 %v5127_v0, %v5095_v29 }
 0x3eb   : > { %4537 = vmatprep.subr.bf16.mxu1 %v4906_v23 }
 0x3ed   : > { %4252 = vmatmul.mubr.msk.f32.vlgmr.msra.gmra.mrb[18].mxu1 %vm607_vm0, %v1548_v35 }
 0x3ee   : > { %4254 = vmatprep.mubr.msk.f32.mxu1 %vm4907_vm2, %v4908_v25 }
 0x3f1   : > { %4255 = vmatmul.mubr.msk.f32.gmra.mrb[20].mxu1 %vm607_vm0, %v1549_v36  ;;  %v4528_v36 = vpack.c.bf16 %v4703_v32, %v4702_v33 }
 0x3f2   : > { %4257 = vmatprep.mubr.msk.f32.mxu1 %vm4907_vm2, %v4908_v25 }
 0x3f5   : > { %4258 = vmatmul.mubr.msk.f32.gmra.mrb[22].mxu1 %vm607_vm0, %v1550_v48  ;;  %v1451_v48 = vpop.permute.xlu1 %1450 }
 0x3f6   : > { %4279 = vmatprep.mubr.msk.f32.mxu1 %vm4907_vm2, %v4908_v25 }
 0x40c   : > { %v868_v56 = vpop.f32.mrb[0].mxu1 }
 0x40d   : > { %v4163_v37 = vpop.f32.mrb[1].mxu1  ;;  %v882_v38 = vmul.f32 0.5, %v868_v56 }
 0x40f   : > { %v886_v58 = vsel %vm885_vm15, %v882_v38, -inf }
 0x410   : > { %v873_v39 = vpop.f32.mrb[2].mxu1 }
 0x411   : > { %v883_v40 = vmul.f32 0.5, %v873_v39  ;;  %v4166_v41 = vpop.f32.mrb[3].mxu1 }
 0x413   : > { %v887_v42 = vsel %vm885_vm15, %v883_v40, -inf }
 0x414   : > { %v890_v43 = vmax.f32 %v886_v58, %v887_v42  ;;  %v878_v44 = vpop.f32.mrb[4].mxu1 }
 0x415   : > { %v884_v45 = vmul.f32 0.5, %v878_v44  ;;  %v4169_v49 = vpop.f32.mrb[5].mxu1 }
 0x417   : > { %v889_v0 = vsel %vm888_vm3, %v884_v45, -inf }
 0x418   : > { %v891_v50 = vmax.f32 %v890_v43, %v889_v0 }
 0x41a   : > { %v892_v52 = vrot.slane %v891_v50, 4 }
 0x41c   : > { %v893_v53 = vmax.f32 %v891_v50, %v892_v52 }
 0x41e   : > { %v894_v57 = vrot.slane %v893_v53, 2 }
 0x420   : > { %v895_v59 = vmax.f32 %v893_v53, %v894_v57 }
 0x422   : > { %v896_v61 = vrot.slane %v895_v59, 1 }
 0x424   : > { %v897_v62 = vmax.f32 %v895_v59, %v896_v61 }
 0x426   : > { %v898_v63 = vsub.f32 %v882_v38, %v897_v62  ;;  %v899_v1 = vsub.f32 %v883_v40, %v897_v62  ;;  %v900_v2 = vsub.f32 %v884_v45, %v897_v62 }
 0x428   : > { %v901_v6 = vmul.f32 1.442695, %v898_v63  ;;  %v903_v7 = vmul.f32 1.442695, %v899_v1  ;;  %v905_v8 = vmul.f32 1.442695, %v900_v2 }
 0x42a   : > { %4763 = vpow2.f32 %v901_v6 }
 0x42b   : > { %4765 = vpow2.f32 %v903_v7 }
 0x42c   : > { %4767 = vpow2.f32 %v905_v8 }
 0x434   : > { %v4764_v10 = vpop.eup %4763 }
 0x435   : > { %v4766_v11 = vpop.eup %4765  ;;  %v907_v13 = vsel %vm885_vm15, %v4764_v10, 0.0 }
 0x436   : > { %v4768_v14 = vpop.eup %4767  ;;  %v908_v15 = vsel %vm885_vm15, %v4766_v11, 0.0 }
 0x437   : > { %v909_v17 = vadd.f32 %v908_v15, %v907_v13  ;;  %v910_v18 = vsel %vm888_vm3, %v4768_v14, 0.0 }
 0x439   : > { %v911_v20 = vadd.f32 %v910_v18, %v909_v17 }
 0x43b   : > { %v912_v21 = vrot.slane %v911_v20, 4 }
 0x43d   : > { %v913_v22 = vadd.f32 %v912_v21, %v911_v20 }
 0x43f   : > { %v914_v24 = vrot.slane %v913_v22, 2 }
 0x441   : > { %v915_v26 = vadd.f32 %v914_v24, %v913_v22 }
 0x443   : > { %v916_v27 = vrot.slane %v915_v26, 1 }
 0x445   : > { %v917_v30 = vadd.f32 %v916_v27, %v915_v26 }
 0x447   : > { %4769 = vrcp.f32 %v917_v30 }
 0x451   : > { %v4770_v34 = vpop.eup %4769 }
 0x452   : > { %v919_v46 = vmul.f32 %v4770_v34, %v4764_v10  ;;  %v920_v51 = vmul.f32 %v4770_v34, %v4766_v11  ;;  %v921_v35 = vmul.f32 %v4770_v34, %v4768_v14 }
 0x454   : > { %4207 = vmatmul.mubr.msk.f32.vlgmr.msra.gmra.mrb[12].mxu0 %vm885_vm15, %v919_v46 }
 0x455   : > { %4529 = vmatpush3.bf16.msra.mxu0 %v4528_v36  ;;  %4209 = vmatprep.mubr.msk.f32.mxu0 %vm4907_vm2, %v4908_v25 }
 0x456   : > { %4234 = vmatprep.subr.mxu0 %v4908_v25 }
 0x458   : > { %4210 = vmatmul.mubr.msk.f32.gmra.mrb[14].mxu0 %vm885_vm15, %v920_v51 }
 0x459   : > { %4235 = vmatpush3.msk.msra.mxu0 %vm1100_vm14, %v1451_v48  ;;  %4212 = vmatprep.mubr.msk.f32.mxu0 %vm4907_vm2, %v4908_v25 }
 0x45a   : > { %4534 = vmatprep.subr.bf16.mxu0 %v4906_v23 }
 0x45c   : > { %4213 = vmatmul.mubr.msk.f32.gmra.mrb[16].mxu0 %vm885_vm15, %v921_v35 }
 0x45d   : > { %4236 = vmatprep.mubr.msk.f32.mxu0 %vm4907_vm2, %v4908_v25 }
 0x4a8   : > { %v5361_v56 = vpop.f32.mrb[6].mxu1 }
 0x4a9   : > { %v4193_v37 = vpop.f32.mrb[7].mxu1 }
 0x4ac   : > { %v5363_v38 = vpop.f32.mrb[8].mxu1 }
 0x4ad   : > { %v4196_v39 = vpop.f32.mrb[9].mxu1 }
 0x4b0   : > { %v5365_v40 = vpop.f32.mrb[10].mxu1 }
 0x4b1   : > { %v4199_v41 = vpop.f32.mrb[11].mxu1 }
 0x4b4   : > { %v1391_v58 = vpop.f32.mrb[12].mxu1 }
 0x4b5   : > { %v4223_v42 = vpop.f32.mrb[13].mxu1  ;;  %v1405_v43 = vmul.f32 0.5, %v1391_v58 }
 0x4b7   : > { %v1408_v0 = vsel %vm885_vm15, %v1405_v43, -inf }
 0x4b8   : > { %v1396_v44 = vpop.f32.mrb[14].mxu1 }
 0x4b9   : > { %v1406_v45 = vmul.f32 0.5, %v1396_v44  ;;  %v4226_v49 = vpop.f32.mrb[15].mxu1 }
 0x4bb   : > { %v1409_v50 = vsel %vm885_vm15, %v1406_v45, -inf }
 0x4bc   : > { %v1411_v52 = vmax.f32 %v1408_v0, %v1409_v50  ;;  %v1401_v53 = vpop.f32.mrb[16].mxu1 }
 0x4bd   : > { %v1407_v57 = vmul.f32 0.5, %v1401_v53  ;;  %v4229_v59 = vpop.f32.mrb[17].mxu1 }
 0x4bf   : > { %v1410_v61 = vsel %vm888_vm3, %v1407_v57, -inf }
 0x4c0   : > { %v1412_v62 = vmax.f32 %v1411_v52, %v1410_v61  ;;  %v1654_v63 = vpop.f32.mrb[18].mxu1 }
 0x4c1   : > { %v4253_v1 = vpop.f32.mrb[19].mxu1  ;;  %v1668_v6 = vmul.f32 0.5, %v1654_v63 }
 0x4c2   : > { %v1413_v2 = vrot.slane %v1412_v62, 4 }
 0x4c3   : > { %v1671_v14 = vsel %vm885_vm15, %v1668_v6, -inf }
 0x4c4   : > { %v1414_v7 = vmax.f32 %v1412_v62, %v1413_v2  ;;  %v1659_v8 = vpop.f32.mrb[20].mxu1 }
 0x4c5   : > { %v1669_v10 = vmul.f32 0.5, %v1659_v8  ;;  %v4256_v11 = vpop.f32.mrb[21].mxu1 }
 0x4c6   : > { %v1415_v13 = vrot.slane %v1414_v7, 2 }
 0x4c7   : > { %v1672_v15 = vsel %vm885_vm15, %v1669_v10, -inf }
 0x4c8   : > { %v1416_v17 = vmax.f32 %v1414_v7, %v1415_v13  ;;  %v1674_v18 = vmax.f32 %v1671_v14, %v1672_v15  ;;  %v1664_v20 = vpop.f32.mrb[22].mxu1 }
 0x4c9   : > { %v1670_v21 = vmul.f32 0.5, %v1664_v20  ;;  %v4259_v22 = vpop.f32.mrb[23].mxu1 }
 0x4ca   : > { %v1417_v24 = vrot.slane %v1416_v17, 1 }
 0x4cb   : > { %v1673_v26 = vsel %vm888_vm3, %v1670_v21, -inf }
 0x4cc   : > { %v1418_v27 = vmax.f32 %v1416_v17, %v1417_v24  ;;  %v1675_v30 = vmax.f32 %v1674_v18, %v1673_v26  ;;  %v4706_v26 = vpop.permute.xlu0 %4705 }
 0x4ce   : > { %v1419_v47 = vsub.f32 %v1405_v43, %v1418_v27  ;;  %v1420_v32 = vsub.f32 %v1406_v45, %v1418_v27  ;;  %v1421_v33 = vsub.f32 %v1407_v57, %v1418_v27  ;;  %v1676_v34 = vrot.slane %v1675_v30, 4 }
 0x4d0   : > { %v1422_v46 = vmul.f32 1.442695, %v1419_v47  ;;  %v1424_v51 = vmul.f32 1.442695, %v1420_v32  ;;  %v1426_v35 = vmul.f32 1.442695, %v1421_v33  ;;  %v1677_v36 = vmax.f32 %v1675_v30, %v1676_v34 }
 0x4d1   : > { %v4708_v30 = vunpack.i.h.bf16 %v4706_v26  ;;  %v4707_v47 = vunpack.i.l.bf16 %v4706_v26  ;;  %v4839_v26 = vld [vmem:[%s5057_s29 + $0x10] sm:$0x1] }
 0x4d2   : > { %4771 = vpow2.f32 %v1422_v46  ;;  %v1678_v48 = vrot.slane %v1677_v36, 2 }
 0x4d3   : > { %4773 = vpow2.f32 %v1424_v51 }
 0x4d4   : > { %4775 = vpow2.f32 %v1426_v35  ;;  %v1679_v37 = vmax.f32 %v1677_v36, %v1678_v48  ;;  %v4535_v36 = vpack.c.bf16 %v4708_v30, %v4707_v47  ;;  %v1714_v48 = vpop.permute.xlu1 %1713 }
 0x4d6   : > { %v1680_v39 = vrot.slane %v1679_v37, 1 }
 0x4d8   : > { %v1681_v41 = vmax.f32 %v1679_v37, %v1680_v39 }
 0x4da   : > { %v1682_v58 = vsub.f32 %v1668_v6, %v1681_v41  ;;  %v1683_v42 = vsub.f32 %v1669_v10, %v1681_v41  ;;  %v1684_v44 = vsub.f32 %v1670_v21, %v1681_v41 }
 0x4dc   : > { %v4772_v49 = vpop.eup %4771  ;;  %v1685_v0 = vmul.f32 1.442695, %v1682_v58  ;;  %v1687_v43 = vmul.f32 1.442695, %v1683_v42  ;;  %v1689_v45 = vmul.f32 1.442695, %v1684_v44 }
 0x4dd   : > { %v4774_v50 = vpop.eup %4773  ;;  %v1428_v52 = vsel %vm885_vm15, %v4772_v49, 0.0 }
 0x4de   : > { %v4776_v53 = vpop.eup %4775  ;;  %v1429_v57 = vsel %vm885_vm15, %v4774_v50, 0.0  ;;  %4777 = vpow2.f32 %v1685_v0 }
 0x4df   : > { %v1430_v59 = vadd.f32 %v1429_v57, %v1428_v52  ;;  %4779 = vpow2.f32 %v1687_v43  ;;  %v1431_v61 = vsel %vm888_vm3, %v4776_v53, 0.0 }
 0x4e0   : > { %4781 = vpow2.f32 %v1689_v45 }
 0x4e1   : > { %v1432_v62 = vadd.f32 %v1431_v61, %v1430_v59 }
 0x4e3   : > { %v1433_v63 = vrot.slane %v1432_v62, 4 }
 0x4e5   : > { %v1434_v1 = vadd.f32 %v1433_v63, %v1432_v62 }
 0x4e7   : > { %v1435_v2 = vrot.slane %v1434_v1, 2 }
 0x4e8   : > { %v4778_v6 = vpop.eup %4777 }
 0x4e9   : > { %v4780_v7 = vpop.eup %4779  ;;  %v1436_v8 = vadd.f32 %v1435_v2, %v1434_v1  ;;  %v1691_v10 = vsel %vm885_vm15, %v4778_v6, 0.0 }
 0x4ea   : > { %v4782_v11 = vpop.eup %4781  ;;  %v1692_v13 = vsel %vm885_vm15, %v4780_v7, 0.0 }
 0x4eb   : > { %v1437_v14 = vrot.slane %v1436_v8, 1  ;;  %v1693_v15 = vadd.f32 %v1692_v13, %v1691_v10  ;;  %v1694_v17 = vsel %vm888_vm3, %v4782_v11, 0.0  ;;  %v4837_v10 = vld [vmem:[%s5057_s29] sm:$0xff] }
 0x4ed   : > { %v1438_v18 = vadd.f32 %v1437_v14, %v1436_v8  ;;  %v1695_v20 = vadd.f32 %v1694_v17, %v1693_v15  ;;  %v4838_v17 = vld [vmem:[%s5057_s29 + $0x8] sm:$0xff] }
 0x4ef   : > { %4783 = vrcp.f32 %v1438_v18  ;;  %v1696_v21 = vrot.slane %v1695_v20, 4 }
 0x4f1   : > { %v1697_v22 = vadd.f32 %v1696_v21, %v1695_v20 }
 0x4f3   : > { %v1698_v24 = vrot.slane %v1697_v22, 2 }
 0x4f5   : > { %v1699_v27 = vadd.f32 %v1698_v24, %v1697_v22 }
 0x4f7   : > { %v1700_v32 = vrot.slane %v1699_v27, 1 }
 0x4f9   : > { %v4784_v33 = vpop.eup %4783  ;;  %v1701_v34 = vadd.f32 %v1700_v32, %v1699_v27 }
 0x4fa   : > { %v1440_v46 = vmul.f32 %v4784_v33, %v4772_v49  ;;  %v1441_v51 = vmul.f32 %v4784_v33, %v4774_v50  ;;  %v1442_v35 = vmul.f32 %v4784_v33, %v4776_v53 }
 0x4fb   : > { %4785 = vrcp.f32 %v1701_v34 }
 0x4fc   : > { %4237 = vmatmul.mubr.msk.f32.vlgmr.msra.gmra.mrb[18].mxu0 %vm885_vm15, %v1440_v46 }
 0x4fd   : > { %4536 = vmatpush3.bf16.msra.mxu0 %v4535_v36  ;;  %4239 = vmatprep.mubr.msk.f32.mxu0 %vm4907_vm2, %v4908_v25 }
 0x4fe   : > { %4264 = vmatprep.subr.mxu0 %v4908_v25 }
 0x500   : > { %4240 = vmatmul.mubr.msk.f32.gmra.mrb[20].mxu0 %vm885_vm15, %v1441_v51 }
 0x501   : > { %4265 = vmatpush3.msk.msra.mxu0 %vm1100_vm14, %v1714_v48  ;;  %4242 = vmatprep.mubr.msk.f32.mxu0 %vm4907_vm2, %v4908_v25 }
 0x502   : > { %4540 = vmatprep.subr.bf16.mxu0 %v4906_v23 }
 0x504   : > { %4243 = vmatmul.mubr.msk.f32.gmra.mrb[22].mxu0 %vm885_vm15, %v1442_v35 }
 0x505   : > { %v4786_v37 = vpop.eup %4785  ;;  %4266 = vmatprep.mubr.msk.f32.mxu0 %vm4907_vm2, %v4908_v25 }
 0x506   : > { %v1703_v39 = vmul.f32 %v4786_v37, %v4778_v6  ;;  %v1704_v41 = vmul.f32 %v4786_v37, %v4780_v7  ;;  %v1705_v58 = vmul.f32 %v4786_v37, %v4782_v11 }
 0x508   : > { %4267 = vmatmul.mubr.msk.f32.vlgmr.msra.gmra.mrb[24].mxu0 %vm885_vm15, %v1703_v39 }
 0x509   : > { %4269 = vmatprep.mubr.msk.f32.mxu0 %vm4907_vm2, %v4908_v25 }
 0x50c   : > { %4270 = vmatmul.mubr.msk.f32.gmra.mrb[26].mxu0 %vm885_vm15, %v1704_v41 }
 0x50d   : > { %4272 = vmatprep.mubr.msk.f32.mxu0 %vm4907_vm2, %v4908_v25 }
 0x510   : > { %4273 = vmatmul.mubr.msk.f32.gmra.mrb[28].mxu0 %vm885_vm15, %v1705_v58 }
 0x511   : > { %4304 = vmatprep.mubr.msk.f32.mxu0 %vm4907_vm2, %v4908_v25 }
 0x527   : > { %v1271_v42 = vpop.f32.mrb[12].mxu0 }
 0x528   : > { %v1272_v44 = vadd.f32 %v1271_v42, %v5361_v56  ;;  %v4208_v49 = vpop.f32.mrb[13].mxu0 }
 0x529   : > { %v595_v49 = vld [vmem:[%s5990_s5] sm:$0xff] }
 0x52b   : > { %v1276_v0 = vpop.f32.mrb[14].mxu0 }
 0x52c   : > { %v1277_v43 = vadd.f32 %v1276_v0, %v5363_v38  ;;  %v4211_v45 = vpop.f32.mrb[15].mxu0  ;;  %v596_v0 = vld [vmem:[%s5990_s5 + $0x8] sm:$0xff] }
 0x52d   : > { %v598_v45 = vld [vmem:[%s5992_s7] sm:$0xff] }
 0x52f   : > { %v1281_v50 = vpop.f32.mrb[16].mxu0 }
 0x530   : > { %v1282_v52 = vadd.f32 %v1281_v50, %v5365_v40  ;;  %v4214_v53 = vpop.f32.mrb[17].mxu0  ;;  %v599_v50 = vld [vmem:[%s5992_s7 + $0x8] sm:$0xff] }
 0x531   : > { %v4541_v53 = vpack.c.bf16 %v599_v50, %v598_v45 }
 0x533   : > { %4542 = vmatpush3.bf16.msra.mxu0 %v4541_v53 }
 0x534   : > { %4543 = vmatprep.subr.bf16.mxu0 %v4906_v23 }
 0x5cf   : > { %v1531_v57 = vpop.f32.mrb[18].mxu0 }
 0x5d0   : > { %v1545_v59 = vadd.f32 %v1531_v57, %v1272_v44  ;;  %v4238_v61 = vpop.f32.mrb[19].mxu0  ;;  %v601_v57 = vld [vmem:[%s5992_s7 + $0x18] sm:$0xff] }
 0x5d1   : > { %v602_v61 = vld [vmem:[%s5992_s7 + $0x20] sm:$0xff] }
 0x5d3   : > { %v1536_v62 = vpop.f32.mrb[20].mxu0 }
 0x5d4   : > { %v1546_v63 = vadd.f32 %v1536_v62, %v1277_v43  ;;  %v4241_v1 = vpop.f32.mrb[21].mxu0  ;;  %v4538_v43 = vpack.c.bf16 %v596_v0, %v595_v49  ;;  %v603_v62 = vld [vmem:[%s5992_s7 + $0x28] sm:$0xff] }
 0x5d6   : > { %4539 = vmatpush3.bf16.msra.mxu1 %v4538_v43  ;;  %v3903_v43 = vld [vmem:[%s5993_s8] ss:$0 sm:$0xff] }
 0x5d7   : > { %v1541_v2 = vpop.f32.mrb[22].mxu0  ;;  %4552 = vmatprep.subr.bf16.mxu1 %v4906_v23 }
 0x5d8   : > { %v1547_v6 = vadd.f32 %v1541_v2, %v1282_v52  ;;  %v4244_v56 = vpop.f32.mrb[23].mxu0  ;;  %v600_v52 = vld [vmem:[%s5992_s7 + $0x10] sm:$0xff] }
 0x5db   : > { %v1794_v7 = vpop.f32.mrb[24].mxu0 }
 0x5dc   : > { %v1808_v8 = vadd.f32 %v1794_v7, %v1545_v59  ;;  %v4268_v38 = vpop.f32.mrb[25].mxu0  ;;  %v4544_v59 = vpack.c.bf16 %v601_v57, %v600_v52 }
 0x5de   : > { %v5404_v11 = vadd.f32 %v4837_v10, %v1808_v8  ;;  %4545 = vmatpush3.bf16.msra.mxu0 %v4544_v59 }
 0x5df   : > { %v1799_v13 = vpop.f32.mrb[26].mxu0  ;;  %4546 = vmatprep.subr.bf16.mxu0 %v4906_v23 }
 0x5e0   : > { %v1809_v40 = vadd.f32 %v1799_v13, %v1546_v63  ;;  %v4271_v14 = vpop.f32.mrb[27].mxu0  ;;  %v1814_v15 = vsel %vm607_vm0, %v5404_v11, 0.0  ;;  %v4547_v63 = vpack.c.bf16 %v603_v62, %v602_v61 }
 0x5e1   : > { %1815 = vadd.xlane.f32.xlu0 %v1814_v15  ;;  %v4840_v15 = vld [vmem:[%s6025_s1] ss:$0 sm:$0xff] }
 0x5e2   : > { %v5409_v18 = vadd.f32 %v4838_v17, %v1809_v40  ;;  %4548 = vmatpush3.bf16.msra.mxu0 %v4547_v63 }
 0x5e3   : > { %v1804_v20 = vpop.f32.mrb[28].mxu0  ;;  %4549 = vmatprep.subr.bf16.mxu0 %v4906_v23 }
 0x5e4   : > { %v1810_v21 = vadd.f32 %v1804_v20, %v1547_v6  ;;  %v4274_v22 = vpop.f32.mrb[29].mxu0  ;;  %v1817_v24 = vsel %vm607_vm0, %v5409_v18, 0.0 }
 0x5e5   : > { %1818 = vadd.xlane.f32.xlu1 %v1817_v24 }
 0x5e6   : > { %v5414_v27 = vadd.f32 %v4839_v26, %v1810_v21  ;;  %v4841_v21 = vld [vmem:[%s5987_s2] ss:$0 sm:$0xff] }
 0x5e8   : > { %v1820_v30 = vsel %vm614_vm1, %v5414_v27, 0.0 }
 0x5e9   : > { %1821 = vadd.xlane.f32.xlu0 %v1820_v30 }
 0x66e   : > { %v1816_v47 = vpop.xlane.xlu0 %1815 }
 0x66f   : > { %v1823_v32 = vmul.f32 0.0625, %v1816_v47 }
 0x671   : > { %v1826_v33 = vsub.f32 %v5404_v11, %v1823_v32 }
 0x672   : > { %v1819_v34 = vpop.xlane.xlu1 %1818 }
 0x673   : > { %v1824_v46 = vmul.f32 0.0625, %v1819_v34  ;;  %v1829_v51 = vmul.f32 %v1826_v33, %v1826_v33 }
 0x675   : > { %v1827_v35 = vsub.f32 %v5409_v18, %v1824_v46  ;;  %v1832_v36 = vsel %vm607_vm0, %v1829_v51, 0.0  ;;  %v604_v46 = vld [vmem:[%s5992_s7 + $0x30] sm:$0xff]  ;;  %v605_v51 = vld [vmem:[%s5992_s7 + $0x38] sm:$0xff] }
 0x676   : > { %1833 = vadd.xlane.f32.xlu0 %v1832_v36  ;;  %v1822_v48 = vpop.xlane.xlu0 %1821  ;;  %v3899_v36 = vld [vmem:[%s5991_s6] ss:$0 sm:$0xff] }
 0x677   : > { %v1825_v37 = vmul.f32 0.0625, %v1822_v48  ;;  %v1830_v39 = vmul.f32 %v1827_v35, %v1827_v35 }
 0x679   : > { %v1828_v41 = vsub.f32 %v5414_v27, %v1825_v37  ;;  %v1835_v58 = vsel %vm607_vm0, %v1830_v39, 0.0 }
 0x67a   : > { %1836 = vadd.xlane.f32.xlu0 %v1835_v58 }
 0x67b   : > { %v1831_v42 = vmul.f32 %v1828_v41, %v1828_v41 }
 0x67d   : > { %v1838_v44 = vsel %vm614_vm1, %v1831_v42, 0.0 }
 0x67e   : > { %1839 = vadd.xlane.f32.xlu1 %v1838_v44 }
 0x703   : > { %v1834_v1 = vpop.xlane.xlu0 %1833 }
 0x704   : > { %v1841_v2 = vmul.f32 0.0625, %v1834_v1 }
 0x706   : > { %v1844_v6 = vadd.f32 1e-05, %v1841_v2 }
 0x707   : > { %v1837_v56 = vpop.xlane.xlu0 %1836 }
 0x708   : > { %4787 = vrsqrt.f32 %v1844_v6  ;;  %v1842_v7 = vmul.f32 0.0625, %v1837_v56 }
 0x70a   : > { %v1845_v8 = vadd.f32 1e-05, %v1842_v7 }
 0x70b   : > { %v1840_v38 = vpop.xlane.xlu1 %1839 }
 0x70c   : > { %4789 = vrsqrt.f32 %v1845_v8  ;;  %v1843_v10 = vmul.f32 0.0625, %v1840_v38 }
 0x70e   : > { %v1846_v13 = vadd.f32 1e-05, %v1843_v10 }
 0x710   : > { %4791 = vrsqrt.f32 %v1846_v13 }
 0x712   : > { %v4788_v40 = vpop.eup %4787 }
 0x713   : > { %v1850_v14 = vmul.f32 %v4788_v40, %v1826_v33 }
 0x715   : > { %v1853_v17 = vmul.f32 %v4840_v15, %v1850_v14 }
 0x716   : > { %v4790_v20 = vpop.eup %4789 }
 0x717   : > { %v1856_v22 = vadd.f32 %v4841_v21, %v1853_v17  ;;  %v1851_v24 = vmul.f32 %v4790_v20, %v1827_v35  ;;  %v4550_v35 = vpack.c.bf16 %v605_v51, %v604_v46 }
 0x719   : > { %4280 = vmatmul.mubr.msk.f32.vlgmr.msra.gmra.mrb[24].mxu1 %vm607_vm0, %v1856_v22  ;;  %v1854_v26 = vmul.f32 %v4840_v15, %v1851_v24  ;;  %4551 = vmatpush3.bf16.msra.mxu0 %v4550_v35 }
 0x71a   : > { %v4792_v30 = vpop.eup %4791  ;;  %4282 = vmatprep.mubr.msk.f32.mxu1 %vm4907_vm2, %v4908_v25  ;;  %4555 = vmatprep.subr.bf16.mxu0 %v4906_v23 }
 0x71b   : > { %v1857_v47 = vadd.f32 %v4841_v21, %v1854_v26  ;;  %v1852_v32 = vmul.f32 %v4792_v30, %v1828_v41  ;;  %v3909_v30 = vld [vmem:[%s5988_s3 + $0x10] sm:$0xff] }
 0x71d   : > { %4283 = vmatmul.mubr.msk.f32.gmra.mrb[26].mxu1 %vm607_vm0, %v1857_v47  ;;  %v1855_v33 = vmul.f32 %v4840_v15, %v1852_v32  ;;  %v3910_v47 = vld [vmem:[%s5988_s3 + $0x18] sm:$0xff] }
 0x71e   : > { %4285 = vmatprep.mubr.msk.f32.mxu1 %vm4907_vm2, %v4908_v25  ;;  %v4553_v32 = vpack.c.bf16 %v3910_v47, %v3909_v30 }
 0x71f   : > { %v1858_v34 = vadd.f32 %v4841_v21, %v1855_v33 }
 0x720   : > { %4554 = vmatpush3.bf16.msra.mxu1 %v4553_v32 }
 0x721   : > { %4286 = vmatmul.mubr.msk.f32.gmra.mrb[28].mxu1 %vm607_vm0, %v1858_v34  ;;  %4614 = vmatprep.subr.bf16.mxu1 %v4906_v23 }
 0x722   : > { %4317 = vmatprep.mubr.msk.f32.mxu1 %vm4907_vm2, %v4908_v25 }
 0x7ec   : > { %v1940_v48 = vpop.f32.mrb[24].mxu1 }
 0x7ed   : > { %v1941_v37 = vadd.f32 %v3899_v36, %v1940_v48  ;;  %v4281_v39 = vpop.f32.mrb[25].mxu1 }
 0x7ef   : > { %4305 = vmatmul.mubr.msk.f32.vlgmr.msra.gmra.mrb[30].mxu0 %vm1960_vm4, %v1941_v37 }
 0x7f0   : > { %v1945_v41 = vpop.f32.mrb[26].mxu1  ;;  %4307 = vmatprep.mubr.msk.f32.mxu0 %vm4907_vm2, %v4908_v25 }
 0x7f1   : > { %v1946_v58 = vadd.f32 %v3899_v36, %v1945_v41  ;;  %v4284_v42 = vpop.f32.mrb[27].mxu1 }
 0x7f3   : > { %4308 = vmatmul.mubr.msk.f32.gmra.mrb[32].mxu0 %vm1960_vm4, %v1946_v58  ;;  %v5520_v58 = vld [vmem:[%s6025_s1 + $0x1] ss:$0 sm:$0xff] }
 0x7f4   : > { %v1950_v44 = vpop.f32.mrb[28].mxu1  ;;  %4310 = vmatprep.mubr.msk.f32.mxu0 %vm4907_vm2, %v4908_v25 }
 0x7f5   : > { %v1951_v49 = vadd.f32 %v3899_v36, %v1950_v44  ;;  %v4287_v0 = vpop.f32.mrb[29].mxu1  ;;  %v5525_v44 = vld [vmem:[%s5987_s2 + $0x1] ss:$0 sm:$0xff] }
 0x7f7   : > { %4311 = vmatmul.mubr.msk.f32.gmra.mrb[34].mxu0 %vm1960_vm4, %v1951_v49 }
 0x7f8   : > { %4332 = vmatprep.mubr.msk.f32.mxu0 %vm4907_vm2, %v4908_v25 }
 0x8c2   : > { %v2036_v45 = vpop.f32.mrb[30].mxu0 }
 0x8c3   : > { %v2037_v50 = vadd.f32 %v3903_v43, %v2036_v45  ;;  %v4306_v52 = vpop.f32.mrb[31].mxu0 }
 0x8c5   : > { %v5490_v53 = vadd.f32 %v2037_v50, %v5404_v11 }
 0x8c6   : > { %v2041_v57 = vpop.f32.mrb[32].mxu0 }
 0x8c7   : > { %v2042_v59 = vadd.f32 %v3903_v43, %v2041_v57  ;;  %v4309_v61 = vpop.f32.mrb[33].mxu0  ;;  %v2078_v62 = vsel %vm607_vm0, %v5490_v53, 0.0 }
 0x8c8   : > { %2079 = vadd.xlane.f32.xlu0 %v2078_v62 }
 0x8c9   : > { %v5495_v63 = vadd.f32 %v2042_v59, %v5409_v18 }
 0x8ca   : > { %v2046_v1 = vpop.f32.mrb[34].mxu0 }
 0x8cb   : > { %v2047_v2 = vadd.f32 %v3903_v43, %v2046_v1  ;;  %v4312_v6 = vpop.f32.mrb[35].mxu0  ;;  %v2081_v56 = vsel %vm607_vm0, %v5495_v63, 0.0  ;;  %v3926_v1 = vld [vmem:[%s5989_s4 + $0x1] ss:$0 sm:$0xff] }
 0x8cc   : > { %2082 = vadd.xlane.f32.xlu1 %v2081_v56 }
 0x8cd   : > { %v5500_v11 = vadd.f32 %v2047_v2, %v5414_v27 }
 0x8cf   : > { %v2084_v7 = vsel %vm614_vm1, %v5500_v11, 0.0 }
 0x8d0   : > { %2085 = vadd.xlane.f32.xlu0 %v2084_v7 }
 0x955   : > { %v2080_v8 = vpop.xlane.xlu0 %2079 }
 0x956   : > { %v2087_v38 = vmul.f32 0.0625, %v2080_v8 }
 0x958   : > { %v2090_v10 = vsub.f32 %v5490_v53, %v2087_v38 }
 0x959   : > { %v2083_v18 = vpop.xlane.xlu1 %2082 }
 0x95a   : > { %v2088_v13 = vmul.f32 0.0625, %v2083_v18  ;;  %v2093_v40 = vmul.f32 %v2090_v10, %v2090_v10 }
 0x95c   : > { %v2091_v14 = vsub.f32 %v5495_v63, %v2088_v13  ;;  %v2096_v15 = vsel %vm607_vm0, %v2093_v40, 0.0 }
 0x95d   : > { %2097 = vadd.xlane.f32.xlu1 %v2096_v15  ;;  %v2086_v17 = vpop.xlane.xlu0 %2085 }
 0x95e   : > { %v2089_v20 = vmul.f32 0.0625, %v2086_v17  ;;  %v2094_v27 = vmul.f32 %v2091_v14, %v2091_v14 }
 0x960   : > { %v2092_v21 = vsub.f32 %v5500_v11, %v2089_v20  ;;  %v2099_v22 = vsel %vm607_vm0, %v2094_v27, 0.0 }
 0x961   : > { %2100 = vadd.xlane.f32.xlu0 %v2099_v22 }
 0x962   : > { %v2095_v24 = vmul.f32 %v2092_v21, %v2092_v21 }
 0x964   : > { %v2102_v26 = vsel %vm614_vm1, %v2095_v24, 0.0 }
 0x965   : > { %2103 = vadd.xlane.f32.xlu1 %v2102_v26 }
 0x9ea   : > { %v2098_v33 = vpop.xlane.xlu1 %2097 }
 0x9eb   : > { %v2105_v34 = vmul.f32 0.0625, %v2098_v33 }
 0x9ed   : > { %v2108_v46 = vadd.f32 1e-05, %v2105_v34 }
 0x9ee   : > { %v2101_v51 = vpop.xlane.xlu0 %2100 }
 0x9ef   : > { %4793 = vrsqrt.f32 %v2108_v46  ;;  %v2106_v35 = vmul.f32 0.0625, %v2101_v51 }
 0x9f1   : > { %v2109_v36 = vadd.f32 1e-05, %v2106_v35 }
 0x9f2   : > { %v2104_v48 = vpop.xlane.xlu1 %2103 }
 0x9f3   : > { %4795 = vrsqrt.f32 %v2109_v36  ;;  %v2107_v37 = vmul.f32 0.0625, %v2104_v48 }
 0x9f5   : > { %v2110_v39 = vadd.f32 1e-05, %v2107_v37 }
 0x9f7   : > { %4797 = vrsqrt.f32 %v2110_v39 }
 0x9f9   : > { %v4794_v41 = vpop.eup %4793 }
 0x9fa   : > { %v2114_v42 = vmul.f32 %v4794_v41, %v2090_v10 }
 0x9fc   : > { %v2123_v49 = vmul.f32 %v5520_v58, %v2114_v42 }
 0x9fd   : > { %v4796_v0 = vpop.eup %4795 }
 0x9fe   : > { %v2132_v43 = vadd.f32 %v5525_v44, %v2123_v49  ;;  %v2115_v45 = vmul.f32 %v4796_v0, %v2091_v14 }
 0xa00   : > { %4318 = vmatmul.mubr.msk.f32.vlgmr.msra.gmra.mrb[30].mxu1 %vm607_vm0, %v2132_v43  ;;  %v2124_v50 = vmul.f32 %v5520_v58, %v2115_v45 }
 0xa01   : > { %v4798_v52 = vpop.eup %4797  ;;  %4320 = vmatprep.mubr.msk.f32.mxu1 %vm4907_vm2, %v4908_v25 }
 0xa02   : > { %v2133_v57 = vadd.f32 %v5525_v44, %v2124_v50  ;;  %v2116_v59 = vmul.f32 %v4798_v52, %v2092_v21 }
 0xa04   : > { %4321 = vmatmul.mubr.msk.f32.gmra.mrb[32].mxu1 %vm607_vm0, %v2133_v57  ;;  %v2125_v61 = vmul.f32 %v5520_v58, %v2116_v59 }
 0xa05   : > { %4323 = vmatprep.mubr.msk.f32.mxu1 %vm4907_vm2, %v4908_v25 }
 0xa06   : > { %v2134_v62 = vadd.f32 %v5525_v44, %v2125_v61 }
 0xa08   : > { %4324 = vmatmul.mubr.msk.f32.gmra.mrb[34].mxu1 %vm607_vm0, %v2134_v62 }
 0xa09   : > { %4350 = vmatprep.mubr.msk.f32.mxu1 %vm4907_vm2, %v4908_v25 }
 0xad3   : > { %v2216_v2 = vpop.f32.mrb[30].mxu1 }
 0xad4   : > { %v5545_v6 = vadd.f32 %v3926_v1, %v2216_v2  ;;  %v4319_v56 = vpop.f32.mrb[31].mxu1 }
 0xad6   : > { %v2233_v8 = vmul.f32 %v5545_v6, %v5155_v12  ;;  %v2387_v18 = vmul.f32 %v5545_v6, %v5163_v16  ;;  %v2384_v13 = vmul.f32 %v5545_v6, %v5121_v60  ;;  %v2739_v40 = vmul.f32 %v5545_v6, %v5168_v19 }
 0xad7   : > { %v2221_v7 = vpop.f32.mrb[32].mxu1  ;;  %v2995_v14 = vmul.f32 %v5545_v6, %v5190_v31  ;;  %v2236_v15 = vmul.f32 %v5545_v6, %v5235_v55  ;;  %v2742_v17 = vmul.f32 %v5545_v6, %v5233_v54  ;;  %v2998_v20 = vmul.f32 %v5545_v6, %v5254_v3 }
 0xad8   : > { %v5549_v38 = vadd.f32 %v3926_v1, %v2221_v7  ;;  %v4322_v10 = vpop.f32.mrb[33].mxu1  ;;  %v2992_v9 = vmul.f32 %v5545_v6, %v5095_v29 }
 0xada   : > { %v2234_v27 = vmul.f32 %v5549_v38, %v5155_v12  ;;  %v2388_v21 = vmul.f32 %v5549_v38, %v5163_v16  ;;  %v2385_v22 = vmul.f32 %v5549_v38, %v5121_v60  ;;  %v2740_v24 = vmul.f32 %v5549_v38, %v5168_v19 }
 0xadb   : > { %v2226_v26 = vpop.f32.mrb[34].mxu1  ;;  %v2996_v30 = vmul.f32 %v5549_v38, %v5190_v31  ;;  %v2237_v47 = vmul.f32 %v5549_v38, %v5235_v55  ;;  %v2743_v32 = vmul.f32 %v5549_v38, %v5233_v54  ;;  %v2999_v33 = vmul.f32 %v5549_v38, %v5254_v3 }
 0xadc   : > { %v5581_v34 = vadd.f32 %v3926_v1, %v2226_v26  ;;  %v4325_v46 = vpop.f32.mrb[35].mxu1  ;;  %v4709_v51 = vpack.i.bf16 %v2234_v27, %v2233_v8  ;;  %v4719_v35 = vpack.i.bf16 %v2388_v21, %v2387_v18  ;;  %v4714_v36 = vpack.i.bf16 %v2385_v22, %v2384_v13 }
 0xadd   : > { %v4724_v48 = vpack.i.bf16 %v2740_v24, %v2739_v40  ;;  %v4729_v37 = vpack.i.bf16 %v2996_v30, %v2995_v14  ;;  %v4734_v39 = vpack.i.bf16 %v2237_v47, %v2236_v15  ;;  %v4739_v41 = vpack.i.bf16 %v2743_v32, %v2742_v17 }
 0xade   : > { %4710 = vrot.lane.b32.xlu0 %v4709_v51, %s6030_s17  ;;  %v2235_v42 = vmul.f32 %v5581_v34, %v5155_v12  ;;  %v4744_v49 = vpack.i.bf16 %v2999_v33, %v2998_v20  ;;  %v2386_v0 = vmul.f32 %v5581_v34, %v5121_v60  ;;  %v2389_v43 = vmul.f32 %v5581_v34, %v5163_v16 }
 0xadf   : > { %v2741_v12 = vmul.f32 %v5581_v34, %v5168_v19  ;;  %v2997_v60 = vmul.f32 %v5581_v34, %v5190_v31  ;;  %v2238_v16 = vmul.f32 %v5581_v34, %v5235_v55  ;;  %v2744_v45 = vmul.f32 %v5581_v34, %v5233_v54 }
 0xae0   : > { %2246 = vrot.lane.b32.xlu1 %v2235_v42, %s6030_s17  ;;  %v3000_v19 = vmul.f32 %v5581_v34, %v5254_v3  ;;  %v2230_v8 = vmul.f32 %v5545_v6, %v5137_v4  ;;  %v2231_v14 = vmul.f32 %v5549_v38, %v5137_v4  ;;  %v2382_v15 = vmul.f32 %v5549_v38, %v5086_v28 }
 0xae1   : > { %v2232_v27 = vmul.f32 %v5581_v34, %v5137_v4  ;;  %v2383_v24 = vmul.f32 %v5581_v34, %v5086_v28  ;;  %v2381_v4 = vmul.f32 %v5545_v6, %v5086_v28 }
 0xae2   : > { %4720 = vrot.lane.b32.xlu0 %v4719_v35, %s6031_s20 }
 0xae4   : > { %4715 = vrot.lane.b32.xlu1 %v4714_v36, %s6030_s17 }
 0xae6   : > { %4725 = vrot.lane.b32.xlu0 %v4724_v48, %s6030_s17 }
 0xae8   : > { %2397 = vrot.lane.b32.xlu1 %v2386_v0, %s6030_s17 }
 0xaea   : > { %4730 = vrot.lane.b32.xlu0 %v4729_v37, %s6030_s17 }
 0xaec   : > { %2539 = vrot.lane.b32.xlu1 %v2389_v43, %s6031_s20 }
 0xaee   : > { %4735 = vrot.lane.b32.xlu0 %v4734_v39, %s6031_s20 }
 0xaf0   : > { %2752 = vrot.lane.b32.xlu1 %v2741_v12, %s6030_s17 }
 0xaf2   : > { %4740 = vrot.lane.b32.xlu0 %v4739_v41, %s6031_s20 }
 0xaf4   : > { %3008 = vrot.lane.b32.xlu1 %v2997_v60, %s6030_s17  ;;  %s3989_s17 = sshll.u32 %s5051_s18, 4 }
 0xaf5   : > { %s560_s19 = scalar_lea.vmem %s5996_s11, %s3989_s17  ;;  %s565_s23 = scalar_lea.vmem %s5999_s14, %s3989_s17 }
 0xaf6   : > { %4745 = vrot.lane.b32.xlu0 %v4744_v49, %s6031_s20  ;;  %s3991_s17 = sshll.u32 %s5022_s25, 8 }
 0xaf7   : > { %s5936_s29 = scalar_lea.hbm %s6000_s15, %s3991_s17 }
 0xaf8   : > { %2641 = vrot.lane.b32.xlu1 %v2238_v16, %s6031_s20 }
 0xafc   : > { %2894 = vrot.lane.b32.xlu1 %v2744_v45, %s6031_s20 }
 0xb00   : > { %3150 = vrot.lane.b32.xlu1 %v3000_v19, %s6031_s20 }
 0xb50   : > { %v4711_v31 = vpop.permute.xlu0 %4710 }
 0xb51   : > { %v4713_v50 = vunpack.i.h.bf16 %v4711_v31  ;;  %v4712_v52 = vunpack.i.l.bf16 %v4711_v31 }
 0xb52   : > { %v2247_v57 = vpop.permute.xlu1 %2246 }
 0xb53   : > { %v4556_v59 = vpack.c.bf16 %v4713_v50, %v4712_v52 }
 0xb54   : > { %v4721_v61 = vpop.permute.xlu0 %4720 }
 0xb55   : > { %4558 = vmatpush3.bf16.xpose.msk.msra.mxu0 %vm5148_vm13, %v4556_v59  ;;  %v4723_v21 = vunpack.i.h.bf16 %v4721_v61  ;;  %v4722_v22 = vunpack.i.l.bf16 %v4721_v61 }
 0xb56   : > { %v4716_v55 = vpop.permute.xlu1 %4715  ;;  %4330 = vmatprep.subr.mxu0 %v4908_v25 }
 0xb57   : > { %v4718_v54 = vunpack.i.h.bf16 %v4716_v55  ;;  %v4717_v62 = vunpack.i.l.bf16 %v4716_v55  ;;  %v4564_v30 = vpack.c.bf16 %v4723_v21, %v4722_v22 }
 0xb58   : > { %v5618_v1 = vpop.permute.xlu0 %4725 }
 0xb59   : > { %v4560_v2 = vpack.c.bf16 %v4718_v54, %v4717_v62 }
 0xb5a   : > { %v2398_v3 = vpop.permute.xlu1 %2397 }
 0xb5b   : > { %4616 = vmatpush3.bf16.xpose.msk.msra.mxu1 %vm5148_vm13, %v4560_v2 }
 0xb5c   : > { %v5622_v56 = vpop.permute.xlu0 %4730  ;;  %4615 = vmatprep.subr.mxu1 %v4908_v25 }
 0xb5d   : > { %4331 = vmatpush3.xpose.msk.msra.mxu0 %vm607_vm0, %v2247_v57 }
 0xb5e   : > { %v2540_v7 = vpop.permute.xlu1 %2539  ;;  %4559 = vmatprep.subr.bf16.mxu0 %v4906_v23 }
 0xb60   : > { %v4736_v10 = vpop.permute.xlu0 %4735  ;;  %4333 = vmatmul.mubr.msk.f32.vlgmr.msra.gmra.mrb[36].mxu0 %vm607_vm0, %v2230_v8 }
 0xb61   : > { %v4738_v18 = vunpack.i.h.bf16 %v4736_v10  ;;  %v4737_v13 = vunpack.i.l.bf16 %v4736_v10  ;;  %4562 = vmatpush3.bf16.xpose.msk.msra.mxu0 %vm5148_vm13, %v4560_v2  ;;  %4335 = vmatprep.mubr.msk.f32.mxu0 %vm4907_vm2, %v4908_v25 }
 0xb62   : > { %v5634_v40 = vpop.permute.xlu1 %2752  ;;  %4345 = vmatprep.subr.mxu0 %v4908_v25 }
 0xb63   : > { %4617 = vmatpush3.xpose.msk.msra.mxu1 %vm607_vm0, %v2398_v3  ;;  %v4567_v17 = vpack.c.bf16 %v4738_v18, %v4737_v13 }
 0xb64   : > { %4336 = vmatmul.mubr.msk.f32.gmra.mrb[38].mxu0 %vm607_vm0, %v2231_v14  ;;  %4566 = vmatprep.subr.bf16.mxu1 %v4906_v23 }
 0xb65   : > { %4338 = vmatprep.mubr.msk.f32.mxu0 %vm4907_vm2, %v4908_v25 }
 0xb66   : > { %v5646_v20 = vpop.permute.xlu1 %3008  ;;  %4351 = vmatmul.mubr.msk.f32.vlgmr.msra.gmra.mrb[36].mxu1 %vm607_vm0, %v2382_v15 }
 0xb67   : > { %4568 = vmatpush3.bf16.msra.mxu1 %v4567_v17  ;;  %4353 = vmatprep.mubr.msk.f32.mxu1 %vm4907_vm2, %v4908_v25 }
 0xb68   : > { %4339 = vmatmul.mubr.msk.f32.gmra.mrb[40].mxu0 %vm607_vm0, %v2232_v27  ;;  %4375 = vmatprep.subr.mxu1 %v4908_v25 }
 0xb69   : > { %4346 = vmatpush3.xpose.msk.msra.mxu0 %vm607_vm0, %v2398_v3  ;;  %4347 = vmatprep.mubr.msk.f32.mxu0 %vm4907_vm2, %v4908_v25 }
 0xb6a   : > { %v2642_v26 = vpop.permute.xlu1 %2641  ;;  %4354 = vmatmul.mubr.msk.f32.gmra.mrb[38].mxu1 %vm607_vm0, %v2383_v24  ;;  %4563 = vmatprep.subr.bf16.mxu0 %v4906_v23 }
 0xb6b   : > { %4376 = vmatpush3.msk.msra.mxu1 %vm1100_vm14, %v2642_v26  ;;  %4377 = vmatprep.mubr.msk.f32.mxu1 %vm4907_vm2, %v4908_v25 }
 0xb6c   : > { %4348 = vmatmul.mubr.msk.f32.vlgmr.msra.gmra.mrb[42].mxu0 %vm607_vm0, %v2381_v4  ;;  %4573 = vmatprep.subr.bf16.mxu1 %v4906_v23 }
 0xb6d   : > { %4565 = vmatpush3.bf16.msra.mxu0 %v4564_v30  ;;  %4362 = vmatprep.mubr.msk.f32.mxu0 %vm4907_vm2, %v4908_v25 }
 0xb6e   : > { %4360 = vmatprep.subr.mxu0 %v4908_v25 }
 0xb71   : > { %4361 = vmatpush3.msk.msra.mxu0 %vm1100_vm14, %v2540_v7 }
 0xb72   : > { %4569 = vmatprep.subr.bf16.mxu0 %v4906_v23 }
 0xc33   : > { %v2329_v28 = vpop.f32.mrb[36].mxu0 }
 0xc34   : > { %v4334_v47 = vpop.f32.mrb[37].mxu0  ;;  %v2343_v32 = vmul.f32 0.5, %v2329_v28 }
 0xc36   : > { %v2346_v36 = vsel %vm885_vm15, %v2343_v32, -inf }
 0xc37   : > { %v2334_v33 = vpop.f32.mrb[38].mxu0 }
 0xc38   : > { %v2344_v46 = vmul.f32 0.5, %v2334_v33  ;;  %v4337_v51 = vpop.f32.mrb[39].mxu0 }
 0xc39   : > { %v2485_v35 = vpop.f32.mrb[36].mxu1 }
 0xc3a   : > { %v2347_v48 = vsel %vm885_vm15, %v2344_v46, -inf  ;;  %v4352_v37 = vpop.f32.mrb[37].mxu1  ;;  %v2495_v43 = vmul.f32 0.5, %v2485_v35 }
 0xc3b   : > { %v2349_v39 = vmax.f32 %v2346_v36, %v2347_v48  ;;  %v2339_v41 = vpop.f32.mrb[40].mxu0 }
 0xc3c   : > { %v2345_v42 = vmul.f32 0.5, %v2339_v41  ;;  %v4340_v49 = vpop.f32.mrb[41].mxu0  ;;  %v2498_v57 = vsel %vm885_vm15, %v2495_v43, -inf }
 0xc3d   : > { %v2490_v0 = vpop.f32.mrb[38].mxu1 }
 0xc3e   : > { %v2348_v12 = vsel %vm888_vm3, %v2345_v42, -inf  ;;  %v4355_v60 = vpop.f32.mrb[39].mxu1  ;;  %v2496_v19 = vmul.f32 0.5, %v2490_v0 }
 0xc3f   : > { %v2350_v16 = vmax.f32 %v2349_v39, %v2348_v12  ;;  %v2480_v45 = vpop.f32.mrb[42].mxu0 }
 0xc40   : > { %v2494_v31 = vmul.f32 0.5, %v2480_v45  ;;  %v4349_v50 = vpop.f32.mrb[43].mxu0  ;;  %v2499_v54 = vsel %vm888_vm3, %v2496_v19, -inf }
 0xc41   : > { %v2351_v52 = vrot.slane %v2350_v16, 4 }
 0xc42   : > { %v2497_v59 = vsel %vm885_vm15, %v2494_v31, -inf }
 0xc43   : > { %v2352_v61 = vmax.f32 %v2350_v16, %v2351_v52  ;;  %v2500_v55 = vmax.f32 %v2497_v59, %v2498_v57 }
 0xc45   : > { %v2353_v62 = vrot.slane %v2352_v61, 2  ;;  %v2501_v2 = vmax.f32 %v2500_v55, %v2499_v54 }
 0xc47   : > { %v2354_v3 = vmax.f32 %v2352_v61, %v2353_v62  ;;  %v2502_v7 = vrot.slane %v2501_v2, 4 }
 0xc49   : > { %v2355_v8 = vrot.slane %v2354_v3, 1  ;;  %v2503_v10 = vmax.f32 %v2501_v2, %v2502_v7  ;;  %v4741_v7 = vpop.permute.xlu0 %4740 }
 0xc4b   : > { %v2356_v18 = vmax.f32 %v2354_v3, %v2355_v8  ;;  %v2504_v13 = vrot.slane %v2503_v10, 2 }
 0xc4d   : > { %v2357_v14 = vsub.f32 %v2343_v32, %v2356_v18  ;;  %v2358_v15 = vsub.f32 %v2344_v46, %v2356_v18  ;;  %v2359_v17 = vsub.f32 %v2345_v42, %v2356_v18  ;;  %v2505_v27 = vmax.f32 %v2503_v10, %v2504_v13 }
 0xc4e   : > { %v4743_v10 = vunpack.i.h.bf16 %v4741_v7  ;;  %v4742_v18 = vunpack.i.l.bf16 %v4741_v7 }
 0xc4f   : > { %v2360_v21 = vmul.f32 1.442695, %v2357_v14  ;;  %v2362_v22 = vmul.f32 1.442695, %v2358_v15  ;;  %v2364_v24 = vmul.f32 1.442695, %v2359_v17 }
 0xc50   : > { %v2506_v26 = vrot.slane %v2505_v27, 1 }
 0xc51   : > { %4799 = vpow2.f32 %v2360_v21  ;;  %v4728_v21 = vunpack.i.h.bf16 %v5618_v1 }
 0xc52   : > { %4801 = vpow2.f32 %v2362_v22  ;;  %v2507_v4 = vmax.f32 %v2505_v27, %v2506_v26  ;;  %v4574_v27 = vpack.c.bf16 %v4743_v10, %v4742_v18  ;;  %v4727_v22 = vunpack.i.l.bf16 %v5618_v1  ;;  %v2895_v26 = vpop.permute.xlu1 %2894 }
 0xc53   : > { %4803 = vpow2.f32 %v2364_v24  ;;  %v4733_v1 = vunpack.i.h.bf16 %v5622_v56 }
 0xc54   : > { %v2508_v30 = vsub.f32 %v2494_v31, %v2507_v4  ;;  %v2509_v28 = vsub.f32 %v2495_v43, %v2507_v4  ;;  %v2510_v47 = vsub.f32 %v2496_v19, %v2507_v4 }
 0xc56   : > { %v2511_v33 = vmul.f32 1.442695, %v2508_v30  ;;  %v2513_v51 = vmul.f32 1.442695, %v2509_v28  ;;  %v2515_v35 = vmul.f32 1.442695, %v2510_v47  ;;  %v4570_v47 = vpack.c.bf16 %v4728_v21, %v4727_v22 }
 0xc58   : > { %4805 = vpow2.f32 %v2511_v33  ;;  %v4732_v33 = vunpack.i.l.bf16 %v5622_v56  ;;  %v2737_v56 = vmul.f32 %v5549_v38, %v5142_v5 }
 0xc59   : > { %4807 = vpow2.f32 %v2513_v51  ;;  %v2736_v51 = vmul.f32 %v5545_v6, %v5142_v5 }
 0xc5a   : > { %4809 = vpow2.f32 %v2515_v35  ;;  %v4577_v35 = vpack.c.bf16 %v4733_v1, %v4732_v33 }
 0xc5b   : > { %v4800_v32 = vpop.eup %4799 }
 0xc5c   : > { %v4802_v46 = vpop.eup %4801  ;;  %v2366_v36 = vsel %vm885_vm15, %v4800_v32, 0.0 }
 0xc5d   : > { %v4804_v48 = vpop.eup %4803  ;;  %v2367_v37 = vsel %vm885_vm15, %v4802_v46, 0.0 }
 0xc5e   : > { %v2368_v39 = vadd.f32 %v2367_v37, %v2366_v36  ;;  %v2369_v41 = vsel %vm888_vm3, %v4804_v48, 0.0 }
 0xc60   : > { %v2370_v42 = vadd.f32 %v2369_v41, %v2368_v39 }
 0xc62   : > { %v4806_v49 = vpop.eup %4805  ;;  %v2371_v0 = vrot.slane %v2370_v42, 4 }
 0xc63   : > { %v4808_v43 = vpop.eup %4807  ;;  %v2517_v12 = vsel %vm885_vm15, %v4806_v49, 0.0 }
 0xc64   : > { %v4810_v60 = vpop.eup %4809  ;;  %v2372_v16 = vadd.f32 %v2371_v0, %v2370_v42  ;;  %v2518_v45 = vsel %vm885_vm15, %v4808_v43, 0.0 }
 0xc65   : > { %v2519_v19 = vadd.f32 %v2518_v45, %v2517_v12  ;;  %v2520_v50 = vsel %vm888_vm3, %v4810_v60, 0.0 }
 0xc66   : > { %v2373_v31 = vrot.slane %v2372_v16, 2 }
 0xc67   : > { %v2521_v52 = vadd.f32 %v2520_v50, %v2519_v19 }
 0xc68   : > { %v2374_v57 = vadd.f32 %v2373_v31, %v2372_v16 }
 0xc69   : > { %v2522_v59 = vrot.slane %v2521_v52, 4 }
 0xc6a   : > { %v2375_v61 = vrot.slane %v2374_v57, 1 }
 0xc6b   : > { %v2523_v55 = vadd.f32 %v2522_v59, %v2521_v52 }
 0xc6c   : > { %v2376_v54 = vadd.f32 %v2375_v61, %v2374_v57 }
 0xc6d   : > { %v2524_v62 = vrot.slane %v2523_v55, 2 }
 0xc6e   : > { %4811 = vrcp.f32 %v2376_v54 }
 0xc6f   : > { %v2525_v2 = vadd.f32 %v2524_v62, %v2523_v55 }
 0xc71   : > { %v2526_v3 = vrot.slane %v2525_v2, 1 }
 0xc73   : > { %v2527_v8 = vadd.f32 %v2526_v3, %v2525_v2 }
 0xc75   : > { %4813 = vrcp.f32 %v2527_v8 }
 0xc78   : > { %v4812_v13 = vpop.eup %4811 }
 0xc79   : > { %v2378_v14 = vmul.f32 %v4812_v13, %v4800_v32  ;;  %v2379_v15 = vmul.f32 %v4812_v13, %v4802_v46  ;;  %v2380_v17 = vmul.f32 %v4812_v13, %v4804_v48 }
 0xc7b   : > { %4378 = vmatmul.mubr.msk.f32.vlgmr.msra.gmra.mrb[40].mxu1 %vm885_vm15, %v2378_v14 }
 0xc7c   : > { %4575 = vmatpush3.bf16.msra.mxu1 %v4574_v27  ;;  %4380 = vmatprep.mubr.msk.f32.mxu1 %vm4907_vm2, %v4908_v25 }
 0xc7d   : > { %4405 = vmatprep.subr.mxu1 %v4908_v25 }
 0xc7f   : > { %v4814_v24 = vpop.eup %4813  ;;  %4381 = vmatmul.mubr.msk.f32.gmra.mrb[42].mxu1 %vm885_vm15, %v2379_v15 }
 0xc80   : > { %4406 = vmatpush3.msk.msra.mxu1 %vm1100_vm14, %v2895_v26  ;;  %v2529_v4 = vmul.f32 %v4814_v24, %v4806_v49  ;;  %4383 = vmatprep.mubr.msk.f32.mxu1 %vm4907_vm2, %v4908_v25  ;;  %v2530_v30 = vmul.f32 %v4814_v24, %v4808_v43  ;;  %v2531_v28 = vmul.f32 %v4814_v24, %v4810_v60 }
 0xc81   : > { %4580 = vmatprep.subr.bf16.mxu1 %v4906_v23 }
 0xc82   : > { %4363 = vmatmul.mubr.msk.f32.vlgmr.msra.gmra.mrb[44].mxu0 %vm885_vm15, %v2529_v4 }
 0xc83   : > { %4572 = vmatpush3.bf16.xpose.msk.msra.mxu0 %vm5148_vm13, %v4570_v47  ;;  %4384 = vmatmul.mubr.msk.f32.gmra.mrb[44].mxu1 %vm885_vm15, %v2380_v17 }
 0xc84   : > { %4365 = vmatprep.mubr.msk.f32.mxu0 %vm4907_vm2, %v4908_v25  ;;  %4390 = vmatprep.subr.mxu0 %v4908_v25 }
 0xc85   : > { %4407 = vmatprep.mubr.msk.f32.mxu1 %vm4907_vm2, %v4908_v25 }
 0xc86   : > { %4366 = vmatmul.mubr.msk.f32.gmra.mrb[46].mxu0 %vm885_vm15, %v2530_v30 }
 0xc87   : > { %4368 = vmatprep.mubr.msk.f32.mxu0 %vm4907_vm2, %v4908_v25 }
 0xc8a   : > { %4369 = vmatmul.mubr.msk.f32.gmra.mrb[48].mxu0 %vm885_vm15, %v2531_v28 }
 0xc8b   : > { %4391 = vmatpush3.xpose.msk.msra.mxu0 %vm607_vm0, %v5634_v40  ;;  %4392 = vmatprep.mubr.msk.f32.mxu0 %vm4907_vm2, %v4908_v25  ;;  %v2738_v40 = vmul.f32 %v5581_v34, %v5142_v5  ;;  %v2993_v5 = vmul.f32 %v5549_v38, %v5095_v29 }
 0xc8c   : > { %4576 = vmatprep.subr.bf16.mxu0 %v4906_v23 }
 0xc8e   : > { %4393 = vmatmul.mubr.msk.f32.vlgmr.msra.gmra.mrb[50].mxu0 %vm607_vm0, %v2736_v51 }
 0xc8f   : > { %4579 = vmatpush3.bf16.xpose.msk.msra.mxu0 %vm5148_vm13, %v4577_v35  ;;  %4395 = vmatprep.mubr.msk.f32.mxu0 %vm4907_vm2, %v4908_v25 }
 0xc90   : > { %4420 = vmatprep.subr.mxu0 %v4908_v25 }
 0xc92   : > { %4396 = vmatmul.mubr.msk.f32.gmra.mrb[52].mxu0 %vm607_vm0, %v2737_v56 }
 0xc93   : > { %4398 = vmatprep.mubr.msk.f32.mxu0 %vm4907_vm2, %v4908_v25 }
 0xc96   : > { %4399 = vmatmul.mubr.msk.f32.gmra.mrb[54].mxu0 %vm607_vm0, %v2738_v40 }
 0xc97   : > { %4421 = vmatpush3.xpose.msk.msra.mxu0 %vm607_vm0, %v5646_v20  ;;  %4422 = vmatprep.mubr.msk.f32.mxu0 %vm4907_vm2, %v4908_v25  ;;  %v2994_v20 = vmul.f32 %v5581_v34, %v5095_v29 }
 0xc98   : > { %4583 = vmatprep.subr.bf16.mxu0 %v4906_v23 }
 0xc9a   : > { %4423 = vmatmul.mubr.msk.f32.vlgmr.msra.gmra.mrb[56].mxu0 %vm607_vm0, %v2992_v9 }
 0xc9b   : > { %4425 = vmatprep.mubr.msk.f32.mxu0 %vm4907_vm2, %v4908_v25 }
 0xc9e   : > { %4426 = vmatmul.mubr.msk.f32.gmra.mrb[58].mxu0 %vm607_vm0, %v2993_v5 }
 0xc9f   : > { %4428 = vmatprep.mubr.msk.f32.mxu0 %vm4907_vm2, %v4908_v25 }
 0xca2   : > { %4429 = vmatmul.mubr.msk.f32.gmra.mrb[60].mxu0 %vm607_vm0, %v2994_v20 }
 0xca3   : > { %4450 = vmatprep.mubr.msk.f32.mxu0 %vm4907_vm2, %v4908_v25 }
 0xd4e   : > { %v2722_v6 = vpop.f32.mrb[40].mxu1 }
 0xd4f   : > { %v4379_v32 = vpop.f32.mrb[41].mxu1 }
 0xd52   : > { %v2727_v46 = vpop.f32.mrb[42].mxu1 }
 0xd53   : > { %v4382_v36 = vpop.f32.mrb[43].mxu1 }
 0xd55   : > { %v2620_v48 = vpop.f32.mrb[44].mxu0 }
 0xd56   : > { %v5753_v37 = vadd.f32 %v2722_v6, %v2620_v48  ;;  %v4364_v38 = vpop.f32.mrb[45].mxu0  ;;  %v2732_v39 = vpop.f32.mrb[44].mxu1 }
 0xd57   : > { %v4385_v41 = vpop.f32.mrb[45].mxu1 }
 0xd59   : > { %v2625_v42 = vpop.f32.mrb[46].mxu0 }
 0xd5a   : > { %v5755_v49 = vadd.f32 %v2727_v46, %v2625_v42  ;;  %v4367_v0 = vpop.f32.mrb[47].mxu0 }
 0xd5d   : > { %v2630_v29 = vpop.f32.mrb[48].mxu0 }
 0xd5e   : > { %v5757_v34 = vadd.f32 %v2732_v39, %v2630_v29  ;;  %v4370_v43 = vpop.f32.mrb[49].mxu0 }
 0xd61   : > { %v2835_v12 = vpop.f32.mrb[50].mxu0 }
 0xd62   : > { %v4394_v60 = vpop.f32.mrb[51].mxu0  ;;  %v2849_v16 = vmul.f32 0.5, %v2835_v12 }
 0xd64   : > { %v2852_v50 = vsel %vm885_vm15, %v2849_v16, -inf }
 0xd65   : > { %v2840_v45 = vpop.f32.mrb[52].mxu0 }
 0xd66   : > { %v2850_v19 = vmul.f32 0.5, %v2840_v45  ;;  %v4397_v31 = vpop.f32.mrb[53].mxu0 }
 0xd68   : > { %v2853_v52 = vsel %vm885_vm15, %v2850_v19, -inf }
 0xd69   : > { %v2855_v57 = vmax.f32 %v2852_v50, %v2853_v52  ;;  %v2845_v59 = vpop.f32.mrb[54].mxu0 }
 0xd6a   : > { %v2851_v61 = vmul.f32 0.5, %v2845_v59  ;;  %v4400_v55 = vpop.f32.mrb[55].mxu0 }
 0xd6c   : > { %v2854_v54 = vsel %vm888_vm3, %v2851_v61, -inf }
 0xd6d   : > { %v2856_v62 = vmax.f32 %v2855_v57, %v2854_v54  ;;  %v3091_v2 = vpop.f32.mrb[56].mxu0 }
 0xd6e   : > { %v4424_v3 = vpop.f32.mrb[57].mxu0  ;;  %v3105_v8 = vmul.f32 0.5, %v3091_v2 }
 0xd6f   : > { %v2857_v7 = vrot.slane %v2856_v62, 4 }
 0xd70   : > { %v3108_v17 = vsel %vm885_vm15, %v3105_v8, -inf }
 0xd71   : > { %v2858_v10 = vmax.f32 %v2856_v62, %v2857_v7  ;;  %v3096_v18 = vpop.f32.mrb[58].mxu0 }
 0xd72   : > { %v3106_v13 = vmul.f32 0.5, %v3096_v18  ;;  %v4427_v14 = vpop.f32.mrb[59].mxu0 }
 0xd73   : > { %v2859_v15 = vrot.slane %v2858_v10, 2 }
 0xd74   : > { %v3109_v27 = vsel %vm885_vm15, %v3106_v13, -inf }
 0xd75   : > { %v2860_v21 = vmax.f32 %v2858_v10, %v2859_v15  ;;  %v3111_v22 = vmax.f32 %v3108_v17, %v3109_v27  ;;  %v3101_v24 = vpop.f32.mrb[60].mxu0  ;;  %v4746_v17 = vpop.permute.xlu0 %4745 }
 0xd76   : > { %v3107_v26 = vmul.f32 0.5, %v3101_v24  ;;  %v4430_v4 = vpop.f32.mrb[61].mxu0 }
 0xd77   : > { %v2861_v30 = vrot.slane %v2860_v21, 1 }
 0xd78   : > { %v3110_v28 = vsel %vm888_vm3, %v3107_v26, -inf }
 0xd79   : > { %v2862_v47 = vmax.f32 %v2860_v21, %v2861_v30  ;;  %v3112_v1 = vmax.f32 %v3111_v22, %v3110_v28  ;;  %v4748_v21 = vunpack.i.h.bf16 %v4746_v17  ;;  %v4747_v22 = vunpack.i.l.bf16 %v4746_v17  ;;  %v3917_v17 = vld [vmem:[%s5992_s7 + $0x50] sm:$0xff] }
 0xd7b   : > { %v2863_v33 = vsub.f32 %v2849_v16, %v2862_v47  ;;  %v2864_v51 = vsub.f32 %v2850_v19, %v2862_v47  ;;  %v2865_v35 = vsub.f32 %v2851_v61, %v2862_v47  ;;  %v3113_v56 = vrot.slane %v3112_v1, 4 }
 0xd7d   : > { %v2866_v40 = vmul.f32 1.442695, %v2863_v33  ;;  %v2868_v9 = vmul.f32 1.442695, %v2864_v51  ;;  %v2870_v5 = vmul.f32 1.442695, %v2865_v35  ;;  %v3114_v20 = vmax.f32 %v3112_v1, %v3113_v56  ;;  %v3151_v33 = vpop.permute.xlu1 %3150 }
 0xd7e   : > { %v4581_v1 = vpack.c.bf16 %v4748_v21, %v4747_v22  ;;  %v3918_v21 = vld [vmem:[%s5992_s7 + $0x58] sm:$0xff] }
 0xd7f   : > { %4815 = vpow2.f32 %v2866_v40  ;;  %v3115_v6 = vrot.slane %v3114_v20, 2  ;;  %v4590_v22 = vpack.c.bf16 %v3918_v21, %v3917_v17 }
 0xd80   : > { %4817 = vpow2.f32 %v2868_v9 }
 0xd81   : > { %4819 = vpow2.f32 %v2870_v5  ;;  %v3116_v32 = vmax.f32 %v3114_v20, %v3115_v6 }
 0xd83   : > { %v3117_v46 = vrot.slane %v3116_v32, 1 }
 0xd85   : > { %v3118_v36 = vmax.f32 %v3116_v32, %v3117_v46 }
 0xd87   : > { %v3119_v48 = vsub.f32 %v3105_v8, %v3118_v36  ;;  %v3120_v38 = vsub.f32 %v3106_v13, %v3118_v36  ;;  %v3121_v39 = vsub.f32 %v3107_v26, %v3118_v36 }
 0xd89   : > { %v4816_v41 = vpop.eup %4815  ;;  %v3122_v42 = vmul.f32 1.442695, %v3119_v48  ;;  %v3124_v0 = vmul.f32 1.442695, %v3120_v38  ;;  %v3126_v29 = vmul.f32 1.442695, %v3121_v39 }
 0xd8a   : > { %v4818_v43 = vpop.eup %4817  ;;  %v2872_v12 = vsel %vm885_vm15, %v4816_v41, 0.0 }
 0xd8b   : > { %v4820_v60 = vpop.eup %4819  ;;  %v2873_v16 = vsel %vm885_vm15, %v4818_v43, 0.0  ;;  %4821 = vpow2.f32 %v3122_v42 }
 0xd8c   : > { %v2874_v45 = vadd.f32 %v2873_v16, %v2872_v12  ;;  %4823 = vpow2.f32 %v3124_v0  ;;  %v2875_v19 = vsel %vm888_vm3, %v4820_v60, 0.0 }
 0xd8d   : > { %4825 = vpow2.f32 %v3126_v29 }
 0xd8e   : > { %v2876_v31 = vadd.f32 %v2875_v19, %v2874_v45 }
 0xd90   : > { %v2877_v50 = vrot.slane %v2876_v31, 4 }
 0xd92   : > { %v2878_v52 = vadd.f32 %v2877_v50, %v2876_v31 }
 0xd94   : > { %v2879_v57 = vrot.slane %v2878_v52, 2 }
 0xd95   : > { %v4822_v59 = vpop.eup %4821 }
 0xd96   : > { %v4824_v61 = vpop.eup %4823  ;;  %v2880_v55 = vadd.f32 %v2879_v57, %v2878_v52  ;;  %v3128_v54 = vsel %vm885_vm15, %v4822_v59, 0.0 }
 0xd97   : > { %v4826_v62 = vpop.eup %4825  ;;  %v3129_v2 = vsel %vm885_vm15, %v4824_v61, 0.0 }
 0xd98   : > { %v2881_v3 = vrot.slane %v2880_v55, 1  ;;  %v3130_v7 = vadd.f32 %v3129_v2, %v3128_v54  ;;  %v3131_v8 = vsel %vm888_vm3, %v4826_v62, 0.0 }
 0xd9a   : > { %v2882_v10 = vadd.f32 %v2881_v3, %v2880_v55  ;;  %v3132_v18 = vadd.f32 %v3131_v8, %v3130_v7 }
 0xd9c   : > { %4827 = vrcp.f32 %v2882_v10  ;;  %v3133_v13 = vrot.slane %v3132_v18, 4  ;;  %v3912_v10 = vld [vmem:[%s5990_s5 + $0x10] sm:$0xff] }
 0xd9e   : > { %v3134_v14 = vadd.f32 %v3133_v13, %v3132_v18  ;;  %v3913_v18 = vld [vmem:[%s5990_s5 + $0x18] sm:$0xff] }
 0xd9f   : > { %v4584_v13 = vpack.c.bf16 %v3913_v18, %v3912_v10 }
 0xda0   : > { %v3135_v15 = vrot.slane %v3134_v14, 2 }
 0xda1   : > { %4585 = vmatpush3.bf16.msra.mxu0 %v4584_v13 }
 0xda2   : > { %v3136_v27 = vadd.f32 %v3135_v15, %v3134_v14  ;;  %v3915_v14 = vld [vmem:[%s5992_s7 + $0x40] sm:$0xff]  ;;  %v3916_v15 = vld [vmem:[%s5992_s7 + $0x48] sm:$0xff] }
 0xda4   : > { %v3137_v24 = vrot.slane %v3136_v27, 1 }
 0xda6   : > { %v4828_v26 = vpop.eup %4827  ;;  %v3138_v4 = vadd.f32 %v3137_v24, %v3136_v27  ;;  %v4587_v27 = vpack.c.bf16 %v3916_v15, %v3915_v14  ;;  %v3919_v24 = vld [vmem:[%s5992_s7 + $0x60] sm:$0xff] }
 0xda7   : > { %v2884_v30 = vmul.f32 %v4828_v26, %v4816_v41  ;;  %v2885_v28 = vmul.f32 %v4828_v26, %v4818_v43  ;;  %v2886_v47 = vmul.f32 %v4828_v26, %v4820_v60  ;;  %v3920_v26 = vld [vmem:[%s5992_s7 + $0x68] sm:$0xff] }
 0xda8   : > { %4829 = vrcp.f32 %v3138_v4  ;;  %v4593_v4 = vpack.c.bf16 %v3920_v26, %v3919_v24 }
 0xda9   : > { %4408 = vmatmul.mubr.msk.f32.vlgmr.msra.gmra.mrb[46].mxu1 %vm885_vm15, %v2884_v30 }
 0xdaa   : > { %4582 = vmatpush3.bf16.msra.mxu1 %v4581_v1  ;;  %4410 = vmatprep.mubr.msk.f32.mxu1 %vm4907_vm2, %v4908_v25 }
 0xdab   : > { %4435 = vmatprep.subr.mxu1 %v4908_v25 }
 0xdad   : > { %4411 = vmatmul.mubr.msk.f32.gmra.mrb[48].mxu1 %vm885_vm15, %v2885_v28 }
 0xdae   : > { %4436 = vmatpush3.msk.msra.mxu1 %vm1100_vm14, %v3151_v33  ;;  %4413 = vmatprep.mubr.msk.f32.mxu1 %vm4907_vm2, %v4908_v25 }
 0xdaf   : > { %4586 = vmatprep.subr.bf16.mxu1 %v4906_v23 }
 0xdb1   : > { %4414 = vmatmul.mubr.msk.f32.gmra.mrb[50].mxu1 %vm885_vm15, %v2886_v47 }
 0xdb2   : > { %v4830_v51 = vpop.eup %4829  ;;  %4437 = vmatprep.mubr.msk.f32.mxu1 %vm4907_vm2, %v4908_v25 }
 0xdb3   : > { %v3140_v35 = vmul.f32 %v4830_v51, %v4822_v59  ;;  %v3141_v56 = vmul.f32 %v4830_v51, %v4824_v61  ;;  %v3142_v40 = vmul.f32 %v4830_v51, %v4826_v62 }
 0xdb5   : > { %4438 = vmatmul.mubr.msk.f32.vlgmr.msra.gmra.mrb[52].mxu1 %vm885_vm15, %v3140_v35 }
 0xdb6   : > { %4440 = vmatprep.mubr.msk.f32.mxu1 %vm4907_vm2, %v4908_v25  ;;  %4588 = vmatpush3.bf16.msra.mxu1 %v4587_v27 }
 0xdb7   : > { %4589 = vmatprep.subr.bf16.mxu1 %v4906_v23 }
 0xdb9   : > { %4441 = vmatmul.mubr.msk.f32.gmra.mrb[54].mxu1 %vm885_vm15, %v3141_v56 }
 0xdba   : > { %4443 = vmatprep.mubr.msk.f32.mxu1 %vm4907_vm2, %v4908_v25  ;;  %4591 = vmatpush3.bf16.msra.mxu1 %v4590_v22 }
 0xdbb   : > { %4592 = vmatprep.subr.bf16.mxu1 %v4906_v23 }
 0xdbd   : > { %4444 = vmatmul.mubr.msk.f32.gmra.mrb[56].mxu1 %vm885_vm15, %v3142_v40 }
 0xdbe   : > { %4475 = vmatprep.mubr.msk.f32.mxu1 %vm4907_vm2, %v4908_v25  ;;  %4594 = vmatpush3.bf16.msra.mxu1 %v4593_v4 }
 0xdbf   : > { %4595 = vmatprep.subr.bf16.mxu1 %v4906_v23 }
 0xe7c   : > { %v2975_v9 = vpop.f32.mrb[46].mxu1 }
 0xe7d   : > { %v2989_v5 = vadd.f32 %v2975_v9, %v5753_v37  ;;  %v4409_v20 = vpop.f32.mrb[47].mxu1 }
 0xe80   : > { %v2980_v6 = vpop.f32.mrb[48].mxu1 }
 0xe81   : > { %v2990_v32 = vadd.f32 %v2980_v6, %v5755_v49  ;;  %v4412_v46 = vpop.f32.mrb[49].mxu1 }
 0xe84   : > { %v2985_v36 = vpop.f32.mrb[50].mxu1 }
 0xe85   : > { %v2991_v48 = vadd.f32 %v2985_v36, %v5757_v34  ;;  %v4415_v38 = vpop.f32.mrb[51].mxu1 }
 0xe88   : > { %v3231_v39 = vpop.f32.mrb[52].mxu1 }
 0xe89   : > { %v3245_v41 = vadd.f32 %v3231_v39, %v2989_v5  ;;  %v4439_v42 = vpop.f32.mrb[53].mxu1 }
 0xe8a   : > { %v3921_v42 = vld [vmem:[%s5992_s7 + $0x70] sm:$0xff] }
 0xe8b   : > { %v5796_v0 = vadd.f32 %v3245_v41, %v5490_v53 }
 0xe8c   : > { %v3236_v29 = vpop.f32.mrb[54].mxu1 }
 0xe8d   : > { %v3246_v43 = vadd.f32 %v3236_v29, %v2990_v32  ;;  %v4442_v12 = vpop.f32.mrb[55].mxu1  ;;  %v3251_v37 = vsel %vm607_vm0, %v5796_v0, 0.0  ;;  %v3922_v29 = vld [vmem:[%s5992_s7 + $0x78] sm:$0xff] }
 0xe8e   : > { %3252 = vadd.xlane.f32.xlu0 %v3251_v37 }
 0xe8f   : > { %v5801_v49 = vadd.f32 %v3246_v43, %v5495_v63  ;;  %v4596_v43 = vpack.c.bf16 %v3922_v29, %v3921_v42  ;;  %v3698_v42 = vld [vmem:[%s565_s23] sm:$0xff] }
 0xe90   : > { %v3241_v60 = vpop.f32.mrb[56].mxu1 }
 0xe91   : > { %v3247_v16 = vadd.f32 %v3241_v60, %v2991_v48  ;;  %v4445_v34 = vpop.f32.mrb[57].mxu1  ;;  %v3254_v45 = vsel %vm607_vm0, %v5801_v49, 0.0  ;;  %4597 = vmatpush3.bf16.msra.mxu1 %v4596_v43 }
 0xe92   : > { %3255 = vadd.xlane.f32.xlu1 %v3254_v45 }
 0xe93   : > { %v5806_v53 = vadd.f32 %v3247_v16, %v5500_v11 }
 0xe95   : > { %v3257_v19 = vsel %vm614_vm1, %v5806_v53, 0.0 }
 0xe96   : > { %3258 = vadd.xlane.f32.xlu0 %v3257_v19 }
 0xf1b   : > { %v3253_v31 = vpop.xlane.xlu0 %3252 }
 0xf1c   : > { %v3260_v50 = vmul.f32 0.0625, %v3253_v31 }
 0xf1e   : > { %v3263_v52 = vsub.f32 %v5796_v0, %v3260_v50  ;;  %v3591_v50 = vld [vmem:[%s5997_s12] sm:$0xff] }
 0xf1f   : > { %v3256_v63 = vpop.xlane.xlu1 %3255 }
 0xf20   : > { %v3261_v57 = vmul.f32 0.0625, %v3256_v63  ;;  %v3266_v59 = vmul.f32 %v3263_v52, %v3263_v52 }
 0xf22   : > { %v3264_v61 = vsub.f32 %v5801_v49, %v3261_v57  ;;  %v3269_v55 = vsel %vm607_vm0, %v3266_v59, 0.0  ;;  %v3594_v57 = vld [vmem:[%s5997_s12 + $0x18] sm:$0xff]  ;;  %v3489_v59 = vld [vmem:[%s5994_s9] sm:$0xff] }
 0xf23   : > { %3270 = vadd.xlane.f32.xlu0 %v3269_v55  ;;  %v3259_v54 = vpop.xlane.xlu0 %3258 }
 0xf24   : > { %v3262_v62 = vmul.f32 0.0625, %v3259_v54  ;;  %v3267_v11 = vmul.f32 %v3264_v61, %v3264_v61 }
 0xf26   : > { %v3265_v2 = vsub.f32 %v5806_v53, %v3262_v62  ;;  %v3272_v3 = vsel %vm607_vm0, %v3267_v11, 0.0  ;;  %v3595_v62 = vld [vmem:[%s5997_s12 + $0x20] sm:$0xff]  ;;  %v3596_v11 = vld [vmem:[%s5997_s12 + $0x28] sm:$0xff] }
 0xf27   : > { %3273 = vadd.xlane.f32.xlu0 %v3272_v3  ;;  %v3589_v3 = vld [vmem:[%s560_s19] sm:$0xff] }
 0xf28   : > { %v3268_v7 = vmul.f32 %v3265_v2, %v3265_v2 }
 0xf2a   : > { %v3275_v8 = vsel %vm614_vm1, %v3268_v7, 0.0  ;;  %vm3586_vm1 = vcmask 392192   ;;  %v3590_v7 = vld [vmem:[%s560_s19 + $0x8] sm:$0xff]  ;;  %s545_s19 = scalar_lea.vmem [#allocation2], %s3847_s27 }
 0xf2b   : > { %3276 = vadd.xlane.f32.xlu1 %v3275_v8  ;;  %v3974_v8 = vld [vmem:[%s5993_s8 + $0x1] ss:$0 sm:$0xff]  ;;  %s3735_s21 = sshll.u32 %s545_s19, 4  ;;  %s5930_s21 = int_to_ptr.vmem [resolvable:$true] %s3735_s21 }
 0xf2c   : > { %s4842_s30 = scalar_lea.vmem %s5930_s21, 256 }
 0xf2d   : > { %p4843_p11 = scmp.ne.s32.totalorder %s5930_s21, %s4842_s30 }
 0xf2f   : > { %p4844_p12 = pnand %p4843_p11, %p5039_p5 }
 0xf31   : > { %p4845_p13 = pneg %p4844_p12 }
 0xfb0   : > { %v3271_v30 = vpop.xlane.xlu0 %3270 }
 0xfb1   : > { %v3278_v28 = vmul.f32 0.0625, %v3271_v30 }
 0xfb3   : > { %v3281_v47 = vadd.f32 1e-05, %v3278_v28 }
 0xfb4   : > { %v3274_v1 = vpop.xlane.xlu0 %3273 }
 0xfb5   : > { %4831 = vrsqrt.f32 %v3281_v47  ;;  %v3279_v33 = vmul.f32 0.0625, %v3274_v1 }
 0xfb7   : > { %v3282_v51 = vadd.f32 1e-05, %v3279_v33 }
 0xfb8   : > { %v3277_v35 = vpop.xlane.xlu1 %3276 }
 0xfb9   : > { %4833 = vrsqrt.f32 %v3282_v51  ;;  %v3280_v56 = vmul.f32 0.0625, %v3277_v35 }
 0xfbb   : > { %v3283_v40 = vadd.f32 1e-05, %v3280_v56 }
 0xfbd   : > { %4835 = vrsqrt.f32 %v3283_v40 }
 0xfbf   : > { %v4832_v9 = vpop.eup %4831 }
 0xfc0   : > { %v3287_v5 = vmul.f32 %v4832_v9, %v3263_v52  ;;  %v3592_v52 = vld [vmem:[%s5997_s12 + $0x8] sm:$0xff] }
 0xfc1   : > { %v4602_v63 = vpack.c.bf16 %v3592_v52, %v3591_v50 }
 0xfc2   : > { %v3290_v20 = vmul.f32 %v5520_v58, %v3287_v5 }
 0xfc3   : > { %v4834_v6 = vpop.eup %4833  ;;  %4603 = vmatprep.subr.bf16.mxu1 %v4602_v63 }
 0xfc4   : > { %v3293_v32 = vadd.f32 %v5525_v44, %v3290_v20  ;;  %v3288_v23 = vmul.f32 %v4834_v6, %v3264_v61  ;;  %v3490_v61 = vld [vmem:[%s5994_s9 + $0x8] sm:$0xff] }
 0xfc5   : > { %v4598_v54 = vpack.c.bf16 %v3490_v61, %v3489_v59 }
 0xfc6   : > { %4451 = vmatmul.mubr.msk.f32.vlgmr.msra.gmra.mrb[62].mxu0 %vm607_vm0, %v3293_v32  ;;  %v3291_v46 = vmul.f32 %v5520_v58, %v3288_v23 }
 0xfc7   : > { %v4836_v36 = vpop.eup %4835  ;;  %4453 = vmatprep.mubr.msk.f32.mxu0 %vm4907_vm2, %v4908_v25  ;;  %4599 = vmatprep.subr.bf16.mxu0 %v4598_v54 }
 0xfc8   : > { %v3294_v48 = vadd.f32 %v5525_v44, %v3291_v46  ;;  %v3289_v38 = vmul.f32 %v4836_v36, %v3265_v2  ;;  %4601 = vmatpush3.bf16.msra.mxu0 %v4598_v54  ;;  %v4610_v2 = vpack.c.bf16 %v3596_v11, %v3595_v62 }
 0xfca   : > { %4454 = vmatmul.mubr.msk.f32.gmra.mrb[64].mxu0 %vm607_vm0, %v3294_v48  ;;  %v3292_v39 = vmul.f32 %v5520_v58, %v3289_v38  ;;  %v3970_v58 = vld [vmem:[%s5991_s6 + $0x1] ss:$0 sm:$0xff]  ;;  %v3699_v38 = vld [vmem:[%s565_s23 + $0x8] sm:$0xff] }
 0xfcb   : > { %4456 = vmatprep.mubr.msk.f32.mxu0 %vm4907_vm2, %v4908_v25 }
 0xfcc   : > { %v3295_v41 = vadd.f32 %v5525_v44, %v3292_v39 }
 0xfce   : > { %4457 = vmatmul.mubr.msk.f32.gmra.mrb[66].mxu0 %vm607_vm0, %v3295_v41 }
0x1099   : > { %v3377_v12 = vpop.f32.mrb[62].mxu0 }
0x109a   : > { %v3378_v37 = vadd.f32 %v3970_v58, %v3377_v12  ;;  %v4452_v60 = vpop.f32.mrb[63].mxu0 }
0x109c   : > { %4476 = vmatmul.mubr.msk.f32.vlgmr.msra.gmra.mrb[58].mxu1 %vm1960_vm4, %v3378_v37 }
0x109d   : > { %v3382_v44 = vpop.f32.mrb[64].mxu0  ;;  %4478 = vmatprep.mubr.msk.f32.mxu1 %vm4907_vm2, %v4908_v25  ;;  %4605 = vmatpush3.bf16.msra.mxu1 %v4602_v63 }
0x109e   : > { %v3383_v16 = vadd.f32 %v3970_v58, %v3382_v44  ;;  %v4455_v34 = vpop.f32.mrb[65].mxu0 }
0x10a0   : > { %4479 = vmatmul.mubr.msk.f32.gmra.mrb[60].mxu1 %vm1960_vm4, %v3383_v16 }
0x10a1   : > { %v3387_v45 = vpop.f32.mrb[66].mxu0  ;;  %4481 = vmatprep.mubr.msk.f32.mxu1 %vm4907_vm2, %v4908_v25  ;;  %v3593_v25 = vld [vmem:[%s5997_s12 + $0x10] sm:$0xff]  ;;  %vm3501_vm2 = vcmask 1046528  }
0x10a2   : > { %v3388_v19 = vadd.f32 %v3970_v58, %v3387_v45  ;;  %v4458_v31 = vpop.f32.mrb[67].mxu0  ;;  %v4606_v55 = vpack.c.bf16 %v3594_v57, %v3593_v25 }
0x10a4   : > { %4482 = vmatmul.mubr.msk.f32.gmra.mrb[62].mxu1 %vm1960_vm4, %v3388_v19  ;;  %4607 = vmatprep.subr.bf16.mxu1 %v4606_v55 }
0x10a5   : > { %4609 = vmatpush3.bf16.msra.mxu1 %v4606_v55  ;;  %4503 = vmatprep.mubr.msk.f32.mxu1 %vm3586_vm1, %v3589_v3 }
0x10a6   : > { %4611 = vmatprep.subr.bf16.mxu1 %v4610_v2 }
0x10a9   : > { %4613 = vmatpush3.bf16.msra.mxu1 %v4610_v2 }
0x10ac   : > { %4504 = vmatmul.mubr.msk.f32.vlgmr.msra.gmra.mrb[64].mxu1 %vm3586_vm1, %v3590_v7 }
0x116f   : > { %v3472_v10 = vpop.f32.mrb[58].mxu1 }
0x1170   : > { %v3473_v18 = vadd.f32 %v3974_v8, %v3472_v10  ;;  %v4477_v13 = vpop.f32.mrb[59].mxu1 }
0x1172   : > { %v3486_v15 = vadd.f32 %v3473_v18, %v5796_v0 }
0x1173   : > { %v3477_v14 = vpop.f32.mrb[60].mxu1 }
0x1174   : > { %v3478_v17 = vadd.f32 %v3974_v8, %v3477_v14  ;;  %v4480_v27 = vpop.f32.mrb[61].mxu1  ;;  %v3502_v24 = vrot.slane %v3486_v15, 1 }
0x1176   : > { %v3487_v21 = vadd.f32 %v3478_v17, %v5801_v49  ;;  %v3981_v49 = vld [vmem:[%s5998_s13] ss:$0 sm:$0xff] }
0x1177   : > { %v3482_v22 = vpop.f32.mrb[62].mxu1 }
0x1178   : > { %v3503_v26 = vrot.slane %v3487_v21, 1  ;;  %v3483_v4 = vadd.f32 %v3974_v8, %v3482_v22  ;;  %v4483_v30 = vpop.f32.mrb[63].mxu1 }
0x117a   : > { %v3488_v28 = vadd.f32 %v3483_v4, %v5806_v53  ;;  %v3504_v47 = vsel %vm3501_vm2, %v3502_v24, %v3503_v26  ;;  %v3978_v53 = vld [vmem:[%s5995_s10] ss:$0 sm:$0xff] }
0x117b   : > { %4488 = vmatprep.mubr.msk.f32.mxu0 %vm607_vm0, %v3504_v47 }
0x117c   : > { %v3505_v1 = vrot.slane %v3488_v28, 1 }
0x117e   : > { %v3506_v33 = vsel %vm3501_vm2, %v3503_v26, %v3505_v1 }
0x117f   : > { %4489 = vmatmul.mubr.msk.f32.vlgmr.msra.gmra.mrb[68].mxu0 %vm607_vm0, %v3506_v33  ;;  %v4505_v0 = vpop.f32.mrb[64].mxu1  ;;  %vm3702_vm0 = vcmask 7168  }
0x1180   : > { %v3676_v51 = vpop.f32.mrb[65].mxu1  ;;  %v3682_v35 = vadd.f32 %v4505_v0, %v3981_v49 }
0x1181   : > { %v3677_v40 = vadd.f32 %v3981_v49, %v3676_v51 }
0x1252   : > { %v4490_v56 = vpop.f32.mrb[68].mxu0 }
0x1253   : > { %v3583_v9 = vadd.f32 %v4490_v56, %v3978_v53  ;;  %v3577_v5 = vpop.f32.mrb[69].mxu0 }
0x1254   : > { %v3578_v20 = vadd.f32 %v3978_v53, %v3577_v5 }
0x1255   : > { %3588 = vst.msk [vmem:[%s545_s19 + $0x8] sm:$0xff] %vm3586_vm1, %v3583_v9  ;;  %v3686_v6 = vsub.f32 %v3583_v9, %v3682_v35 }
0x1256   : > { %3587 = vst.msk [vmem:[%s545_s19] sm:$0xff] %vm3586_vm1, %v3578_v20  ;;  %v3685_v32 = vsub.f32 %v3578_v20, %v3677_v40  ;;  %s4913_s19 = smov [#allocation2]  }
0x1257   : > { %v3688_v23 = vmul.f32 %v3686_v6, %v3686_v6  ;;  %s4846_s23 = sshll.u32 %s4913_s19, 4  ;;  %s4847_s23 = int_to_ptr.vmem [resolvable:$false] %s4846_s23 }
0x1258   : > { %v3687_v46 = vmul.f32 %v3685_v32, %v3685_v32  ;;  %s4848_s1 = scalar_lea.vmem %s4847_s23, 512  ;;  %p4849_p0 = scmp.lt.s32.totalorder %s5930_s21, %s4847_s23 }
0x1259   : > { %v3692_v36 = vsel %vm3586_vm1, %v3688_v23, 0.0  ;;  %p4850_p1 = scmp.lt.s32.totalorder %s4848_s1, %s4842_s30 }
0x125a   : > { %3693 = vadd.xlane.f32.xlu1 %v3692_v36  ;;  %v3689_v48 = vsel %vm3586_vm1, %v3687_v46, 0.0 }
0x125b   : > { %3690 = vadd.xlane.f32.xlu0 %v3689_v48  ;;  %p4851_p2 = por %p4850_p1, %p4849_p0 }
0x125d   : > { %p4852_p3 = pnand %p4851_p2, %p4845_p13 }
0x12e7   : > { %v3694_v39 = vpop.xlane.xlu1 %3693 }
0x12e8   : > { %v3697_v41 = vmul.f32 0.020833334, %v3694_v39  ;;  %v3691_v29 = vpop.xlane.xlu0 %3690 }
0x12e9   : > { %v3696_v43 = vmul.f32 0.020833334, %v3691_v29 }
0x12ea   : > { %v3701_v58 = vmul.f32 %v3699_v38, %v3697_v41 }
0x12eb   : > { %v3700_v12 = vmul.f32 %v3698_v42, %v3696_v43 }
0x12ec   : > { %v3704_v37 = vsel %vm3702_vm0, %v3701_v58, 0.0 }
0x12ed   : > { %v3703_v60 = vsel %vm3702_vm0, %v3700_v12, 0.0 }
0x12ee   : > { %v3705_v44 = vadd.f32 %v3704_v37, %v3703_v60 }
0x12f0   : > { %3706 = vadd.xlane.f32.xlu0 %v3705_v44 }
0x12f1   : > { %4855 = shalt.err (!%p4852_p3)
}
0x12f2   : > { %s4856_s25 = scalar_lea.hbm %s5936_s29, 256  ;;  %s4860_s27 = scalar_lea.hbm %s6000_s15, 512 }
0x12f3   : > { %p4857_p4 = scmp.ne.s32.totalorder %s5936_s29, %s4856_s25  ;;  %p4861_p9 = scmp.lt.u32.totalorder %s5936_s29, %s6000_s15 }
0x12f4   : > { %p4862_p10 = scmp.lt.u32.totalorder %s4860_s27, %s4856_s25  ;;  %p4864_p12 = scmp.lt.u32.totalorder %s4856_s25, %s5936_s29 }
0x12f5   : > { %p4858_p7 = pnand %p4857_p4, %p5039_p5 }
0x12f6   : > { %p4863_p11 = por %p4862_p10, %p4861_p9 }
0x12f7   : > { %p4859_p8 = pneg %p4858_p7 }
0x12f8   : > { %p4865_p13 = por %p4864_p12, %p4863_p11 }
0x12fa   : > { %p4866_p0 = pnand %p4865_p13, %p4859_p8 }
0x12fc   : > { %4869 = shalt.err (!%p4866_p0)
}
0x12fd   : > { %s4914_s1 = smov 128   ;;  %s4915_s30 = smov 8   ;;  %vm3716_vm5 = vcmask 0  }
0x12fe   : > { %4621 = dma.vmem_to_hbm [thread:$0]  (%p5039_p5), %s5930_s21, 256, %s5936_s29, %s5940_s28, %s4914_s1, %s4914_s1, %s4915_s30  }
0x12ff   : > { %s568_s26 = scalar_lea.vmem %s6001_s16, %s5051_s18 }
0x137d   : > { %v3707_v16 = vpop.xlane.xlu0 %3706 }
0x137e   : > { %v3708_v34 = vrot.slane %v3707_v16, 4 }
0x1380   : > { %v3709_v45 = vadd.f32 %v3708_v34, %v3707_v16 }
0x1382   : > { %v3710_v19 = vrot.slane %v3709_v45, 2 }
0x1384   : > { %v3711_v31 = vadd.f32 %v3710_v19, %v3709_v45 }
0x1386   : > { %v3712_v50 = vrot.slane %v3711_v31, 1 }
0x1388   : > { %v3713_v52 = vadd.f32 %v3712_v50, %v3711_v31 }
0x138a   : > { %4619 = vpush %v3713_v52 }
0x13bb   : > { %s4620_s17 = spop %4619 }
0x13bc   : > { %v3715_v63 = vstv %s4620_s17 }
0x13bd   : > { %3717 = vst.msk [vmem:[%s568_s26] sm:$0x1] %vm3716_vm5, %v3715_v63 }
0x13be PF: > { %s6032_s0 = sld [smem:[#allocation5_spill]]  ;;  %p4627_p5 = scmp.ge.s32.totalorder %s4904_s24, 2 }
0x13c0   : > { %p4624_p1 = pnand %p4627_p5, %p5043_p6 }
0x13c4   : > { %s3753_s29 = sand.u32 1, %s6032_s0  }
0x13c5   : > { %s3754_s28 = scalar_lea.sflag [#allocation3], %s3753_s29 }
0x13c6   : > { %4887 = dma.done.wait (!%p4624_p1), %s3754_s28, 256  }
0x13c7   : > { %4889 = vsyncadd (!%p4624_p1), %s3754_s28, 4294967040  ;;  %s6034_s24 = sld [smem:[#allocation7_spill]]  ;;  %s6035_s27 = sld [smem:[#allocation6_spill]] }
0x13c8   : > { %s6036_s23 = sld [smem:[#allocation8_spill]]  ;;  %s6037_s21 = smov %s4896_s22 }
0x13cd   : > { %p27_p2 = scmp.ge.s32.totalorder %s6034_s24, 4   ;;  %s6038_s22 = smov %s6035_s27 }
0x13cf   :  { %29 = sbr.rel (!%p27_p2) target bundleno = 6 (0x6), region = 141 }
0x13d6   :  { %3765 = vsyncpa [#allocation3], 1 }
0x13d7   :  { %3767 = vsyncpa [#allocation3 + $0x1], 1 }

</bundles_post_ra>
